<compile_context>
chip_gen: v7x
topology: tpu7x:2x2x1
jax: 0.10.0
libtpu: 0.0.40
codegen_flags: <defaults>
</compile_context>

<pallas_src>
import functools

import jax
import jax.numpy as jnp
from jax.experimental import pallas as pl
from jax.experimental.pallas import tpu as pltpu


# ---------------------------------------------------------------------------
# Pallas kernel: fused 2-layer LSTM + FC head
# ---------------------------------------------------------------------------
def lstm_fc_kernel(x_ref,       # (T*B, I)   time-major, flattened over (T,B), bf16
                   wih0_ref,    # (I, 4H)    layer-0 input->gates (transposed), bf16
                   whh0_ref,    # (H, 4H)    layer-0 hidden->gates (transposed), bf16
                   b0_ref,      # (1, 4H)    layer-0 bias (b_ih + b_hh), f32
                   w1_ref,      # (2H, 4H)   layer-1 stacked [W_ih1^T ; W_hh1^T], bf16
                   b1_ref,      # (1, 4H)    layer-1 bias (b_ih + b_hh), f32
                   fcw_ref,     # (H, Opad)  fc weight (transposed, lane-padded), bf16
                   fcb_ref,     # (1, Opad)  fc bias (lane-padded), f32
                   out_ref,     # (B, Opad)  f32
                   xproj_ref):  # (T*B, 4H)  f32 scratch: precomputed layer-0 x-projection
    B = out_ref.shape[0]
    T = x_ref.shape[0] // B
    H = whh0_ref.shape[0]
    f32 = jnp.float32
    bf16 = jnp.bfloat16

    # --- Hoisted layer-0 input projection for ALL timesteps (bias folded in). ---
    # One well-filled (T*B, I) x (I, 4H) matmul instead of T tiny ones on the
    # serial critical path.
    xproj_ref[...] = (
        jnp.dot(x_ref[...], wih0_ref[...], preferred_element_type=f32)
        + b0_ref[...])

    def sigmoid(v):
        # Single EUP tanh per gate: sigmoid(x) == 0.5*(tanh(0.5*x)+1)
        return 0.5 * (jnp.tanh(0.5 * v) + 1.0)

    def gates_to_hc(gates, c):
        # PyTorch gate order along the 4H axis: i, f, g, o.
        i = sigmoid(gates[:, 0 * H:1 * H])
        f = sigmoid(gates[:, 1 * H:2 * H])
        g = jnp.tanh(gates[:, 2 * H:3 * H])
        o = sigmoid(gates[:, 3 * H:4 * H])
        c_new = f * c + i * g
        h_new = o * jnp.tanh(c_new)
        return h_new, c_new

    # Hoisted bias broadcast (JAX does not CSE broadcast_in_dim inside loops).
    b1b = jnp.broadcast_to(b1_ref[...], (B, 4 * H))

    h0 = jnp.zeros((B, H), f32)
    c0 = jnp.zeros((B, H), f32)
    h1 = jnp.zeros((B, H), f32)
    c1 = jnp.zeros((B, H), f32)

    # Fully unrolled recurrence (T is a compile-time constant; static slices only).
    for t in range(T):
        # Layer 0: input projection precomputed; only the recurrent matmul remains.
        gates0 = (xproj_ref[t * B:(t + 1) * B, :]
                  + jnp.dot(h0.astype(bf16), whh0_ref[...],
                            preferred_element_type=f32))
        h0, c0 = gates_to_hc(gates0, c0)

        # Layer 1: fused K=2H (=256) matmul over concat([h0_new, h1_prev]).
        hcat = jnp.concatenate([h0.astype(bf16), h1.astype(bf16)], axis=-1)
        gates1 = jnp.dot(hcat, w1_ref[...], preferred_element_type=f32) + b1b
        h1, c1 = gates_to_hc(gates1, c1)

    # fc(output[:, -1, :]) — lane-padded output keeps the store lane-dense.
    out_ref[...] = (jnp.dot(h1.astype(bf16), fcw_ref[...],
                            preferred_element_type=f32)
                    + fcb_ref[...])

    # TODO(synk): if B grows well beyond 8, add a leading "parallel" batch grid
    # axis so v7x's 2 TensorCores each take half of the batch.


# ---------------------------------------------------------------------------
# Wrapper
# ---------------------------------------------------------------------------
@functools.partial(jax.jit, static_argnames=("output_size",))
def lstm_model_forward(x, params, output_size):
    """x: (B, T, I) float32, batch_first (PyTorch convention). Returns (B, output_size)."""
    B, T, I = x.shape
    H4 = params["whh0_t"].shape[1]
    Opad = params["fcw_t_pad"].shape[1]

    # Time-major, flattened over (T, B), bf16 MXU operand.
    x_tm = jnp.transpose(x, (1, 0, 2)).reshape(T * B, I).astype(jnp.bfloat16)

    vmem = pl.BlockSpec(memory_space=pltpu.MemorySpace.VMEM)
    out = pl.pallas_call(
        lstm_fc_kernel,
        out_shape=jax.ShapeDtypeStruct((B, Opad), jnp.float32),
        in_specs=[vmem] * 8,
        out_specs=vmem,
        scratch_shapes=[pltpu.VMEM((T * B, H4), jnp.float32)],
    )(x_tm,
      params["wih0_t"], params["whh0_t"], params["b0"],
      params["w1_stacked"], params["b1"],
      params["fcw_t_pad"], params["fcb_pad"])

    return out[:, :output_size]


# ---------------------------------------------------------------------------
# Deterministic parameter init (PyTorch-style uniform(-1/sqrt(H), 1/sqrt(H)))
# ---------------------------------------------------------------------------
def init_params(key, input_size, hidden_size, output_size, lane=128):
    H = hidden_size
    bound = 1.0 / jnp.sqrt(jnp.float32(H))
    ks = jax.random.split(key, 12)

    def u(k, shape):
        return jax.random.uniform(k, shape, jnp.float32, -bound, bound)

    # Layer 0
    w_ih0 = u(ks[0], (4 * H, input_size))
    w_hh0 = u(ks[1], (4 * H, H))
    b_ih0 = u(ks[2], (4 * H,))
    b_hh0 = u(ks[3], (4 * H,))
    # Layer 1 (input size == H)
    w_ih1 = u(ks[4], (4 * H, H))
    w_hh1 = u(ks[5], (4 * H, H))
    b_ih1 = u(ks[6], (4 * H,))
    b_hh1 = u(ks[7], (4 * H,))
    # FC head
    fb = 1.0 / jnp.sqrt(jnp.float32(H))
    fc_w = jax.random.uniform(ks[8], (output_size, H), jnp.float32, -fb, fb)
    fc_b = jax.random.uniform(ks[9], (output_size,), jnp.float32, -fb, fb)

    # Pad FC output dim to a lane-dense multiple of 128 for the kernel.
    Opad = max(lane, ((output_size + lane - 1) // lane) * lane)
    fcw_t_pad = jnp.zeros((H, Opad), jnp.float32).at[:, :output_size].set(fc_w.T)
    fcb_pad = jnp.zeros((1, Opad), jnp.float32).at[0, :output_size].set(fc_b)

    bf16 = jnp.bfloat16
    params = {
        # bf16 MXU operands
        "wih0_t": w_ih0.T.astype(bf16),                                   # (I, 4H)
        "whh0_t": w_hh0.T.astype(bf16),                                   # (H, 4H)
        "w1_stacked": jnp.concatenate([w_ih1.T, w_hh1.T], axis=0).astype(bf16),  # (2H, 4H)
        "fcw_t_pad": fcw_t_pad.astype(bf16),                              # (H, Opad)
        # f32 biases
        "b0": (b_ih0 + b_hh0)[None, :],                                   # (1, 4H)
        "b1": (b_ih1 + b_hh1)[None, :],                                   # (1, 4H)
        "fcb_pad": fcb_pad,                                               # (1, Opad)
    }
    raw = (w_ih0, w_hh0, b_ih0, b_hh0, w_ih1, w_hh1, b_ih1, b_hh1, fc_w, fc_b)
    return params, raw


# ---------------------------------------------------------------------------
# Pure-JAX reference (mirrors torch.nn.LSTM + Linear) for a sanity check
# ---------------------------------------------------------------------------
def reference_forward(x, raw):
    w_ih0, w_hh0, b_ih0, b_hh0, w_ih1, w_hh1, b_ih1, b_hh1, fc_w, fc_b = raw
    B, T, _ = x.shape
    H = w_hh0.shape[1]

    def cell(x_t, h, c, w_ih, w_hh, b_ih, b_hh):
        g = x_t @ w_ih.T + b_ih + h @ w_hh.T + b_hh
        i, f, gg, o = jnp.split(g, 4, axis=-1)
        c_new = jax.nn.sigmoid(f) * c + jax.nn.sigmoid(i) * jnp.tanh(gg)
        h_new = jax.nn.sigmoid(o) * jnp.tanh(c_new)
        return h_new, c_new

    h0 = c0 = h1 = c1 = jnp.zeros((B, H), jnp.float32)
    for t in range(T):
        h0, c0 = cell(x[:, t, :], h0, c0, w_ih0, w_hh0, b_ih0, b_hh0)
        h1, c1 = cell(h0, h1, c1, w_ih1, w_hh1, b_ih1, b_hh1)
    return h1 @ fc_w.T + fc_b


if __name__ == "__main__":
    input_size = 128
    hidden_size = 128
    output_size = 18
    batch = 8
    seq_len = 8

    key = jax.random.PRNGKey(0)
    k_x, k_p = jax.random.split(key)
    x = jax.random.normal(k_x, (batch, seq_len, input_size), jnp.float32)
    params, raw = init_params(k_p, input_size, hidden_size, output_size)

    out = lstm_model_forward(x, params, output_size)
    out = jax.block_until_ready(out)
    assert out.shape == (batch, output_size)

    # bf16 matmul operands drift slightly vs the f32 reference over the 8-step
    # recurrence; tolerance relaxed accordingly (review-approved).
    ref = reference_forward(x, raw)
    max_err = float(jnp.max(jnp.abs(out - ref)))
    assert max_err < 5e-2, f"mismatch vs reference: max abs err {max_err}"

    print("KERNEL_OK")
</pallas_src>

<mosaic_0001>
module attributes {stable_mosaic.version = 11 : i64} {
  func.func @lstm_fc_kernel(%arg0: memref<64x128xbf16, #tpu.memory_space<vmem>>, %arg1: memref<128x512xbf16, #tpu.memory_space<vmem>>, %arg2: memref<128x512xbf16, #tpu.memory_space<vmem>>, %arg3: memref<1x512xf32, #tpu.memory_space<vmem>>, %arg4: memref<256x512xbf16, #tpu.memory_space<vmem>>, %arg5: memref<1x512xf32, #tpu.memory_space<vmem>>, %arg6: memref<128x128xbf16, #tpu.memory_space<vmem>>, %arg7: memref<1x128xf32, #tpu.memory_space<vmem>>, %arg8: memref<8x128xf32, #tpu.memory_space<vmem>>, %arg9: memref<64x512xf32, #tpu.memory_space<vmem>>) attributes {dimension_semantics = [], scalar_prefetch = 0 : i64, scratch_operands = 1 : i64, tpu.core_type = #tpu.core_type<tc>} {
    %c0 = arith.constant 0 : index
    %c0_0 = arith.constant 0 : index
    %0 = vector.load %arg0[%c0, %c0_0] : memref<64x128xbf16, #tpu.memory_space<vmem>>, vector<64x128xbf16>
    %c0_1 = arith.constant 0 : index
    %c0_2 = arith.constant 0 : index
    %1 = vector.load %arg1[%c0_1, %c0_2] : memref<128x512xbf16, #tpu.memory_space<vmem>>, vector<128x512xbf16>
    %cst = arith.constant dense<0.000000e+00> : vector<64x512xf32>
    %2 = tpu.matmul %0, %1, %cst {dimension_numbers = #tpu.dot_dimension_numbers<[1], [0], [0], [1], [0, 0, 1, 1], [], []>} : vector<64x128xbf16>, vector<128x512xbf16>, vector<64x512xf32> -> vector<64x512xf32>
    %c0_3 = arith.constant 0 : index
    %c0_4 = arith.constant 0 : index
    %3 = vector.load %arg3[%c0_3, %c0_4] : memref<1x512xf32, #tpu.memory_space<vmem>>, vector<1x512xf32>
    %4 = vector.broadcast %3 : vector<1x512xf32> to vector<64x512xf32>
    %5 = arith.addf %2, %4 : vector<64x512xf32>
    %c0_5 = arith.constant 0 : index
    %c0_6 = arith.constant 0 : index
    %6 = vector.load %arg9[%c0_5, %c0_6] : memref<64x512xf32, #tpu.memory_space<vmem>>, vector<64x512xf32>
    tpu.vector_store %arg9[%c0_5, %c0_6], %5 {strides = array<i32>} : memref<64x512xf32, #tpu.memory_space<vmem>>, vector<64x512xf32>,
    %c0_7 = arith.constant 0 : index
    %c0_8 = arith.constant 0 : index
    %7 = vector.load %arg5[%c0_7, %c0_8] : memref<1x512xf32, #tpu.memory_space<vmem>>, vector<1x512xf32>
    %8 = vector.shape_cast %7 : vector<1x512xf32> to vector<1x512xf32>
    %9 = vector.broadcast %8 : vector<1x512xf32> to vector<8x512xf32>
    %cst_9 = arith.constant 0.000000e+00 : f32
    %10 = vector.broadcast %cst_9 : f32 to vector<8x128xf32>
    %cst_10 = arith.constant 0.000000e+00 : f32
    %11 = vector.broadcast %cst_10 : f32 to vector<8x128xf32>
    %cst_11 = arith.constant 0.000000e+00 : f32
    %12 = vector.broadcast %cst_11 : f32 to vector<8x128xf32>
    %cst_12 = arith.constant 0.000000e+00 : f32
    %13 = vector.broadcast %cst_12 : f32 to vector<8x128xf32>
    %c0_13 = arith.constant 0 : index
    %c0_14 = arith.constant 0 : index
    %14 = vector.load %arg9[%c0_13, %c0_14] : memref<64x512xf32, #tpu.memory_space<vmem>>, vector<8x512xf32>
    %15 = arith.truncf %10 : vector<8x128xf32> to vector<8x128xbf16>
    %c0_15 = arith.constant 0 : index
    %c0_16 = arith.constant 0 : index
    %16 = vector.load %arg2[%c0_15, %c0_16] : memref<128x512xbf16, #tpu.memory_space<vmem>>, vector<128x512xbf16>
    %cst_17 = arith.constant dense<0.000000e+00> : vector<8x512xf32>
    %17 = tpu.matmul %15, %16, %cst_17 {dimension_numbers = #tpu.dot_dimension_numbers<[1], [0], [0], [1], [0, 0, 1, 1], [], []>} : vector<8x128xbf16>, vector<128x512xbf16>, vector<8x512xf32> -> vector<8x512xf32>
    %18 = arith.addf %14, %17 : vector<8x512xf32>
    %19 = vector.extract_strided_slice %18 {offsets = [0, 0], sizes = [8, 128], strides = [1, 1]} : vector<8x512xf32> to vector<8x128xf32>
    %cst_18 = arith.constant 5.000000e-01 : f32
    %20 = vector.broadcast %cst_18 : f32 to vector<8x128xf32>
    %21 = arith.mulf %20, %19 : vector<8x128xf32>
    %22 = math.tanh %21 : vector<8x128xf32>
    %cst_19 = arith.constant 1.000000e+00 : f32
    %23 = vector.broadcast %cst_19 : f32 to vector<8x128xf32>
    %24 = arith.addf %22, %23 : vector<8x128xf32>
    %cst_20 = arith.constant 5.000000e-01 : f32
    %25 = vector.broadcast %cst_20 : f32 to vector<8x128xf32>
    %26 = arith.mulf %25, %24 : vector<8x128xf32>
    %27 = vector.extract_strided_slice %18 {offsets = [0, 128], sizes = [8, 128], strides = [1, 1]} : vector<8x512xf32> to vector<8x128xf32>
    %cst_21 = arith.constant 5.000000e-01 : f32
    %28 = vector.broadcast %cst_21 : f32 to vector<8x128xf32>
    %29 = arith.mulf %28, %27 : vector<8x128xf32>
    %30 = math.tanh %29 : vector<8x128xf32>
    %cst_22 = arith.constant 1.000000e+00 : f32
    %31 = vector.broadcast %cst_22 : f32 to vector<8x128xf32>
    %32 = arith.addf %30, %31 : vector<8x128xf32>
    %cst_23 = arith.constant 5.000000e-01 : f32
    %33 = vector.broadcast %cst_23 : f32 to vector<8x128xf32>
    %34 = arith.mulf %33, %32 : vector<8x128xf32>
    %35 = vector.extract_strided_slice %18 {offsets = [0, 256], sizes = [8, 128], strides = [1, 1]} : vector<8x512xf32> to vector<8x128xf32>
    %36 = math.tanh %35 : vector<8x128xf32>
    %37 = vector.extract_strided_slice %18 {offsets = [0, 384], sizes = [8, 128], strides = [1, 1]} : vector<8x512xf32> to vector<8x128xf32>
    %cst_24 = arith.constant 5.000000e-01 : f32
    %38 = vector.broadcast %cst_24 : f32 to vector<8x128xf32>
    %39 = arith.mulf %38, %37 : vector<8x128xf32>
    %40 = math.tanh %39 : vector<8x128xf32>
    %cst_25 = arith.constant 1.000000e+00 : f32
    %41 = vector.broadcast %cst_25 : f32 to vector<8x128xf32>
    %42 = arith.addf %40, %41 : vector<8x128xf32>
    %cst_26 = arith.constant 5.000000e-01 : f32
    %43 = vector.broadcast %cst_26 : f32 to vector<8x128xf32>
    %44 = arith.mulf %43, %42 : vector<8x128xf32>
    %45 = arith.mulf %34, %11 : vector<8x128xf32>
    %46 = arith.mulf %26, %36 : vector<8x128xf32>
    %47 = arith.addf %45, %46 : vector<8x128xf32>
    %48 = math.tanh %47 : vector<8x128xf32>
    %49 = arith.mulf %44, %48 : vector<8x128xf32>
    %50 = arith.truncf %49 : vector<8x128xf32> to vector<8x128xbf16>
    %51 = arith.truncf %12 : vector<8x128xf32> to vector<8x128xbf16>
    %52 = tpu.concatenate %50, %51 in 1 : vector<8x128xbf16>, vector<8x128xbf16> -> vector<8x256xbf16>
    %c0_27 = arith.constant 0 : index
    %c0_28 = arith.constant 0 : index
    %53 = vector.load %arg4[%c0_27, %c0_28] : memref<256x512xbf16, #tpu.memory_space<vmem>>, vector<256x512xbf16>
    %cst_29 = arith.constant dense<0.000000e+00> : vector<8x512xf32>
    %54 = tpu.matmul %52, %53, %cst_29 {dimension_numbers = #tpu.dot_dimension_numbers<[1], [0], [0], [1], [0, 0, 1, 1], [], []>} : vector<8x256xbf16>, vector<256x512xbf16>, vector<8x512xf32> -> vector<8x512xf32>
    %55 = arith.addf %54, %9 : vector<8x512xf32>
    %56 = vector.extract_strided_slice %55 {offsets = [0, 0], sizes = [8, 128], strides = [1, 1]} : vector<8x512xf32> to vector<8x128xf32>
    %cst_30 = arith.constant 5.000000e-01 : f32
    %57 = vector.broadcast %cst_30 : f32 to vector<8x128xf32>
    %58 = arith.mulf %57, %56 : vector<8x128xf32>
    %59 = math.tanh %58 : vector<8x128xf32>
    %cst_31 = arith.constant 1.000000e+00 : f32
    %60 = vector.broadcast %cst_31 : f32 to vector<8x128xf32>
    %61 = arith.addf %59, %60 : vector<8x128xf32>
    %cst_32 = arith.constant 5.000000e-01 : f32
    %62 = vector.broadcast %cst_32 : f32 to vector<8x128xf32>
    %63 = arith.mulf %62, %61 : vector<8x128xf32>
    %64 = vector.extract_strided_slice %55 {offsets = [0, 128], sizes = [8, 128], strides = [1, 1]} : vector<8x512xf32> to vector<8x128xf32>
    %cst_33 = arith.constant 5.000000e-01 : f32
    %65 = vector.broadcast %cst_33 : f32 to vector<8x128xf32>
    %66 = arith.mulf %65, %64 : vector<8x128xf32>
    %67 = math.tanh %66 : vector<8x128xf32>
    %cst_34 = arith.constant 1.000000e+00 : f32
    %68 = vector.broadcast %cst_34 : f32 to vector<8x128xf32>
    %69 = arith.addf %67, %68 : vector<8x128xf32>
    %cst_35 = arith.constant 5.000000e-01 : f32
    %70 = vector.broadcast %cst_35 : f32 to vector<8x128xf32>
    %71 = arith.mulf %70, %69 : vector<8x128xf32>
    %72 = vector.extract_strided_slice %55 {offsets = [0, 256], sizes = [8, 128], strides = [1, 1]} : vector<8x512xf32> to vector<8x128xf32>
    %73 = math.tanh %72 : vector<8x128xf32>
    %74 = vector.extract_strided_slice %55 {offsets = [0, 384], sizes = [8, 128], strides = [1, 1]} : vector<8x512xf32> to vector<8x128xf32>
    %cst_36 = arith.constant 5.000000e-01 : f32
    %75 = vector.broadcast %cst_36 : f32 to vector<8x128xf32>
    %76 = arith.mulf %75, %74 : vector<8x128xf32>
    %77 = math.tanh %76 : vector<8x128xf32>
    %cst_37 = arith.constant 1.000000e+00 : f32
    %78 = vector.broadcast %cst_37 : f32 to vector<8x128xf32>
    %79 = arith.addf %77, %78 : vector<8x128xf32>
    %cst_38 = arith.constant 5.000000e-01 : f32
    %80 = vector.broadcast %cst_38 : f32 to vector<8x128xf32>
    %81 = arith.mulf %80, %79 : vector<8x128xf32>
    %82 = arith.mulf %71, %13 : vector<8x128xf32>
    %83 = arith.mulf %63, %73 : vector<8x128xf32>
    %84 = arith.addf %82, %83 : vector<8x128xf32>
    %85 = math.tanh %84 : vector<8x128xf32>
    %86 = arith.mulf %81, %85 : vector<8x128xf32>
    %c8 = arith.constant 8 : index
    %c0_39 = arith.constant 0 : index
    %87 = vector.load %arg9[%c8, %c0_39] : memref<64x512xf32, #tpu.memory_space<vmem>>, vector<8x512xf32>
    %88 = arith.truncf %49 : vector<8x128xf32> to vector<8x128xbf16>
    %c0_40 = arith.constant 0 : index
    %c0_41 = arith.constant 0 : index
    %89 = vector.load %arg2[%c0_40, %c0_41] : memref<128x512xbf16, #tpu.memory_space<vmem>>, vector<128x512xbf16>
    %cst_42 = arith.constant dense<0.000000e+00> : vector<8x512xf32>
    %90 = tpu.matmul %88, %89, %cst_42 {dimension_numbers = #tpu.dot_dimension_numbers<[1], [0], [0], [1], [0, 0, 1, 1], [], []>} : vector<8x128xbf16>, vector<128x512xbf16>, vector<8x512xf32> -> vector<8x512xf32>
    %91 = arith.addf %87, %90 : vector<8x512xf32>
    %92 = vector.extract_strided_slice %91 {offsets = [0, 0], sizes = [8, 128], strides = [1, 1]} : vector<8x512xf32> to vector<8x128xf32>
    %cst_43 = arith.constant 5.000000e-01 : f32
    %93 = vector.broadcast %cst_43 : f32 to vector<8x128xf32>
    %94 = arith.mulf %93, %92 : vector<8x128xf32>
    %95 = math.tanh %94 : vector<8x128xf32>
    %cst_44 = arith.constant 1.000000e+00 : f32
    %96 = vector.broadcast %cst_44 : f32 to vector<8x128xf32>
    %97 = arith.addf %95, %96 : vector<8x128xf32>
    %cst_45 = arith.constant 5.000000e-01 : f32
    %98 = vector.broadcast %cst_45 : f32 to vector<8x128xf32>
    %99 = arith.mulf %98, %97 : vector<8x128xf32>
    %100 = vector.extract_strided_slice %91 {offsets = [0, 128], sizes = [8, 128], strides = [1, 1]} : vector<8x512xf32> to vector<8x128xf32>
    %cst_46 = arith.constant 5.000000e-01 : f32
    %101 = vector.broadcast %cst_46 : f32 to vector<8x128xf32>
    %102 = arith.mulf %101, %100 : vector<8x128xf32>
    %103 = math.tanh %102 : vector<8x128xf32>
    %cst_47 = arith.constant 1.000000e+00 : f32
    %104 = vector.broadcast %cst_47 : f32 to vector<8x128xf32>
    %105 = arith.addf %103, %104 : vector<8x128xf32>
    %cst_48 = arith.constant 5.000000e-01 : f32
    %106 = vector.broadcast %cst_48 : f32 to vector<8x128xf32>
    %107 = arith.mulf %106, %105 : vector<8x128xf32>
    %108 = vector.extract_strided_slice %91 {offsets = [0, 256], sizes = [8, 128], strides = [1, 1]} : vector<8x512xf32> to vector<8x128xf32>
    %109 = math.tanh %108 : vector<8x128xf32>
    %110 = vector.extract_strided_slice %91 {offsets = [0, 384], sizes = [8, 128], strides = [1, 1]} : vector<8x512xf32> to vector<8x128xf32>
    %cst_49 = arith.constant 5.000000e-01 : f32
    %111 = vector.broadcast %cst_49 : f32 to vector<8x128xf32>
    %112 = arith.mulf %111, %110 : vector<8x128xf32>
    %113 = math.tanh %112 : vector<8x128xf32>
    %cst_50 = arith.constant 1.000000e+00 : f32
    %114 = vector.broadcast %cst_50 : f32 to vector<8x128xf32>
    %115 = arith.addf %113, %114 : vector<8x128xf32>
    %cst_51 = arith.constant 5.000000e-01 : f32
    %116 = vector.broadcast %cst_51 : f32 to vector<8x128xf32>
    %117 = arith.mulf %116, %115 : vector<8x128xf32>
    %118 = arith.mulf %107, %47 : vector<8x128xf32>
    %119 = arith.mulf %99, %109 : vector<8x128xf32>
    %120 = arith.addf %118, %119 : vector<8x128xf32>
    %121 = math.tanh %120 : vector<8x128xf32>
    %122 = arith.mulf %117, %121 : vector<8x128xf32>
    %123 = arith.truncf %122 : vector<8x128xf32> to vector<8x128xbf16>
    %124 = arith.truncf %86 : vector<8x128xf32> to vector<8x128xbf16>
    %125 = tpu.concatenate %123, %124 in 1 : vector<8x128xbf16>, vector<8x128xbf16> -> vector<8x256xbf16>
    %c0_52 = arith.constant 0 : index
    %c0_53 = arith.constant 0 : index
    %126 = vector.load %arg4[%c0_52, %c0_53] : memref<256x512xbf16, #tpu.memory_space<vmem>>, vector<256x512xbf16>
    %cst_54 = arith.constant dense<0.000000e+00> : vector<8x512xf32>
    %127 = tpu.matmul %125, %126, %cst_54 {dimension_numbers = #tpu.dot_dimension_numbers<[1], [0], [0], [1], [0, 0, 1, 1], [], []>} : vector<8x256xbf16>, vector<256x512xbf16>, vector<8x512xf32> -> vector<8x512xf32>
    %128 = arith.addf %127, %9 : vector<8x512xf32>
    %129 = vector.extract_strided_slice %128 {offsets = [0, 0], sizes = [8, 128], strides = [1, 1]} : vector<8x512xf32> to vector<8x128xf32>
    %cst_55 = arith.constant 5.000000e-01 : f32
    %130 = vector.broadcast %cst_55 : f32 to vector<8x128xf32>
    %131 = arith.mulf %130, %129 : vector<8x128xf32>
    %132 = math.tanh %131 : vector<8x128xf32>
    %cst_56 = arith.constant 1.000000e+00 : f32
    %133 = vector.broadcast %cst_56 : f32 to vector<8x128xf32>
    %134 = arith.addf %132, %133 : vector<8x128xf32>
    %cst_57 = arith.constant 5.000000e-01 : f32
    %135 = vector.broadcast %cst_57 : f32 to vector<8x128xf32>
    %136 = arith.mulf %135, %134 : vector<8x128xf32>
    %137 = vector.extract_strided_slice %128 {offsets = [0, 128], sizes = [8, 128], strides = [1, 1]} : vector<8x512xf32> to vector<8x128xf32>
    %cst_58 = arith.constant 5.000000e-01 : f32
    %138 = vector.broadcast %cst_58 : f32 to vector<8x128xf32>
    %139 = arith.mulf %138, %137 : vector<8x128xf32>
    %140 = math.tanh %139 : vector<8x128xf32>
    %cst_59 = arith.constant 1.000000e+00 : f32
    %141 = vector.broadcast %cst_59 : f32 to vector<8x128xf32>
    %142 = arith.addf %140, %141 : vector<8x128xf32>
    %cst_60 = arith.constant 5.000000e-01 : f32
    %143 = vector.broadcast %cst_60 : f32 to vector<8x128xf32>
    %144 = arith.mulf %143, %142 : vector<8x128xf32>
    %145 = vector.extract_strided_slice %128 {offsets = [0, 256], sizes = [8, 128], strides = [1, 1]} : vector<8x512xf32> to vector<8x128xf32>
    %146 = math.tanh %145 : vector<8x128xf32>
    %147 = vector.extract_strided_slice %128 {offsets = [0, 384], sizes = [8, 128], strides = [1, 1]} : vector<8x512xf32> to vector<8x128xf32>
    %cst_61 = arith.constant 5.000000e-01 : f32
    %148 = vector.broadcast %cst_61 : f32 to vector<8x128xf32>
    %149 = arith.mulf %148, %147 : vector<8x128xf32>
    %150 = math.tanh %149 : vector<8x128xf32>
    %cst_62 = arith.constant 1.000000e+00 : f32
    %151 = vector.broadcast %cst_62 : f32 to vector<8x128xf32>
    %152 = arith.addf %150, %151 : vector<8x128xf32>
    %cst_63 = arith.constant 5.000000e-01 : f32
    %153 = vector.broadcast %cst_63 : f32 to vector<8x128xf32>
    %154 = arith.mulf %153, %152 : vector<8x128xf32>
    %155 = arith.mulf %144, %84 : vector<8x128xf32>
    %156 = arith.mulf %136, %146 : vector<8x128xf32>
    %157 = arith.addf %155, %156 : vector<8x128xf32>
    %158 = math.tanh %157 : vector<8x128xf32>
    %159 = arith.mulf %154, %158 : vector<8x128xf32>
    %c16 = arith.constant 16 : index
    %c0_64 = arith.constant 0 : index
    %160 = vector.load %arg9[%c16, %c0_64] : memref<64x512xf32, #tpu.memory_space<vmem>>, vector<8x512xf32>
    %161 = arith.truncf %122 : vector<8x128xf32> to vector<8x128xbf16>
    %c0_65 = arith.constant 0 : index
    %c0_66 = arith.constant 0 : index
    %162 = vector.load %arg2[%c0_65, %c0_66] : memref<128x512xbf16, #tpu.memory_space<vmem>>, vector<128x512xbf16>
    %cst_67 = arith.constant dense<0.000000e+00> : vector<8x512xf32>
    %163 = tpu.matmul %161, %162, %cst_67 {dimension_numbers = #tpu.dot_dimension_numbers<[1], [0], [0], [1], [0, 0, 1, 1], [], []>} : vector<8x128xbf16>, vector<128x512xbf16>, vector<8x512xf32> -> vector<8x512xf32>
    %164 = arith.addf %160, %163 : vector<8x512xf32>
    %165 = vector.extract_strided_slice %164 {offsets = [0, 0], sizes = [8, 128], strides = [1, 1]} : vector<8x512xf32> to vector<8x128xf32>
    %cst_68 = arith.constant 5.000000e-01 : f32
    %166 = vector.broadcast %cst_68 : f32 to vector<8x128xf32>
    %167 = arith.mulf %166, %165 : vector<8x128xf32>
    %168 = math.tanh %167 : vector<8x128xf32>
    %cst_69 = arith.constant 1.000000e+00 : f32
    %169 = vector.broadcast %cst_69 : f32 to vector<8x128xf32>
    %170 = arith.addf %168, %169 : vector<8x128xf32>
    %cst_70 = arith.constant 5.000000e-01 : f32
    %171 = vector.broadcast %cst_70 : f32 to vector<8x128xf32>
    %172 = arith.mulf %171, %170 : vector<8x128xf32>
    %173 = vector.extract_strided_slice %164 {offsets = [0, 128], sizes = [8, 128], strides = [1, 1]} : vector<8x512xf32> to vector<8x128xf32>
    %cst_71 = arith.constant 5.000000e-01 : f32
    %174 = vector.broadcast %cst_71 : f32 to vector<8x128xf32>
    %175 = arith.mulf %174, %173 : vector<8x128xf32>
    %176 = math.tanh %175 : vector<8x128xf32>
    %cst_72 = arith.constant 1.000000e+00 : f32
    %177 = vector.broadcast %cst_72 : f32 to vector<8x128xf32>
    %178 = arith.addf %176, %177 : vector<8x128xf32>
    %cst_73 = arith.constant 5.000000e-01 : f32
    %179 = vector.broadcast %cst_73 : f32 to vector<8x128xf32>
    %180 = arith.mulf %179, %178 : vector<8x128xf32>
    %181 = vector.extract_strided_slice %164 {offsets = [0, 256], sizes = [8, 128], strides = [1, 1]} : vector<8x512xf32> to vector<8x128xf32>
    %182 = math.tanh %181 : vector<8x128xf32>
    %183 = vector.extract_strided_slice %164 {offsets = [0, 384], sizes = [8, 128], strides = [1, 1]} : vector<8x512xf32> to vector<8x128xf32>
    %cst_74 = arith.constant 5.000000e-01 : f32
    %184 = vector.broadcast %cst_74 : f32 to vector<8x128xf32>
    %185 = arith.mulf %184, %183 : vector<8x128xf32>
    %186 = math.tanh %185 : vector<8x128xf32>
    %cst_75 = arith.constant 1.000000e+00 : f32
    %187 = vector.broadcast %cst_75 : f32 to vector<8x128xf32>
    %188 = arith.addf %186, %187 : vector<8x128xf32>
    %cst_76 = arith.constant 5.000000e-01 : f32
    %189 = vector.broadcast %cst_76 : f32 to vector<8x128xf32>
    %190 = arith.mulf %189, %188 : vector<8x128xf32>
    %191 = arith.mulf %180, %120 : vector<8x128xf32>
    %192 = arith.mulf %172, %182 : vector<8x128xf32>
    %193 = arith.addf %191, %192 : vector<8x128xf32>
    %194 = math.tanh %193 : vector<8x128xf32>
    %195 = arith.mulf %190, %194 : vector<8x128xf32>
    %196 = arith.truncf %195 : vector<8x128xf32> to vector<8x128xbf16>
    %197 = arith.truncf %159 : vector<8x128xf32> to vector<8x128xbf16>
    %198 = tpu.concatenate %196, %197 in 1 : vector<8x128xbf16>, vector<8x128xbf16> -> vector<8x256xbf16>
    %c0_77 = arith.constant 0 : index
    %c0_78 = arith.constant 0 : index
    %199 = vector.load %arg4[%c0_77, %c0_78] : memref<256x512xbf16, #tpu.memory_space<vmem>>, vector<256x512xbf16>
    %cst_79 = arith.constant dense<0.000000e+00> : vector<8x512xf32>
    %200 = tpu.matmul %198, %199, %cst_79 {dimension_numbers = #tpu.dot_dimension_numbers<[1], [0], [0], [1], [0, 0, 1, 1], [], []>} : vector<8x256xbf16>, vector<256x512xbf16>, vector<8x512xf32> -> vector<8x512xf32>
    %201 = arith.addf %200, %9 : vector<8x512xf32>
    %202 = vector.extract_strided_slice %201 {offsets = [0, 0], sizes = [8, 128], strides = [1, 1]} : vector<8x512xf32> to vector<8x128xf32>
    %cst_80 = arith.constant 5.000000e-01 : f32
    %203 = vector.broadcast %cst_80 : f32 to vector<8x128xf32>
    %204 = arith.mulf %203, %202 : vector<8x128xf32>
    %205 = math.tanh %204 : vector<8x128xf32>
    %cst_81 = arith.constant 1.000000e+00 : f32
    %206 = vector.broadcast %cst_81 : f32 to vector<8x128xf32>
    %207 = arith.addf %205, %206 : vector<8x128xf32>
    %cst_82 = arith.constant 5.000000e-01 : f32
    %208 = vector.broadcast %cst_82 : f32 to vector<8x128xf32>
    %209 = arith.mulf %208, %207 : vector<8x128xf32>
    %210 = vector.extract_strided_slice %201 {offsets = [0, 128], sizes = [8, 128], strides = [1, 1]} : vector<8x512xf32> to vector<8x128xf32>
    %cst_83 = arith.constant 5.000000e-01 : f32
    %211 = vector.broadcast %cst_83 : f32 to vector<8x128xf32>
    %212 = arith.mulf %211, %210 : vector<8x128xf32>
    %213 = math.tanh %212 : vector<8x128xf32>
    %cst_84 = arith.constant 1.000000e+00 : f32
    %214 = vector.broadcast %cst_84 : f32 to vector<8x128xf32>
    %215 = arith.addf %213, %214 : vector<8x128xf32>
    %cst_85 = arith.constant 5.000000e-01 : f32
    %216 = vector.broadcast %cst_85 : f32 to vector<8x128xf32>
    %217 = arith.mulf %216, %215 : vector<8x128xf32>
    %218 = vector.extract_strided_slice %201 {offsets = [0, 256], sizes = [8, 128], strides = [1, 1]} : vector<8x512xf32> to vector<8x128xf32>
    %219 = math.tanh %218 : vector<8x128xf32>
    %220 = vector.extract_strided_slice %201 {offsets = [0, 384], sizes = [8, 128], strides = [1, 1]} : vector<8x512xf32> to vector<8x128xf32>
    %cst_86 = arith.constant 5.000000e-01 : f32
    %221 = vector.broadcast %cst_86 : f32 to vector<8x128xf32>
    %222 = arith.mulf %221, %220 : vector<8x128xf32>
    %223 = math.tanh %222 : vector<8x128xf32>
    %cst_87 = arith.constant 1.000000e+00 : f32
    %224 = vector.broadcast %cst_87 : f32 to vector<8x128xf32>
    %225 = arith.addf %223, %224 : vector<8x128xf32>
    %cst_88 = arith.constant 5.000000e-01 : f32
    %226 = vector.broadcast %cst_88 : f32 to vector<8x128xf32>
    %227 = arith.mulf %226, %225 : vector<8x128xf32>
    %228 = arith.mulf %217, %157 : vector<8x128xf32>
    %229 = arith.mulf %209, %219 : vector<8x128xf32>
    %230 = arith.addf %228, %229 : vector<8x128xf32>
    %231 = math.tanh %230 : vector<8x128xf32>
    %232 = arith.mulf %227, %231 : vector<8x128xf32>
    %c24 = arith.constant 24 : index
    %c0_89 = arith.constant 0 : index
    %233 = vector.load %arg9[%c24, %c0_89] : memref<64x512xf32, #tpu.memory_space<vmem>>, vector<8x512xf32>
    %234 = arith.truncf %195 : vector<8x128xf32> to vector<8x128xbf16>
    %c0_90 = arith.constant 0 : index
    %c0_91 = arith.constant 0 : index
    %235 = vector.load %arg2[%c0_90, %c0_91] : memref<128x512xbf16, #tpu.memory_space<vmem>>, vector<128x512xbf16>
    %cst_92 = arith.constant dense<0.000000e+00> : vector<8x512xf32>
    %236 = tpu.matmul %234, %235, %cst_92 {dimension_numbers = #tpu.dot_dimension_numbers<[1], [0], [0], [1], [0, 0, 1, 1], [], []>} : vector<8x128xbf16>, vector<128x512xbf16>, vector<8x512xf32> -> vector<8x512xf32>
    %237 = arith.addf %233, %236 : vector<8x512xf32>
    %238 = vector.extract_strided_slice %237 {offsets = [0, 0], sizes = [8, 128], strides = [1, 1]} : vector<8x512xf32> to vector<8x128xf32>
    %cst_93 = arith.constant 5.000000e-01 : f32
    %239 = vector.broadcast %cst_93 : f32 to vector<8x128xf32>
    %240 = arith.mulf %239, %238 : vector<8x128xf32>
    %241 = math.tanh %240 : vector<8x128xf32>
    %cst_94 = arith.constant 1.000000e+00 : f32
    %242 = vector.broadcast %cst_94 : f32 to vector<8x128xf32>
    %243 = arith.addf %241, %242 : vector<8x128xf32>
    %cst_95 = arith.constant 5.000000e-01 : f32
    %244 = vector.broadcast %cst_95 : f32 to vector<8x128xf32>
    %245 = arith.mulf %244, %243 : vector<8x128xf32>
    %246 = vector.extract_strided_slice %237 {offsets = [0, 128], sizes = [8, 128], strides = [1, 1]} : vector<8x512xf32> to vector<8x128xf32>
    %cst_96 = arith.constant 5.000000e-01 : f32
    %247 = vector.broadcast %cst_96 : f32 to vector<8x128xf32>
    %248 = arith.mulf %247, %246 : vector<8x128xf32>
    %249 = math.tanh %248 : vector<8x128xf32>
    %cst_97 = arith.constant 1.000000e+00 : f32
    %250 = vector.broadcast %cst_97 : f32 to vector<8x128xf32>
    %251 = arith.addf %249, %250 : vector<8x128xf32>
    %cst_98 = arith.constant 5.000000e-01 : f32
    %252 = vector.broadcast %cst_98 : f32 to vector<8x128xf32>
    %253 = arith.mulf %252, %251 : vector<8x128xf32>
    %254 = vector.extract_strided_slice %237 {offsets = [0, 256], sizes = [8, 128], strides = [1, 1]} : vector<8x512xf32> to vector<8x128xf32>
    %255 = math.tanh %254 : vector<8x128xf32>
    %256 = vector.extract_strided_slice %237 {offsets = [0, 384], sizes = [8, 128], strides = [1, 1]} : vector<8x512xf32> to vector<8x128xf32>
    %cst_99 = arith.constant 5.000000e-01 : f32
    %257 = vector.broadcast %cst_99 : f32 to vector<8x128xf32>
    %258 = arith.mulf %257, %256 : vector<8x128xf32>
    %259 = math.tanh %258 : vector<8x128xf32>
    %cst_100 = arith.constant 1.000000e+00 : f32
    %260 = vector.broadcast %cst_100 : f32 to vector<8x128xf32>
    %261 = arith.addf %259, %260 : vector<8x128xf32>
    %cst_101 = arith.constant 5.000000e-01 : f32
    %262 = vector.broadcast %cst_101 : f32 to vector<8x128xf32>
    %263 = arith.mulf %262, %261 : vector<8x128xf32>
    %264 = arith.mulf %253, %193 : vector<8x128xf32>
    %265 = arith.mulf %245, %255 : vector<8x128xf32>
    %266 = arith.addf %264, %265 : vector<8x128xf32>
    %267 = math.tanh %266 : vector<8x128xf32>
    %268 = arith.mulf %263, %267 : vector<8x128xf32>
    %269 = arith.truncf %268 : vector<8x128xf32> to vector<8x128xbf16>
    %270 = arith.truncf %232 : vector<8x128xf32> to vector<8x128xbf16>
    %271 = tpu.concatenate %269, %270 in 1 : vector<8x128xbf16>, vector<8x128xbf16> -> vector<8x256xbf16>
    %c0_102 = arith.constant 0 : index
    %c0_103 = arith.constant 0 : index
    %272 = vector.load %arg4[%c0_102, %c0_103] : memref<256x512xbf16, #tpu.memory_space<vmem>>, vector<256x512xbf16>
    %cst_104 = arith.constant dense<0.000000e+00> : vector<8x512xf32>
    %273 = tpu.matmul %271, %272, %cst_104 {dimension_numbers = #tpu.dot_dimension_numbers<[1], [0], [0], [1], [0, 0, 1, 1], [], []>} : vector<8x256xbf16>, vector<256x512xbf16>, vector<8x512xf32> -> vector<8x512xf32>
    %274 = arith.addf %273, %9 : vector<8x512xf32>
    %275 = vector.extract_strided_slice %274 {offsets = [0, 0], sizes = [8, 128], strides = [1, 1]} : vector<8x512xf32> to vector<8x128xf32>
    %cst_105 = arith.constant 5.000000e-01 : f32
    %276 = vector.broadcast %cst_105 : f32 to vector<8x128xf32>
    %277 = arith.mulf %276, %275 : vector<8x128xf32>
    %278 = math.tanh %277 : vector<8x128xf32>
    %cst_106 = arith.constant 1.000000e+00 : f32
    %279 = vector.broadcast %cst_106 : f32 to vector<8x128xf32>
    %280 = arith.addf %278, %279 : vector<8x128xf32>
    %cst_107 = arith.constant 5.000000e-01 : f32
    %281 = vector.broadcast %cst_107 : f32 to vector<8x128xf32>
    %282 = arith.mulf %281, %280 : vector<8x128xf32>
    %283 = vector.extract_strided_slice %274 {offsets = [0, 128], sizes = [8, 128], strides = [1, 1]} : vector<8x512xf32> to vector<8x128xf32>
    %cst_108 = arith.constant 5.000000e-01 : f32
    %284 = vector.broadcast %cst_108 : f32 to vector<8x128xf32>
    %285 = arith.mulf %284, %283 : vector<8x128xf32>
    %286 = math.tanh %285 : vector<8x128xf32>
    %cst_109 = arith.constant 1.000000e+00 : f32
    %287 = vector.broadcast %cst_109 : f32 to vector<8x128xf32>
    %288 = arith.addf %286, %287 : vector<8x128xf32>
    %cst_110 = arith.constant 5.000000e-01 : f32
    %289 = vector.broadcast %cst_110 : f32 to vector<8x128xf32>
    %290 = arith.mulf %289, %288 : vector<8x128xf32>
    %291 = vector.extract_strided_slice %274 {offsets = [0, 256], sizes = [8, 128], strides = [1, 1]} : vector<8x512xf32> to vector<8x128xf32>
    %292 = math.tanh %291 : vector<8x128xf32>
    %293 = vector.extract_strided_slice %274 {offsets = [0, 384], sizes = [8, 128], strides = [1, 1]} : vector<8x512xf32> to vector<8x128xf32>
    %cst_111 = arith.constant 5.000000e-01 : f32
    %294 = vector.broadcast %cst_111 : f32 to vector<8x128xf32>
    %295 = arith.mulf %294, %293 : vector<8x128xf32>
    %296 = math.tanh %295 : vector<8x128xf32>
    %cst_112 = arith.constant 1.000000e+00 : f32
    %297 = vector.broadcast %cst_112 : f32 to vector<8x128xf32>
    %298 = arith.addf %296, %297 : vector<8x128xf32>
    %cst_113 = arith.constant 5.000000e-01 : f32
    %299 = vector.broadcast %cst_113 : f32 to vector<8x128xf32>
    %300 = arith.mulf %299, %298 : vector<8x128xf32>
    %301 = arith.mulf %290, %230 : vector<8x128xf32>
    %302 = arith.mulf %282, %292 : vector<8x128xf32>
    %303 = arith.addf %301, %302 : vector<8x128xf32>
    %304 = math.tanh %303 : vector<8x128xf32>
    %305 = arith.mulf %300, %304 : vector<8x128xf32>
    %c32 = arith.constant 32 : index
    %c0_114 = arith.constant 0 : index
    %306 = vector.load %arg9[%c32, %c0_114] : memref<64x512xf32, #tpu.memory_space<vmem>>, vector<8x512xf32>
    %307 = arith.truncf %268 : vector<8x128xf32> to vector<8x128xbf16>
    %c0_115 = arith.constant 0 : index
    %c0_116 = arith.constant 0 : index
    %308 = vector.load %arg2[%c0_115, %c0_116] : memref<128x512xbf16, #tpu.memory_space<vmem>>, vector<128x512xbf16>
    %cst_117 = arith.constant dense<0.000000e+00> : vector<8x512xf32>
    %309 = tpu.matmul %307, %308, %cst_117 {dimension_numbers = #tpu.dot_dimension_numbers<[1], [0], [0], [1], [0, 0, 1, 1], [], []>} : vector<8x128xbf16>, vector<128x512xbf16>, vector<8x512xf32> -> vector<8x512xf32>
    %310 = arith.addf %306, %309 : vector<8x512xf32>
    %311 = vector.extract_strided_slice %310 {offsets = [0, 0], sizes = [8, 128], strides = [1, 1]} : vector<8x512xf32> to vector<8x128xf32>
    %cst_118 = arith.constant 5.000000e-01 : f32
    %312 = vector.broadcast %cst_118 : f32 to vector<8x128xf32>
    %313 = arith.mulf %312, %311 : vector<8x128xf32>
    %314 = math.tanh %313 : vector<8x128xf32>
    %cst_119 = arith.constant 1.000000e+00 : f32
    %315 = vector.broadcast %cst_119 : f32 to vector<8x128xf32>
    %316 = arith.addf %314, %315 : vector<8x128xf32>
    %cst_120 = arith.constant 5.000000e-01 : f32
    %317 = vector.broadcast %cst_120 : f32 to vector<8x128xf32>
    %318 = arith.mulf %317, %316 : vector<8x128xf32>
    %319 = vector.extract_strided_slice %310 {offsets = [0, 128], sizes = [8, 128], strides = [1, 1]} : vector<8x512xf32> to vector<8x128xf32>
    %cst_121 = arith.constant 5.000000e-01 : f32
    %320 = vector.broadcast %cst_121 : f32 to vector<8x128xf32>
    %321 = arith.mulf %320, %319 : vector<8x128xf32>
    %322 = math.tanh %321 : vector<8x128xf32>
    %cst_122 = arith.constant 1.000000e+00 : f32
    %323 = vector.broadcast %cst_122 : f32 to vector<8x128xf32>
    %324 = arith.addf %322, %323 : vector<8x128xf32>
    %cst_123 = arith.constant 5.000000e-01 : f32
    %325 = vector.broadcast %cst_123 : f32 to vector<8x128xf32>
    %326 = arith.mulf %325, %324 : vector<8x128xf32>
    %327 = vector.extract_strided_slice %310 {offsets = [0, 256], sizes = [8, 128], strides = [1, 1]} : vector<8x512xf32> to vector<8x128xf32>
    %328 = math.tanh %327 : vector<8x128xf32>
    %329 = vector.extract_strided_slice %310 {offsets = [0, 384], sizes = [8, 128], strides = [1, 1]} : vector<8x512xf32> to vector<8x128xf32>
    %cst_124 = arith.constant 5.000000e-01 : f32
    %330 = vector.broadcast %cst_124 : f32 to vector<8x128xf32>
    %331 = arith.mulf %330, %329 : vector<8x128xf32>
    %332 = math.tanh %331 : vector<8x128xf32>
    %cst_125 = arith.constant 1.000000e+00 : f32
    %333 = vector.broadcast %cst_125 : f32 to vector<8x128xf32>
    %334 = arith.addf %332, %333 : vector<8x128xf32>
    %cst_126 = arith.constant 5.000000e-01 : f32
    %335 = vector.broadcast %cst_126 : f32 to vector<8x128xf32>
    %336 = arith.mulf %335, %334 : vector<8x128xf32>
    %337 = arith.mulf %326, %266 : vector<8x128xf32>
    %338 = arith.mulf %318, %328 : vector<8x128xf32>
    %339 = arith.addf %337, %338 : vector<8x128xf32>
    %340 = math.tanh %339 : vector<8x128xf32>
    %341 = arith.mulf %336, %340 : vector<8x128xf32>
    %342 = arith.truncf %341 : vector<8x128xf32> to vector<8x128xbf16>
    %343 = arith.truncf %305 : vector<8x128xf32> to vector<8x128xbf16>
    %344 = tpu.concatenate %342, %343 in 1 : vector<8x128xbf16>, vector<8x128xbf16> -> vector<8x256xbf16>
    %c0_127 = arith.constant 0 : index
    %c0_128 = arith.constant 0 : index
    %345 = vector.load %arg4[%c0_127, %c0_128] : memref<256x512xbf16, #tpu.memory_space<vmem>>, vector<256x512xbf16>
    %cst_129 = arith.constant dense<0.000000e+00> : vector<8x512xf32>
    %346 = tpu.matmul %344, %345, %cst_129 {dimension_numbers = #tpu.dot_dimension_numbers<[1], [0], [0], [1], [0, 0, 1, 1], [], []>} : vector<8x256xbf16>, vector<256x512xbf16>, vector<8x512xf32> -> vector<8x512xf32>
    %347 = arith.addf %346, %9 : vector<8x512xf32>
    %348 = vector.extract_strided_slice %347 {offsets = [0, 0], sizes = [8, 128], strides = [1, 1]} : vector<8x512xf32> to vector<8x128xf32>
    %cst_130 = arith.constant 5.000000e-01 : f32
    %349 = vector.broadcast %cst_130 : f32 to vector<8x128xf32>
    %350 = arith.mulf %349, %348 : vector<8x128xf32>
    %351 = math.tanh %350 : vector<8x128xf32>
    %cst_131 = arith.constant 1.000000e+00 : f32
    %352 = vector.broadcast %cst_131 : f32 to vector<8x128xf32>
    %353 = arith.addf %351, %352 : vector<8x128xf32>
    %cst_132 = arith.constant 5.000000e-01 : f32
    %354 = vector.broadcast %cst_132 : f32 to vector<8x128xf32>
    %355 = arith.mulf %354, %353 : vector<8x128xf32>
    %356 = vector.extract_strided_slice %347 {offsets = [0, 128], sizes = [8, 128], strides = [1, 1]} : vector<8x512xf32> to vector<8x128xf32>
    %cst_133 = arith.constant 5.000000e-01 : f32
    %357 = vector.broadcast %cst_133 : f32 to vector<8x128xf32>
    %358 = arith.mulf %357, %356 : vector<8x128xf32>
    %359 = math.tanh %358 : vector<8x128xf32>
    %cst_134 = arith.constant 1.000000e+00 : f32
    %360 = vector.broadcast %cst_134 : f32 to vector<8x128xf32>
    %361 = arith.addf %359, %360 : vector<8x128xf32>
    %cst_135 = arith.constant 5.000000e-01 : f32
    %362 = vector.broadcast %cst_135 : f32 to vector<8x128xf32>
    %363 = arith.mulf %362, %361 : vector<8x128xf32>
    %364 = vector.extract_strided_slice %347 {offsets = [0, 256], sizes = [8, 128], strides = [1, 1]} : vector<8x512xf32> to vector<8x128xf32>
    %365 = math.tanh %364 : vector<8x128xf32>
    %366 = vector.extract_strided_slice %347 {offsets = [0, 384], sizes = [8, 128], strides = [1, 1]} : vector<8x512xf32> to vector<8x128xf32>
    %cst_136 = arith.constant 5.000000e-01 : f32
    %367 = vector.broadcast %cst_136 : f32 to vector<8x128xf32>
    %368 = arith.mulf %367, %366 : vector<8x128xf32>
    %369 = math.tanh %368 : vector<8x128xf32>
    %cst_137 = arith.constant 1.000000e+00 : f32
    %370 = vector.broadcast %cst_137 : f32 to vector<8x128xf32>
    %371 = arith.addf %369, %370 : vector<8x128xf32>
    %cst_138 = arith.constant 5.000000e-01 : f32
    %372 = vector.broadcast %cst_138 : f32 to vector<8x128xf32>
    %373 = arith.mulf %372, %371 : vector<8x128xf32>
    %374 = arith.mulf %363, %303 : vector<8x128xf32>
    %375 = arith.mulf %355, %365 : vector<8x128xf32>
    %376 = arith.addf %374, %375 : vector<8x128xf32>
    %377 = math.tanh %376 : vector<8x128xf32>
    %378 = arith.mulf %373, %377 : vector<8x128xf32>
    %c40 = arith.constant 40 : index
    %c0_139 = arith.constant 0 : index
    %379 = vector.load %arg9[%c40, %c0_139] : memref<64x512xf32, #tpu.memory_space<vmem>>, vector<8x512xf32>
    %380 = arith.truncf %341 : vector<8x128xf32> to vector<8x128xbf16>
    %c0_140 = arith.constant 0 : index
    %c0_141 = arith.constant 0 : index
    %381 = vector.load %arg2[%c0_140, %c0_141] : memref<128x512xbf16, #tpu.memory_space<vmem>>, vector<128x512xbf16>
    %cst_142 = arith.constant dense<0.000000e+00> : vector<8x512xf32>
    %382 = tpu.matmul %380, %381, %cst_142 {dimension_numbers = #tpu.dot_dimension_numbers<[1], [0], [0], [1], [0, 0, 1, 1], [], []>} : vector<8x128xbf16>, vector<128x512xbf16>, vector<8x512xf32> -> vector<8x512xf32>
    %383 = arith.addf %379, %382 : vector<8x512xf32>
    %384 = vector.extract_strided_slice %383 {offsets = [0, 0], sizes = [8, 128], strides = [1, 1]} : vector<8x512xf32> to vector<8x128xf32>
    %cst_143 = arith.constant 5.000000e-01 : f32
    %385 = vector.broadcast %cst_143 : f32 to vector<8x128xf32>
    %386 = arith.mulf %385, %384 : vector<8x128xf32>
    %387 = math.tanh %386 : vector<8x128xf32>
    %cst_144 = arith.constant 1.000000e+00 : f32
    %388 = vector.broadcast %cst_144 : f32 to vector<8x128xf32>
    %389 = arith.addf %387, %388 : vector<8x128xf32>
    %cst_145 = arith.constant 5.000000e-01 : f32
    %390 = vector.broadcast %cst_145 : f32 to vector<8x128xf32>
    %391 = arith.mulf %390, %389 : vector<8x128xf32>
    %392 = vector.extract_strided_slice %383 {offsets = [0, 128], sizes = [8, 128], strides = [1, 1]} : vector<8x512xf32> to vector<8x128xf32>
    %cst_146 = arith.constant 5.000000e-01 : f32
    %393 = vector.broadcast %cst_146 : f32 to vector<8x128xf32>
    %394 = arith.mulf %393, %392 : vector<8x128xf32>
    %395 = math.tanh %394 : vector<8x128xf32>
    %cst_147 = arith.constant 1.000000e+00 : f32
    %396 = vector.broadcast %cst_147 : f32 to vector<8x128xf32>
    %397 = arith.addf %395, %396 : vector<8x128xf32>
    %cst_148 = arith.constant 5.000000e-01 : f32
    %398 = vector.broadcast %cst_148 : f32 to vector<8x128xf32>
    %399 = arith.mulf %398, %397 : vector<8x128xf32>
    %400 = vector.extract_strided_slice %383 {offsets = [0, 256], sizes = [8, 128], strides = [1, 1]} : vector<8x512xf32> to vector<8x128xf32>
    %401 = math.tanh %400 : vector<8x128xf32>
    %402 = vector.extract_strided_slice %383 {offsets = [0, 384], sizes = [8, 128], strides = [1, 1]} : vector<8x512xf32> to vector<8x128xf32>
    %cst_149 = arith.constant 5.000000e-01 : f32
    %403 = vector.broadcast %cst_149 : f32 to vector<8x128xf32>
    %404 = arith.mulf %403, %402 : vector<8x128xf32>
    %405 = math.tanh %404 : vector<8x128xf32>
    %cst_150 = arith.constant 1.000000e+00 : f32
    %406 = vector.broadcast %cst_150 : f32 to vector<8x128xf32>
    %407 = arith.addf %405, %406 : vector<8x128xf32>
    %cst_151 = arith.constant 5.000000e-01 : f32
    %408 = vector.broadcast %cst_151 : f32 to vector<8x128xf32>
    %409 = arith.mulf %408, %407 : vector<8x128xf32>
    %410 = arith.mulf %399, %339 : vector<8x128xf32>
    %411 = arith.mulf %391, %401 : vector<8x128xf32>
    %412 = arith.addf %410, %411 : vector<8x128xf32>
    %413 = math.tanh %412 : vector<8x128xf32>
    %414 = arith.mulf %409, %413 : vector<8x128xf32>
    %415 = arith.truncf %414 : vector<8x128xf32> to vector<8x128xbf16>
    %416 = arith.truncf %378 : vector<8x128xf32> to vector<8x128xbf16>
    %417 = tpu.concatenate %415, %416 in 1 : vector<8x128xbf16>, vector<8x128xbf16> -> vector<8x256xbf16>
    %c0_152 = arith.constant 0 : index
    %c0_153 = arith.constant 0 : index
    %418 = vector.load %arg4[%c0_152, %c0_153] : memref<256x512xbf16, #tpu.memory_space<vmem>>, vector<256x512xbf16>
    %cst_154 = arith.constant dense<0.000000e+00> : vector<8x512xf32>
    %419 = tpu.matmul %417, %418, %cst_154 {dimension_numbers = #tpu.dot_dimension_numbers<[1], [0], [0], [1], [0, 0, 1, 1], [], []>} : vector<8x256xbf16>, vector<256x512xbf16>, vector<8x512xf32> -> vector<8x512xf32>
    %420 = arith.addf %419, %9 : vector<8x512xf32>
    %421 = vector.extract_strided_slice %420 {offsets = [0, 0], sizes = [8, 128], strides = [1, 1]} : vector<8x512xf32> to vector<8x128xf32>
    %cst_155 = arith.constant 5.000000e-01 : f32
    %422 = vector.broadcast %cst_155 : f32 to vector<8x128xf32>
    %423 = arith.mulf %422, %421 : vector<8x128xf32>
    %424 = math.tanh %423 : vector<8x128xf32>
    %cst_156 = arith.constant 1.000000e+00 : f32
    %425 = vector.broadcast %cst_156 : f32 to vector<8x128xf32>
    %426 = arith.addf %424, %425 : vector<8x128xf32>
    %cst_157 = arith.constant 5.000000e-01 : f32
    %427 = vector.broadcast %cst_157 : f32 to vector<8x128xf32>
    %428 = arith.mulf %427, %426 : vector<8x128xf32>
    %429 = vector.extract_strided_slice %420 {offsets = [0, 128], sizes = [8, 128], strides = [1, 1]} : vector<8x512xf32> to vector<8x128xf32>
    %cst_158 = arith.constant 5.000000e-01 : f32
    %430 = vector.broadcast %cst_158 : f32 to vector<8x128xf32>
    %431 = arith.mulf %430, %429 : vector<8x128xf32>
    %432 = math.tanh %431 : vector<8x128xf32>
    %cst_159 = arith.constant 1.000000e+00 : f32
    %433 = vector.broadcast %cst_159 : f32 to vector<8x128xf32>
    %434 = arith.addf %432, %433 : vector<8x128xf32>
    %cst_160 = arith.constant 5.000000e-01 : f32
    %435 = vector.broadcast %cst_160 : f32 to vector<8x128xf32>
    %436 = arith.mulf %435, %434 : vector<8x128xf32>
    %437 = vector.extract_strided_slice %420 {offsets = [0, 256], sizes = [8, 128], strides = [1, 1]} : vector<8x512xf32> to vector<8x128xf32>
    %438 = math.tanh %437 : vector<8x128xf32>
    %439 = vector.extract_strided_slice %420 {offsets = [0, 384], sizes = [8, 128], strides = [1, 1]} : vector<8x512xf32> to vector<8x128xf32>
    %cst_161 = arith.constant 5.000000e-01 : f32
    %440 = vector.broadcast %cst_161 : f32 to vector<8x128xf32>
    %441 = arith.mulf %440, %439 : vector<8x128xf32>
    %442 = math.tanh %441 : vector<8x128xf32>
    %cst_162 = arith.constant 1.000000e+00 : f32
    %443 = vector.broadcast %cst_162 : f32 to vector<8x128xf32>
    %444 = arith.addf %442, %443 : vector<8x128xf32>
    %cst_163 = arith.constant 5.000000e-01 : f32
    %445 = vector.broadcast %cst_163 : f32 to vector<8x128xf32>
    %446 = arith.mulf %445, %444 : vector<8x128xf32>
    %447 = arith.mulf %436, %376 : vector<8x128xf32>
    %448 = arith.mulf %428, %438 : vector<8x128xf32>
    %449 = arith.addf %447, %448 : vector<8x128xf32>
    %450 = math.tanh %449 : vector<8x128xf32>
    %451 = arith.mulf %446, %450 : vector<8x128xf32>
    %c48 = arith.constant 48 : index
    %c0_164 = arith.constant 0 : index
    %452 = vector.load %arg9[%c48, %c0_164] : memref<64x512xf32, #tpu.memory_space<vmem>>, vector<8x512xf32>
    %453 = arith.truncf %414 : vector<8x128xf32> to vector<8x128xbf16>
    %c0_165 = arith.constant 0 : index
    %c0_166 = arith.constant 0 : index
    %454 = vector.load %arg2[%c0_165, %c0_166] : memref<128x512xbf16, #tpu.memory_space<vmem>>, vector<128x512xbf16>
    %cst_167 = arith.constant dense<0.000000e+00> : vector<8x512xf32>
    %455 = tpu.matmul %453, %454, %cst_167 {dimension_numbers = #tpu.dot_dimension_numbers<[1], [0], [0], [1], [0, 0, 1, 1], [], []>} : vector<8x128xbf16>, vector<128x512xbf16>, vector<8x512xf32> -> vector<8x512xf32>
    %456 = arith.addf %452, %455 : vector<8x512xf32>
    %457 = vector.extract_strided_slice %456 {offsets = [0, 0], sizes = [8, 128], strides = [1, 1]} : vector<8x512xf32> to vector<8x128xf32>
    %cst_168 = arith.constant 5.000000e-01 : f32
    %458 = vector.broadcast %cst_168 : f32 to vector<8x128xf32>
    %459 = arith.mulf %458, %457 : vector<8x128xf32>
    %460 = math.tanh %459 : vector<8x128xf32>
    %cst_169 = arith.constant 1.000000e+00 : f32
    %461 = vector.broadcast %cst_169 : f32 to vector<8x128xf32>
    %462 = arith.addf %460, %461 : vector<8x128xf32>
    %cst_170 = arith.constant 5.000000e-01 : f32
    %463 = vector.broadcast %cst_170 : f32 to vector<8x128xf32>
    %464 = arith.mulf %463, %462 : vector<8x128xf32>
    %465 = vector.extract_strided_slice %456 {offsets = [0, 128], sizes = [8, 128], strides = [1, 1]} : vector<8x512xf32> to vector<8x128xf32>
    %cst_171 = arith.constant 5.000000e-01 : f32
    %466 = vector.broadcast %cst_171 : f32 to vector<8x128xf32>
    %467 = arith.mulf %466, %465 : vector<8x128xf32>
    %468 = math.tanh %467 : vector<8x128xf32>
    %cst_172 = arith.constant 1.000000e+00 : f32
    %469 = vector.broadcast %cst_172 : f32 to vector<8x128xf32>
    %470 = arith.addf %468, %469 : vector<8x128xf32>
    %cst_173 = arith.constant 5.000000e-01 : f32
    %471 = vector.broadcast %cst_173 : f32 to vector<8x128xf32>
    %472 = arith.mulf %471, %470 : vector<8x128xf32>
    %473 = vector.extract_strided_slice %456 {offsets = [0, 256], sizes = [8, 128], strides = [1, 1]} : vector<8x512xf32> to vector<8x128xf32>
    %474 = math.tanh %473 : vector<8x128xf32>
    %475 = vector.extract_strided_slice %456 {offsets = [0, 384], sizes = [8, 128], strides = [1, 1]} : vector<8x512xf32> to vector<8x128xf32>
    %cst_174 = arith.constant 5.000000e-01 : f32
    %476 = vector.broadcast %cst_174 : f32 to vector<8x128xf32>
    %477 = arith.mulf %476, %475 : vector<8x128xf32>
    %478 = math.tanh %477 : vector<8x128xf32>
    %cst_175 = arith.constant 1.000000e+00 : f32
    %479 = vector.broadcast %cst_175 : f32 to vector<8x128xf32>
    %480 = arith.addf %478, %479 : vector<8x128xf32>
    %cst_176 = arith.constant 5.000000e-01 : f32
    %481 = vector.broadcast %cst_176 : f32 to vector<8x128xf32>
    %482 = arith.mulf %481, %480 : vector<8x128xf32>
    %483 = arith.mulf %472, %412 : vector<8x128xf32>
    %484 = arith.mulf %464, %474 : vector<8x128xf32>
    %485 = arith.addf %483, %484 : vector<8x128xf32>
    %486 = math.tanh %485 : vector<8x128xf32>
    %487 = arith.mulf %482, %486 : vector<8x128xf32>
    %488 = arith.truncf %487 : vector<8x128xf32> to vector<8x128xbf16>
    %489 = arith.truncf %451 : vector<8x128xf32> to vector<8x128xbf16>
    %490 = tpu.concatenate %488, %489 in 1 : vector<8x128xbf16>, vector<8x128xbf16> -> vector<8x256xbf16>
    %c0_177 = arith.constant 0 : index
    %c0_178 = arith.constant 0 : index
    %491 = vector.load %arg4[%c0_177, %c0_178] : memref<256x512xbf16, #tpu.memory_space<vmem>>, vector<256x512xbf16>
    %cst_179 = arith.constant dense<0.000000e+00> : vector<8x512xf32>
    %492 = tpu.matmul %490, %491, %cst_179 {dimension_numbers = #tpu.dot_dimension_numbers<[1], [0], [0], [1], [0, 0, 1, 1], [], []>} : vector<8x256xbf16>, vector<256x512xbf16>, vector<8x512xf32> -> vector<8x512xf32>
    %493 = arith.addf %492, %9 : vector<8x512xf32>
    %494 = vector.extract_strided_slice %493 {offsets = [0, 0], sizes = [8, 128], strides = [1, 1]} : vector<8x512xf32> to vector<8x128xf32>
    %cst_180 = arith.constant 5.000000e-01 : f32
    %495 = vector.broadcast %cst_180 : f32 to vector<8x128xf32>
    %496 = arith.mulf %495, %494 : vector<8x128xf32>
    %497 = math.tanh %496 : vector<8x128xf32>
    %cst_181 = arith.constant 1.000000e+00 : f32
    %498 = vector.broadcast %cst_181 : f32 to vector<8x128xf32>
    %499 = arith.addf %497, %498 : vector<8x128xf32>
    %cst_182 = arith.constant 5.000000e-01 : f32
    %500 = vector.broadcast %cst_182 : f32 to vector<8x128xf32>
    %501 = arith.mulf %500, %499 : vector<8x128xf32>
    %502 = vector.extract_strided_slice %493 {offsets = [0, 128], sizes = [8, 128], strides = [1, 1]} : vector<8x512xf32> to vector<8x128xf32>
    %cst_183 = arith.constant 5.000000e-01 : f32
    %503 = vector.broadcast %cst_183 : f32 to vector<8x128xf32>
    %504 = arith.mulf %503, %502 : vector<8x128xf32>
    %505 = math.tanh %504 : vector<8x128xf32>
    %cst_184 = arith.constant 1.000000e+00 : f32
    %506 = vector.broadcast %cst_184 : f32 to vector<8x128xf32>
    %507 = arith.addf %505, %506 : vector<8x128xf32>
    %cst_185 = arith.constant 5.000000e-01 : f32
    %508 = vector.broadcast %cst_185 : f32 to vector<8x128xf32>
    %509 = arith.mulf %508, %507 : vector<8x128xf32>
    %510 = vector.extract_strided_slice %493 {offsets = [0, 256], sizes = [8, 128], strides = [1, 1]} : vector<8x512xf32> to vector<8x128xf32>
    %511 = math.tanh %510 : vector<8x128xf32>
    %512 = vector.extract_strided_slice %493 {offsets = [0, 384], sizes = [8, 128], strides = [1, 1]} : vector<8x512xf32> to vector<8x128xf32>
    %cst_186 = arith.constant 5.000000e-01 : f32
    %513 = vector.broadcast %cst_186 : f32 to vector<8x128xf32>
    %514 = arith.mulf %513, %512 : vector<8x128xf32>
    %515 = math.tanh %514 : vector<8x128xf32>
    %cst_187 = arith.constant 1.000000e+00 : f32
    %516 = vector.broadcast %cst_187 : f32 to vector<8x128xf32>
    %517 = arith.addf %515, %516 : vector<8x128xf32>
    %cst_188 = arith.constant 5.000000e-01 : f32
    %518 = vector.broadcast %cst_188 : f32 to vector<8x128xf32>
    %519 = arith.mulf %518, %517 : vector<8x128xf32>
    %520 = arith.mulf %509, %449 : vector<8x128xf32>
    %521 = arith.mulf %501, %511 : vector<8x128xf32>
    %522 = arith.addf %520, %521 : vector<8x128xf32>
    %523 = math.tanh %522 : vector<8x128xf32>
    %524 = arith.mulf %519, %523 : vector<8x128xf32>
    %c56 = arith.constant 56 : index
    %c0_189 = arith.constant 0 : index
    %525 = vector.load %arg9[%c56, %c0_189] : memref<64x512xf32, #tpu.memory_space<vmem>>, vector<8x512xf32>
    %526 = arith.truncf %487 : vector<8x128xf32> to vector<8x128xbf16>
    %c0_190 = arith.constant 0 : index
    %c0_191 = arith.constant 0 : index
    %527 = vector.load %arg2[%c0_190, %c0_191] : memref<128x512xbf16, #tpu.memory_space<vmem>>, vector<128x512xbf16>
    %cst_192 = arith.constant dense<0.000000e+00> : vector<8x512xf32>
    %528 = tpu.matmul %526, %527, %cst_192 {dimension_numbers = #tpu.dot_dimension_numbers<[1], [0], [0], [1], [0, 0, 1, 1], [], []>} : vector<8x128xbf16>, vector<128x512xbf16>, vector<8x512xf32> -> vector<8x512xf32>
    %529 = arith.addf %525, %528 : vector<8x512xf32>
    %530 = vector.extract_strided_slice %529 {offsets = [0, 0], sizes = [8, 128], strides = [1, 1]} : vector<8x512xf32> to vector<8x128xf32>
    %cst_193 = arith.constant 5.000000e-01 : f32
    %531 = vector.broadcast %cst_193 : f32 to vector<8x128xf32>
    %532 = arith.mulf %531, %530 : vector<8x128xf32>
    %533 = math.tanh %532 : vector<8x128xf32>
    %cst_194 = arith.constant 1.000000e+00 : f32
    %534 = vector.broadcast %cst_194 : f32 to vector<8x128xf32>
    %535 = arith.addf %533, %534 : vector<8x128xf32>
    %cst_195 = arith.constant 5.000000e-01 : f32
    %536 = vector.broadcast %cst_195 : f32 to vector<8x128xf32>
    %537 = arith.mulf %536, %535 : vector<8x128xf32>
    %538 = vector.extract_strided_slice %529 {offsets = [0, 128], sizes = [8, 128], strides = [1, 1]} : vector<8x512xf32> to vector<8x128xf32>
    %cst_196 = arith.constant 5.000000e-01 : f32
    %539 = vector.broadcast %cst_196 : f32 to vector<8x128xf32>
    %540 = arith.mulf %539, %538 : vector<8x128xf32>
    %541 = math.tanh %540 : vector<8x128xf32>
    %cst_197 = arith.constant 1.000000e+00 : f32
    %542 = vector.broadcast %cst_197 : f32 to vector<8x128xf32>
    %543 = arith.addf %541, %542 : vector<8x128xf32>
    %cst_198 = arith.constant 5.000000e-01 : f32
    %544 = vector.broadcast %cst_198 : f32 to vector<8x128xf32>
    %545 = arith.mulf %544, %543 : vector<8x128xf32>
    %546 = vector.extract_strided_slice %529 {offsets = [0, 256], sizes = [8, 128], strides = [1, 1]} : vector<8x512xf32> to vector<8x128xf32>
    %547 = math.tanh %546 : vector<8x128xf32>
    %548 = vector.extract_strided_slice %529 {offsets = [0, 384], sizes = [8, 128], strides = [1, 1]} : vector<8x512xf32> to vector<8x128xf32>
    %cst_199 = arith.constant 5.000000e-01 : f32
    %549 = vector.broadcast %cst_199 : f32 to vector<8x128xf32>
    %550 = arith.mulf %549, %548 : vector<8x128xf32>
    %551 = math.tanh %550 : vector<8x128xf32>
    %cst_200 = arith.constant 1.000000e+00 : f32
    %552 = vector.broadcast %cst_200 : f32 to vector<8x128xf32>
    %553 = arith.addf %551, %552 : vector<8x128xf32>
    %cst_201 = arith.constant 5.000000e-01 : f32
    %554 = vector.broadcast %cst_201 : f32 to vector<8x128xf32>
    %555 = arith.mulf %554, %553 : vector<8x128xf32>
    %556 = arith.mulf %545, %485 : vector<8x128xf32>
    %557 = arith.mulf %537, %547 : vector<8x128xf32>
    %558 = arith.addf %556, %557 : vector<8x128xf32>
    %559 = math.tanh %558 : vector<8x128xf32>
    %560 = arith.mulf %555, %559 : vector<8x128xf32>
    %561 = arith.truncf %560 : vector<8x128xf32> to vector<8x128xbf16>
    %562 = arith.truncf %524 : vector<8x128xf32> to vector<8x128xbf16>
    %563 = tpu.concatenate %561, %562 in 1 : vector<8x128xbf16>, vector<8x128xbf16> -> vector<8x256xbf16>
    %c0_202 = arith.constant 0 : index
    %c0_203 = arith.constant 0 : index
    %564 = vector.load %arg4[%c0_202, %c0_203] : memref<256x512xbf16, #tpu.memory_space<vmem>>, vector<256x512xbf16>
    %cst_204 = arith.constant dense<0.000000e+00> : vector<8x512xf32>
    %565 = tpu.matmul %563, %564, %cst_204 {dimension_numbers = #tpu.dot_dimension_numbers<[1], [0], [0], [1], [0, 0, 1, 1], [], []>} : vector<8x256xbf16>, vector<256x512xbf16>, vector<8x512xf32> -> vector<8x512xf32>
    %566 = arith.addf %565, %9 : vector<8x512xf32>
    %567 = vector.extract_strided_slice %566 {offsets = [0, 0], sizes = [8, 128], strides = [1, 1]} : vector<8x512xf32> to vector<8x128xf32>
    %cst_205 = arith.constant 5.000000e-01 : f32
    %568 = vector.broadcast %cst_205 : f32 to vector<8x128xf32>
    %569 = arith.mulf %568, %567 : vector<8x128xf32>
    %570 = math.tanh %569 : vector<8x128xf32>
    %cst_206 = arith.constant 1.000000e+00 : f32
    %571 = vector.broadcast %cst_206 : f32 to vector<8x128xf32>
    %572 = arith.addf %570, %571 : vector<8x128xf32>
    %cst_207 = arith.constant 5.000000e-01 : f32
    %573 = vector.broadcast %cst_207 : f32 to vector<8x128xf32>
    %574 = arith.mulf %573, %572 : vector<8x128xf32>
    %575 = vector.extract_strided_slice %566 {offsets = [0, 128], sizes = [8, 128], strides = [1, 1]} : vector<8x512xf32> to vector<8x128xf32>
    %cst_208 = arith.constant 5.000000e-01 : f32
    %576 = vector.broadcast %cst_208 : f32 to vector<8x128xf32>
    %577 = arith.mulf %576, %575 : vector<8x128xf32>
    %578 = math.tanh %577 : vector<8x128xf32>
    %cst_209 = arith.constant 1.000000e+00 : f32
    %579 = vector.broadcast %cst_209 : f32 to vector<8x128xf32>
    %580 = arith.addf %578, %579 : vector<8x128xf32>
    %cst_210 = arith.constant 5.000000e-01 : f32
    %581 = vector.broadcast %cst_210 : f32 to vector<8x128xf32>
    %582 = arith.mulf %581, %580 : vector<8x128xf32>
    %583 = vector.extract_strided_slice %566 {offsets = [0, 256], sizes = [8, 128], strides = [1, 1]} : vector<8x512xf32> to vector<8x128xf32>
    %584 = math.tanh %583 : vector<8x128xf32>
    %585 = vector.extract_strided_slice %566 {offsets = [0, 384], sizes = [8, 128], strides = [1, 1]} : vector<8x512xf32> to vector<8x128xf32>
    %cst_211 = arith.constant 5.000000e-01 : f32
    %586 = vector.broadcast %cst_211 : f32 to vector<8x128xf32>
    %587 = arith.mulf %586, %585 : vector<8x128xf32>
    %588 = math.tanh %587 : vector<8x128xf32>
    %cst_212 = arith.constant 1.000000e+00 : f32
    %589 = vector.broadcast %cst_212 : f32 to vector<8x128xf32>
    %590 = arith.addf %588, %589 : vector<8x128xf32>
    %cst_213 = arith.constant 5.000000e-01 : f32
    %591 = vector.broadcast %cst_213 : f32 to vector<8x128xf32>
    %592 = arith.mulf %591, %590 : vector<8x128xf32>
    %593 = arith.mulf %582, %522 : vector<8x128xf32>
    %594 = arith.mulf %574, %584 : vector<8x128xf32>
    %595 = arith.addf %593, %594 : vector<8x128xf32>
    %596 = math.tanh %595 : vector<8x128xf32>
    %597 = arith.mulf %592, %596 : vector<8x128xf32>
    %598 = arith.truncf %597 : vector<8x128xf32> to vector<8x128xbf16>
    %c0_214 = arith.constant 0 : index
    %c0_215 = arith.constant 0 : index
    %599 = vector.load %arg6[%c0_214, %c0_215] : memref<128x128xbf16, #tpu.memory_space<vmem>>, vector<128x128xbf16>
    %cst_216 = arith.constant dense<0.000000e+00> : vector<8x128xf32>
    %600 = tpu.matmul %598, %599, %cst_216 {dimension_numbers = #tpu.dot_dimension_numbers<[1], [0], [0], [1], [0, 0, 1, 1], [], []>} : vector<8x128xbf16>, vector<128x128xbf16>, vector<8x128xf32> -> vector<8x128xf32>
    %c0_217 = arith.constant 0 : index
    %c0_218 = arith.constant 0 : index
    %601 = vector.load %arg7[%c0_217, %c0_218] : memref<1x128xf32, #tpu.memory_space<vmem>>, vector<1x128xf32>
    %602 = vector.broadcast %601 : vector<1x128xf32> to vector<8x128xf32>
    %603 = arith.addf %600, %602 : vector<8x128xf32>
    %c0_219 = arith.constant 0 : index
    %c0_220 = arith.constant 0 : index
    %604 = vector.load %arg8[%c0_219, %c0_220] : memref<8x128xf32, #tpu.memory_space<vmem>>, vector<8x128xf32>
    tpu.vector_store %arg8[%c0_219, %c0_220], %603 {strides = array<i32>} : memref<8x128xf32, #tpu.memory_space<vmem>>, vector<8x128xf32>,
    return
  }
}

</mosaic_0001>

<bundles_post_ra>
// kernel: lstm_model_forward.1
= control target key start
LH: loop header
LB: loop body
LE: loop exit
PB: predicated region body
PF: predicated region fallthrough
CT: control target
= control target key end

     0   :  { %13 = vsyncpa [#allocation4], 0  ;;  %s5506_s0 = inlined_call_operand.vmem [shape: bf16[64,128], index: 0, kind: input, shape index: {}]   ;;  %s5507_s1 = inlined_call_operand.hbm [shape: bf16[128,512], index: 1, kind: input, shape index: {}]   ;;  %s5508_s2 = inlined_call_operand.hbm [shape: bf16[128,512], index: 2, kind: input, shape index: {}]   ;;  %s5509_s3 = inlined_call_operand.vmem [shape: f32[1,512], index: 3, kind: input, shape index: {}]   ;;  %s5510_s4 = inlined_call_operand.hbm [shape: bf16[256,512], index: 4, kind: input, shape index: {}]   ;;  %s5511_s5 = inlined_call_operand.vmem [shape: f32[1,512], index: 5, kind: input, shape index: {}]   ;;  %s5512_s6 = inlined_call_operand.vmem [shape: bf16[128,128], index: 6, kind: input, shape index: {}]   ;;  %s5513_s7 = inlined_call_operand.vmem [shape: f32[1,128], index: 7, kind: input, shape index: {}]   ;;  %s5514_s8 = inlined_call_operand.hbm [shape: f32[8,128], index: 8, kind: output, shape index: {}]  }
   0x1   :  { %14 = vsyncpa [#allocation7], 0 }
   0x2   :  { %15 = vsyncpa [#allocation5], 0  ;;  %s3731_s27 = smov [#allocation6]   ;;  %s3732_s29 = smov [#allocation3]  }
   0x3   :  { %s35_s28 = sshll.u32 %s3731_s27, 4  ;;  %s23_s30 = sshll.u32 %s3732_s29, 4  ;;  %s36_s28 = int_to_ptr.vmem [resolvable:$true] %s35_s28  ;;  %s3785_s30 = int_to_ptr.vmem [resolvable:$true] %s23_s30 }
   0x4   :  { %s3637_s11 = scalar_lea.hbm %s5508_s2, 4096 }
   0x5   :  { %p3638_p0 = scmp.ne.s32.totalorder %s5508_s2, %s3637_s11  ;;  %p3641_p1 = scmp.lt.u32.totalorder %s3637_s11, %s5508_s2 }
   0x7   :  { %p3643_p2 = pnand %p3641_p1, %p3638_p0 }
   0x9   :  { %3646 = shalt.err (!%p3643_p2)
}
   0xa   :  { %s3647_s16 = scalar_lea.vmem %s36_s28, 4096  ;;  %p3652_p4 = scmp.lt.s32.totalorder %s36_s28, %s36_s28 }
   0xb   :  { %p3648_p3 = scmp.ne.s32.totalorder %s36_s28, %s3647_s16  ;;  %p3653_p5 = scmp.lt.s32.totalorder %s3647_s16, %s3647_s16 }
   0xd   :  { %p3654_p6 = por %p3653_p5, %p3652_p4 }
   0xf   :  { %p3655_p7 = pnand %p3654_p6, %p3648_p3 }
  0x11   :  { %3658 = shalt.err (!%p3655_p7)
}
  0x12   :  { %s3733_s17 = smov 256   ;;  %s3734_s18 = smov 16  }
  0x13   :  { %41 = dma.hbm_to_vmem [thread:$0]  %s5508_s2, 4096, %s36_s28, [#allocation7], %s3733_s17, %s3733_s17, %s3734_s18  }
  0x14   :  { %s3659_s23 = scalar_lea.hbm %s5507_s1, 4096 }
  0x15   :  { %p3660_p8 = scmp.ne.s32.totalorder %s5507_s1, %s3659_s23  ;;  %p3663_p9 = scmp.lt.u32.totalorder %s3659_s23, %s5507_s1 }
  0x17   :  { %p3665_p10 = pnand %p3663_p9, %p3660_p8 }
  0x19   :  { %3668 = shalt.err (!%p3665_p10)
}
  0x1a   :  { %s3669_s29 = scalar_lea.vmem %s3785_s30, 4096  ;;  %p3674_p12 = scmp.lt.s32.totalorder %s3785_s30, %s3785_s30 }
  0x1b   :  { %p3670_p11 = scmp.ne.s32.totalorder %s3785_s30, %s3669_s29  ;;  %p3675_p13 = scmp.lt.s32.totalorder %s3669_s29, %s3669_s29 }
  0x1d   :  { %p3676_p0 = por %p3675_p13, %p3674_p12 }
  0x1f   :  { %p3677_p1 = pnand %p3676_p0, %p3670_p11 }
  0x21   :  { %3680 = shalt.err (!%p3677_p1)
}
  0x22   :  { %29 = dma.hbm_to_vmem [thread:$0]  %s5507_s1, 4096, %s3785_s30, [#allocation4], %s3733_s17, %s3733_s17, %s3734_s18  }
  0x23   :  { %s3735_s9 = smov [#allocation8]   ;;  %s3681_s13 = scalar_lea.hbm %s5510_s4, 8192 }
  0x24   :  { %s49_s10 = sshll.u32 %s3735_s9, 4  ;;  %p3682_p2 = scmp.ne.s32.totalorder %s5510_s4, %s3681_s13  ;;  %s50_s10 = int_to_ptr.vmem [resolvable:$true] %s49_s10 }
  0x25   :  { %p3685_p3 = scmp.lt.u32.totalorder %s3681_s13, %s5510_s4 }
  0x27   :  { %p3687_p4 = pnand %p3685_p3, %p3682_p2 }
  0x29   :  { %3690 = shalt.err (!%p3687_p4)
}
  0x2a   :  { %s3691_s20 = scalar_lea.vmem %s50_s10, 8192  ;;  %p3696_p6 = scmp.lt.s32.totalorder %s50_s10, %s50_s10 }
  0x2b   :  { %p3692_p5 = scmp.ne.s32.totalorder %s50_s10, %s3691_s20  ;;  %p3697_p7 = scmp.lt.s32.totalorder %s3691_s20, %s3691_s20 }
  0x2d   :  { %p3698_p8 = por %p3697_p7, %p3696_p6 }
  0x2f   :  { %p3699_p9 = pnand %p3698_p8, %p3692_p5 }
  0x31   :  { %3702 = shalt.err (!%p3699_p9)
}
  0x32   :  { %55 = dma.hbm_to_vmem [thread:$0]  %s5510_s4, 8192, %s50_s10, [#allocation7], %s3733_s17, %s3733_s17, %s3734_s18  }
  0x33   :  { %3725 = dma.done.wait [#allocation4], 4096  }
  0x34   :  { %3726 = vsyncadd [#allocation4], 4294963200 }
  0x35   :  { %3727 = dma.done.wait [#allocation7], 12288  }
  0x36   :  { %3728 = vsyncadd [#allocation7], 4294955008  ;;  %v5515_v0 = vmov 0   ;;  %v3081_v1 = vld [vmem:[#allocation3 + $0x4] ss:$16 sps:$4 sm:$0xff]   ;;  %v3142_v44 = vld [vmem:[%s5506_s0 + $0x8] sm:$0xff]  }
  0x37   :  { %350 = vmatprep.mubr.bf16.mxu0 %v5515_v0  ;;  %423 = vmatprep.mubr.bf16.mxu1 %v5515_v0  ;;  %v3083_v2 = vld [vmem:[#allocation3 + $0xc] ss:$16 sps:$4 sm:$0xff]   ;;  %v3085_v3 = vld [vmem:[#allocation3] ss:$16 sps:$4 sm:$0xff]   ;;  %v3086_v4 = vld [vmem:[#allocation3 + $0x8] ss:$16 sps:$4 sm:$0xff]  }
  0x38   :  { %318 = vmatprep.subr.bf16.mxu0 %v3081_v1  ;;  %391 = vmatprep.subr.bf16.mxu1 %v3083_v2  ;;  %v3087_v5 = vld [vmem:[#allocation3 + $0x24] ss:$16 sps:$4 sm:$0xff]   ;;  %v3089_v6 = vld [vmem:[#allocation3 + $0x2c] ss:$16 sps:$4 sm:$0xff]   ;;  %v3091_v7 = vld [vmem:[#allocation3 + $0x20] ss:$16 sps:$4 sm:$0xff]  }
  0x39   :  { %319 = vmatpush1.bf16.msra.mxu0 %v3085_v3  ;;  %392 = vmatpush1.bf16.msra.mxu1 %v3086_v4  ;;  %v3092_v8 = vld [vmem:[#allocation3 + $0x28] ss:$16 sps:$4 sm:$0xff]   ;;  %v3093_v9 = vld [vmem:[#allocation3 + $0x44] ss:$16 sps:$4 sm:$0xff]   ;;  %v3095_v10 = vld [vmem:[#allocation3 + $0x4c] ss:$16 sps:$4 sm:$0xff]  }
  0x3a   :  { %320 = vmatprep.subr.bf16.mxu0 %v3087_v5  ;;  %393 = vmatprep.subr.bf16.mxu1 %v3089_v6  ;;  %v3097_v11 = vld [vmem:[#allocation3 + $0x40] ss:$16 sps:$4 sm:$0xff]   ;;  %v3098_v12 = vld [vmem:[#allocation3 + $0x48] ss:$16 sps:$4 sm:$0xff]   ;;  %v3099_v13 = vld [vmem:[#allocation3 + $0x64] ss:$16 sps:$4 sm:$0xff]  }
  0x3b   :  { %v3101_v14 = vld [vmem:[#allocation3 + $0x6c] ss:$16 sps:$4 sm:$0xff]   ;;  %v3103_v15 = vld [vmem:[#allocation3 + $0x60] ss:$16 sps:$4 sm:$0xff]   ;;  %v3104_v16 = vld [vmem:[#allocation3 + $0x68] ss:$16 sps:$4 sm:$0xff]  }
  0x3c   :  { %v3105_v17 = vld [vmem:[#allocation3 + $0x84] ss:$16 sps:$4 sm:$0xff]   ;;  %v3107_v18 = vld [vmem:[#allocation3 + $0x8c] ss:$16 sps:$4 sm:$0xff]   ;;  %v3109_v19 = vld [vmem:[#allocation3 + $0x80] ss:$16 sps:$4 sm:$0xff]  }
  0x3d   :  { %321 = vmatpush1.bf16.msra.mxu0 %v3091_v7  ;;  %394 = vmatpush1.bf16.msra.mxu1 %v3092_v8  ;;  %v3110_v20 = vld [vmem:[#allocation3 + $0x88] ss:$16 sps:$4 sm:$0xff]   ;;  %v3111_v21 = vld [vmem:[#allocation3 + $0xa4] ss:$16 sps:$4 sm:$0xff]   ;;  %v3113_v22 = vld [vmem:[#allocation3 + $0xac] ss:$16 sps:$4 sm:$0xff]  }
  0x3e   :  { %322 = vmatprep.subr.bf16.mxu0 %v3093_v9  ;;  %395 = vmatprep.subr.bf16.mxu1 %v3095_v10  ;;  %v3115_v23 = vld [vmem:[#allocation3 + $0xa0] ss:$16 sps:$4 sm:$0xff]   ;;  %v3116_v24 = vld [vmem:[#allocation3 + $0xa8] ss:$16 sps:$4 sm:$0xff]   ;;  %v3117_v25 = vld [vmem:[#allocation3 + $0xc4] ss:$16 sps:$4 sm:$0xff]  }
  0x3f   :  { %v3119_v26 = vld [vmem:[#allocation3 + $0xcc] ss:$16 sps:$4 sm:$0xff]   ;;  %v3121_v27 = vld [vmem:[#allocation3 + $0xc0] ss:$16 sps:$4 sm:$0xff]   ;;  %v3122_v28 = vld [vmem:[#allocation3 + $0xc8] ss:$16 sps:$4 sm:$0xff]  }
  0x40   :  { %v3123_v29 = vld [vmem:[#allocation3 + $0xe4] ss:$16 sps:$4 sm:$0xff]   ;;  %v3125_v30 = vld [vmem:[#allocation3 + $0xec] ss:$16 sps:$4 sm:$0xff]   ;;  %v3127_v31 = vld [vmem:[#allocation3 + $0xe0] ss:$16 sps:$4 sm:$0xff]  }
  0x41   :  { %323 = vmatpush1.bf16.msra.mxu0 %v3097_v11  ;;  %396 = vmatpush1.bf16.msra.mxu1 %v3098_v12  ;;  %v3128_v32 = vld [vmem:[#allocation3 + $0xe8] ss:$16 sps:$4 sm:$0xff]   ;;  %v3839_v33 = vld [vmem:[#allocation6 + $0x4] ss:$16 sps:$4 sm:$0xff]   ;;  %v3841_v34 = vld [vmem:[#allocation6 + $0xc] ss:$16 sps:$4 sm:$0xff]  }
  0x42   :  { %324 = vmatprep.subr.bf16.mxu0 %v3099_v13  ;;  %397 = vmatprep.subr.bf16.mxu1 %v3101_v14  ;;  %v3129_v35 = vld [vmem:[%s5506_s0] sm:$0xff]   ;;  %v3848_v37 = vld [vmem:[#allocation6 + $0x8] ss:$16 sps:$4 sm:$0xff]   ;;  %v3854_v39 = vld [vmem:[#allocation6 + $0x2c] ss:$16 sps:$4 sm:$0xff]   ;;  %vm3738_vm0 = vmmov 0  }
  0x43   :  { %v3846_v36 = vld [vmem:[#allocation6] ss:$16 sps:$4 sm:$0xff]   ;;  %v3852_v38 = vld [vmem:[#allocation6 + $0x24] ss:$16 sps:$4 sm:$0xff]   ;;  %v3860_v41 = vld [vmem:[#allocation6 + $0x28] ss:$16 sps:$4 sm:$0xff]  }
  0x44   :  { %v3856_v40 = vld [vmem:[#allocation6 + $0x20] ss:$16 sps:$4 sm:$0xff]   ;;  %v3864_v42 = vld [vmem:[#allocation6 + $0x44] ss:$16 sps:$4 sm:$0xff]   ;;  %v3866_v43 = vld [vmem:[#allocation6 + $0x4c] ss:$16 sps:$4 sm:$0xff]  }
  0x45   :  { %325 = vmatpush1.bf16.msra.mxu0 %v3103_v15  ;;  %398 = vmatpush1.bf16.msra.mxu1 %v3104_v16  ;;  %v3873_v45 = vld [vmem:[#allocation6 + $0x40] ss:$16 sps:$4 sm:$0xff]   ;;  %v3875_v46 = vld [vmem:[#allocation6 + $0x48] ss:$16 sps:$4 sm:$0xff]   ;;  %v3879_v47 = vld [vmem:[#allocation6 + $0x64] ss:$16 sps:$4 sm:$0xff]  }
  0x46   :  { %326 = vmatprep.subr.bf16.mxu0 %v3105_v17  ;;  %399 = vmatprep.subr.bf16.mxu1 %v3107_v18  ;;  %v3883_v48 = vld [vmem:[#allocation6 + $0x6c] ss:$16 sps:$4 sm:$0xff]   ;;  %v3885_v49 = vld [vmem:[#allocation6 + $0x60] ss:$16 sps:$4 sm:$0xff]   ;;  %v3887_v50 = vld [vmem:[#allocation6 + $0x68] ss:$16 sps:$4 sm:$0xff]  }
  0x47   :  { %v3891_v51 = vld [vmem:[#allocation6 + $0x84] ss:$16 sps:$4 sm:$0xff]   ;;  %v3895_v52 = vld [vmem:[#allocation6 + $0x8c] ss:$16 sps:$4 sm:$0xff]   ;;  %v3902_v54 = vld [vmem:[#allocation6 + $0x80] ss:$16 sps:$4 sm:$0xff]  }
  0x48   :  { %v3155_v53 = vld [vmem:[%s5506_s0 + $0x10] sm:$0xff]   ;;  %v3904_v55 = vld [vmem:[#allocation6 + $0x88] ss:$16 sps:$4 sm:$0xff]   ;;  %v3908_v57 = vld [vmem:[#allocation6 + $0xac] ss:$16 sps:$4 sm:$0xff]   ;;  %s3739_s17 = smov [#allocation9]  }
  0x49   :  { %327 = vmatpush1.bf16.msra.mxu0 %v3109_v19  ;;  %400 = vmatpush1.bf16.msra.mxu1 %v3110_v20  ;;  %v3906_v56 = vld [vmem:[#allocation6 + $0xa4] ss:$16 sps:$4 sm:$0xff]   ;;  %v3914_v58 = vld [vmem:[#allocation6 + $0xa0] ss:$16 sps:$4 sm:$0xff]   ;;  %v3916_v59 = vld [vmem:[#allocation6 + $0xa8] ss:$16 sps:$4 sm:$0xff]  }
  0x4a   :  { %328 = vmatprep.subr.bf16.mxu0 %v3111_v21  ;;  %401 = vmatprep.subr.bf16.mxu1 %v3113_v22  ;;  %v3918_v60 = vld [vmem:[#allocation6 + $0xc4] ss:$16 sps:$4 sm:$0xff]   ;;  %v3920_v61 = vld [vmem:[#allocation6 + $0xcc] ss:$16 sps:$4 sm:$0xff]   ;;  %v3931_v63 = vld [vmem:[#allocation6 + $0xc0] ss:$16 sps:$4 sm:$0xff]  }
  0x4b   :  { %v3168_v62 = vld [vmem:[%s5506_s0 + $0x18] sm:$0xff]   ;;  %v3935_v2 = vld [vmem:[#allocation6 + $0xe4] ss:$16 sps:$4 sm:$0xff]   ;;  %v3943_v4 = vld [vmem:[#allocation6 + $0xe0] ss:$16 sps:$4 sm:$0xff]   ;;  %s2892_s18 = sshll.u32 %s3739_s17, 4  ;;  %s2893_s18 = int_to_ptr.vmem [resolvable:$true] %s2892_s18 }
  0x4c   :  { %v3933_v1 = vld [vmem:[#allocation6 + $0xc8] ss:$16 sps:$4 sm:$0xff]   ;;  %v3937_v3 = vld [vmem:[#allocation6 + $0xec] ss:$16 sps:$4 sm:$0xff]   ;;  %v3959_v6 = vld [vmem:[#allocation8 + $0x4] ss:$16 sps:$4 sm:$0xff]   ;;  %p3708_p11 = scmp.lt.s32.totalorder %s2893_s18, %s2893_s18 }
  0x4d   :  { %329 = vmatpush1.bf16.msra.mxu0 %v3115_v23  ;;  %402 = vmatpush1.bf16.msra.mxu1 %v3116_v24  ;;  %v3945_v5 = vld [vmem:[#allocation6 + $0xe8] ss:$16 sps:$4 sm:$0xff]   ;;  %v3961_v7 = vld [vmem:[#allocation8 + $0xc] ss:$16 sps:$4 sm:$0xff]   ;;  %v3965_v8 = vld [vmem:[#allocation8] ss:$16 sps:$4 sm:$0xff]  }
  0x4e   :  { %330 = vmatprep.subr.bf16.mxu0 %v3117_v25  ;;  %403 = vmatprep.subr.bf16.mxu1 %v3119_v26  ;;  %v3967_v9 = vld [vmem:[#allocation8 + $0x8] ss:$16 sps:$4 sm:$0xff]   ;;  %v3971_v10 = vld [vmem:[#allocation8 + $0x24] ss:$16 sps:$4 sm:$0xff]   ;;  %v3973_v11 = vld [vmem:[#allocation8 + $0x2c] ss:$16 sps:$4 sm:$0xff]  }
  0x4f   :  { %v3975_v12 = vld [vmem:[#allocation8 + $0x20] ss:$16 sps:$4 sm:$0xff]   ;;  %v3977_v13 = vld [vmem:[#allocation8 + $0x28] ss:$16 sps:$4 sm:$0xff]   ;;  %v3983_v14 = vld [vmem:[#allocation8 + $0x44] ss:$16 sps:$4 sm:$0xff]  }
  0x50   :  { %v3985_v15 = vld [vmem:[#allocation8 + $0x4c] ss:$16 sps:$4 sm:$0xff]   ;;  %v3989_v16 = vld [vmem:[#allocation8 + $0x40] ss:$16 sps:$4 sm:$0xff]   ;;  %v3991_v17 = vld [vmem:[#allocation8 + $0x48] ss:$16 sps:$4 sm:$0xff]  }
  0x51   :  { %331 = vmatpush1.bf16.msra.mxu0 %v3121_v27  ;;  %404 = vmatpush1.bf16.msra.mxu1 %v3122_v28  ;;  %5859 = vst [vmem:[#allocation13_spill] sm:$0xff] %v3985_v15  ;;  %5860 = vst [vmem:[#allocation14_spill] sm:$0xff] %v3989_v16  ;;  %v3995_v18 = vld [vmem:[#allocation8 + $0x64] ss:$16 sps:$4 sm:$0xff]   ;;  %v3997_v19 = vld [vmem:[#allocation8 + $0x6c] ss:$16 sps:$4 sm:$0xff]  }
  0x52   :  { %332 = vmatprep.subr.bf16.mxu0 %v3123_v29  ;;  %405 = vmatprep.subr.bf16.mxu1 %v3125_v30  ;;  %5861 = vst [vmem:[#allocation15_spill] sm:$0xff] %v3991_v17  ;;  %5862 = vst [vmem:[#allocation16_spill] sm:$0xff] %v3995_v18  ;;  %v3999_v20 = vld [vmem:[#allocation8 + $0x60] ss:$16 sps:$4 sm:$0xff]   ;;  %v4001_v21 = vld [vmem:[#allocation8 + $0x68] ss:$16 sps:$4 sm:$0xff]  }
  0x53   :  { %5863 = vst [vmem:[#allocation17_spill] sm:$0xff] %v3997_v19  ;;  %5864 = vst [vmem:[#allocation18_spill] sm:$0xff] %v3999_v20  ;;  %v4007_v22 = vld [vmem:[#allocation8 + $0x84] ss:$16 sps:$4 sm:$0xff]   ;;  %v4009_v23 = vld [vmem:[#allocation8 + $0x8c] ss:$16 sps:$4 sm:$0xff]  }
  0x54   :  { %5865 = vst [vmem:[#allocation19_spill] sm:$0xff] %v4001_v21  ;;  %5866 = vst [vmem:[#allocation20_spill] sm:$0xff] %v4007_v22  ;;  %v4013_v24 = vld [vmem:[#allocation8 + $0x80] ss:$16 sps:$4 sm:$0xff]   ;;  %v4015_v25 = vld [vmem:[#allocation8 + $0x88] ss:$16 sps:$4 sm:$0xff]  }
  0x55   :  { %333 = vmatpush1.bf16.msra.mxu0 %v3127_v31  ;;  %406 = vmatpush1.bf16.msra.mxu1 %v3128_v32  ;;  %5867 = vst [vmem:[#allocation21_spill] sm:$0xff] %v4009_v23  ;;  %5868 = vst [vmem:[#allocation22_spill] sm:$0xff] %v4013_v24  ;;  %v4019_v26 = vld [vmem:[#allocation8 + $0xa4] ss:$16 sps:$4 sm:$0xff]   ;;  %v4021_v27 = vld [vmem:[#allocation8 + $0xac] ss:$16 sps:$4 sm:$0xff]  }
  0x56   :  { %714 = vmatprep.subr.bf16.mxu0 %v3839_v33  ;;  %755 = vmatprep.subr.bf16.mxu1 %v3841_v34  ;;  %5869 = vst [vmem:[#allocation23_spill] sm:$0xff] %v4015_v25  ;;  %5870 = vst [vmem:[#allocation24_spill] sm:$0xff] %v4019_v26  ;;  %v4023_v28 = vld [vmem:[#allocation8 + $0xa0] ss:$16 sps:$4 sm:$0xff]   ;;  %v4025_v29 = vld [vmem:[#allocation8 + $0xa8] ss:$16 sps:$4 sm:$0xff]  }
  0x57   :  { %5871 = vst [vmem:[#allocation25_spill] sm:$0xff] %v4021_v27  ;;  %5872 = vst [vmem:[#allocation26_spill] sm:$0xff] %v4023_v28  ;;  %v4031_v30 = vld [vmem:[#allocation8 + $0xc4] ss:$16 sps:$4 sm:$0xff]   ;;  %v4033_v31 = vld [vmem:[#allocation8 + $0xcc] ss:$16 sps:$4 sm:$0xff]  }
  0x58   :  { %351 = vmatmul.mubr.bf16.vlgmr.msra.gmra.mrb[0].mxu0 %v3129_v35  ;;  %424 = vmatmul.mubr.bf16.vlgmr.msra.gmra.mrb[0].mxu1 %v3129_v35  ;;  %5873 = vst [vmem:[#allocation27_spill] sm:$0xff] %v4025_v29  ;;  %5874 = vst [vmem:[#allocation28_spill] sm:$0xff] %v4031_v30  ;;  %v4037_v32 = vld [vmem:[#allocation8 + $0xc0] ss:$16 sps:$4 sm:$0xff]   ;;  %v4039_v35 = vld [vmem:[#allocation8 + $0xc8] ss:$16 sps:$4 sm:$0xff]  }
  0x59   :  { %715 = vmatpush1.bf16.msra.mxu0 %v3846_v36  ;;  %756 = vmatpush1.bf16.msra.mxu1 %v3848_v37  ;;  %5875 = vst [vmem:[#allocation29_spill] sm:$0xff] %v4033_v31  ;;  %5876 = vst [vmem:[#allocation30_spill] sm:$0xff] %v4037_v32  ;;  %s3703_s21 = scalar_lea.vmem %s2893_s18, 128 }
  0x5a   :  { %716 = vmatprep.subr.bf16.mxu0 %v3852_v38  ;;  %757 = vmatprep.subr.bf16.mxu1 %v3854_v39  ;;  %5877 = vst [vmem:[#allocation31_spill] sm:$0xff] %v4039_v35  ;;  %p3704_p10 = scmp.ne.s32.totalorder %s2893_s18, %s3703_s21  ;;  %p3709_p12 = scmp.lt.s32.totalorder %s3703_s21, %s3703_s21 }
  0x5b   :  { %360 = vmatprep.mubr.bf16.mxu0 %v5515_v0  ;;  %433 = vmatprep.mubr.bf16.mxu1 %v5515_v0 }
  0x5c   :  { %p3710_p13 = por %p3709_p12, %p3708_p11 }
  0x5d   :  { %717 = vmatpush1.bf16.msra.mxu0 %v3856_v40  ;;  %758 = vmatpush1.bf16.msra.mxu1 %v3860_v41 }
  0x5e   :  { %718 = vmatprep.subr.bf16.mxu0 %v3864_v42  ;;  %759 = vmatprep.subr.bf16.mxu1 %v3866_v43  ;;  %p3711_p0 = pnand %p3710_p13, %p3704_p10 }
  0x60   :  { %361 = vmatmul.mubr.bf16.gmra.mrb[4].mxu0 %v3142_v44  ;;  %434 = vmatmul.mubr.bf16.gmra.mrb[4].mxu1 %v3142_v44  ;;  %v4043_v44 = vld [vmem:[#allocation8 + $0xe4] ss:$16 sps:$4 sm:$0xff]  }
  0x61   :  { %719 = vmatpush1.bf16.msra.mxu0 %v3873_v45  ;;  %760 = vmatpush1.bf16.msra.mxu1 %v3875_v46  ;;  %5878 = vst [vmem:[#allocation32_spill] sm:$0xff] %v4043_v44 }
  0x62   :  { %720 = vmatprep.subr.bf16.mxu0 %v3879_v47  ;;  %761 = vmatprep.subr.bf16.mxu1 %v3883_v48 }
  0x63   :  { %370 = vmatprep.mubr.bf16.mxu0 %v5515_v0  ;;  %443 = vmatprep.mubr.bf16.mxu1 %v5515_v0 }
  0x65   :  { %721 = vmatpush1.bf16.msra.mxu0 %v3885_v49  ;;  %762 = vmatpush1.bf16.msra.mxu1 %v3887_v50 }
  0x66   :  { %722 = vmatprep.subr.bf16.mxu0 %v3891_v51  ;;  %763 = vmatprep.subr.bf16.mxu1 %v3895_v52 }
  0x68   :  { %371 = vmatmul.mubr.bf16.gmra.mrb[8].mxu0 %v3155_v53  ;;  %444 = vmatmul.mubr.bf16.gmra.mrb[8].mxu1 %v3155_v53  ;;  %v4045_v53 = vld [vmem:[#allocation8 + $0xec] ss:$16 sps:$4 sm:$0xff]  }
  0x69   :  { %723 = vmatpush1.bf16.msra.mxu0 %v3902_v54  ;;  %764 = vmatpush1.bf16.msra.mxu1 %v3904_v55  ;;  %5879 = vst [vmem:[#allocation33_spill] sm:$0xff] %v4045_v53 }
  0x6a   :  { %724 = vmatprep.subr.bf16.mxu0 %v3906_v56  ;;  %765 = vmatprep.subr.bf16.mxu1 %v3908_v57 }
  0x6b   :  { %380 = vmatprep.mubr.bf16.mxu0 %v5515_v0  ;;  %453 = vmatprep.mubr.bf16.mxu1 %v5515_v0 }
  0x6d   :  { %725 = vmatpush1.bf16.msra.mxu0 %v3914_v58  ;;  %766 = vmatpush1.bf16.msra.mxu1 %v3916_v59 }
  0x6e   :  { %726 = vmatprep.subr.bf16.mxu0 %v3918_v60  ;;  %767 = vmatprep.subr.bf16.mxu1 %v3920_v61 }
  0x70   :  { %381 = vmatmul.mubr.bf16.gmra.mrb[12].mxu0 %v3168_v62  ;;  %454 = vmatmul.mubr.bf16.gmra.mrb[12].mxu1 %v3168_v62  ;;  %v4047_v62 = vld [vmem:[#allocation8 + $0xe0] ss:$16 sps:$4 sm:$0xff]  }
  0x71   :  { %727 = vmatpush1.bf16.msra.mxu0 %v3931_v63  ;;  %768 = vmatpush1.bf16.msra.mxu1 %v3933_v1  ;;  %5880 = vst [vmem:[#allocation34_spill] sm:$0xff] %v4047_v62 }
  0x72   :  { %728 = vmatprep.subr.bf16.mxu0 %v3935_v2  ;;  %769 = vmatprep.subr.bf16.mxu1 %v3937_v3 }
  0x73   :  { %746 = vmatprep.mubr.bf16.mxu0 %v5515_v0  ;;  %787 = vmatprep.mubr.bf16.mxu1 %v5515_v0 }
  0x75   :  { %729 = vmatpush1.bf16.msra.mxu0 %v3943_v4  ;;  %770 = vmatpush1.bf16.msra.mxu1 %v3945_v5 }
  0x76   :  { %1203 = vmatprep.subr.bf16.mxu0 %v3959_v6  ;;  %1244 = vmatprep.subr.bf16.mxu1 %v3961_v7 }
  0x78   :  { %747 = vmatmul.mubr.bf16.vlgmr.msra.gmra.mrb[16].mxu0 %v5515_v0  ;;  %788 = vmatmul.mubr.bf16.vlgmr.msra.gmra.mrb[16].mxu1 %v5515_v0 }
  0x79   :  { %1235 = vmatprep.mubr.bf16.mxu0 %v5515_v0  ;;  %1276 = vmatprep.mubr.bf16.mxu1 %v5515_v0  ;;  %v4049_v0 = vld [vmem:[#allocation8 + $0xe8] ss:$16 sps:$4 sm:$0xff]  }
  0x7a   :  { %1204 = vmatpush1.bf16.msra.mxu0 %v3965_v8  ;;  %1245 = vmatpush1.bf16.msra.mxu1 %v3967_v9  ;;  %5881 = vst [vmem:[#allocation35_spill] sm:$0xff] %v4049_v0 }
  0x7b   :  { %1205 = vmatprep.subr.bf16.mxu0 %v3971_v10  ;;  %1246 = vmatprep.subr.bf16.mxu1 %v3973_v11 }
  0x7e   :  { %1206 = vmatpush1.bf16.msra.mxu0 %v3975_v12  ;;  %1247 = vmatpush1.bf16.msra.mxu1 %v3977_v13 }
  0x7f   :  { %1207 = vmatprep.subr.bf16.mxu0 %v3983_v14  ;;  %1248 = vmatprep.subr.bf16.mxu1 %v3985_v15 }
  0x82   :  { %1208 = vmatpush1.bf16.msra.mxu0 %v3989_v16  ;;  %1249 = vmatpush1.bf16.msra.mxu1 %v3991_v17 }
  0x83   :  { %1209 = vmatprep.subr.bf16.mxu0 %v3995_v18  ;;  %1250 = vmatprep.subr.bf16.mxu1 %v3997_v19 }
  0x86   :  { %1210 = vmatpush1.bf16.msra.mxu0 %v3999_v20  ;;  %1251 = vmatpush1.bf16.msra.mxu1 %v4001_v21 }
  0x87   :  { %1211 = vmatprep.subr.bf16.mxu0 %v4007_v22  ;;  %1252 = vmatprep.subr.bf16.mxu1 %v4009_v23 }
  0x8a   :  { %1212 = vmatpush1.bf16.msra.mxu0 %v4013_v24  ;;  %1253 = vmatpush1.bf16.msra.mxu1 %v4015_v25 }
  0x8b   :  { %1213 = vmatprep.subr.bf16.mxu0 %v4019_v26  ;;  %1254 = vmatprep.subr.bf16.mxu1 %v4021_v27 }
  0x8e   :  { %1214 = vmatpush1.bf16.msra.mxu0 %v4023_v28  ;;  %1255 = vmatpush1.bf16.msra.mxu1 %v4025_v29 }
  0x8f   :  { %1215 = vmatprep.subr.bf16.mxu0 %v4031_v30  ;;  %1256 = vmatprep.subr.bf16.mxu1 %v4033_v31  ;;  %v4055_v31 = vld [vmem:[#allocation8 + $0x104] ss:$16 sps:$4 sm:$0xff]   ;;  %v4061_v30 = vld [vmem:[#allocation8 + $0x108] ss:$16 sps:$4 sm:$0xff]  }
  0x90   :  { %5882 = vst [vmem:[#allocation36_spill] sm:$0xff] %v4055_v31  ;;  %5885 = vst [vmem:[#allocation39_spill] sm:$0xff] %v4061_v30 }
  0x92   :  { %1216 = vmatpush1.bf16.msra.mxu0 %v4037_v32  ;;  %1257 = vmatpush1.bf16.msra.mxu1 %v4039_v35  ;;  %v4057_v32 = vld [vmem:[#allocation8 + $0x10c] ss:$16 sps:$4 sm:$0xff]   ;;  %v4059_v35 = vld [vmem:[#allocation8 + $0x100] ss:$16 sps:$4 sm:$0xff]  }
  0x93   :  { %1217 = vmatprep.subr.bf16.mxu0 %v4043_v44  ;;  %1258 = vmatprep.subr.bf16.mxu1 %v4045_v53  ;;  %5883 = vst [vmem:[#allocation37_spill] sm:$0xff] %v4057_v32  ;;  %5884 = vst [vmem:[#allocation38_spill] sm:$0xff] %v4059_v35  ;;  %v4067_v53 = vld [vmem:[#allocation8 + $0x124] ss:$16 sps:$4 sm:$0xff]   ;;  %v4073_v44 = vld [vmem:[#allocation8 + $0x128] ss:$16 sps:$4 sm:$0xff]  }
  0x94   :  { %5886 = vst [vmem:[#allocation40_spill] sm:$0xff] %v4067_v53  ;;  %5889 = vst [vmem:[#allocation43_spill] sm:$0xff] %v4073_v44 }
  0x96   :  { %1218 = vmatpush1.bf16.msra.mxu0 %v4047_v62  ;;  %1259 = vmatpush1.bf16.msra.mxu1 %v4049_v0  ;;  %v4069_v62 = vld [vmem:[#allocation8 + $0x12c] ss:$16 sps:$4 sm:$0xff]   ;;  %v4071_v0 = vld [vmem:[#allocation8 + $0x120] ss:$16 sps:$4 sm:$0xff]  }
  0x97   :  { %1219 = vmatprep.subr.bf16.mxu0 %v4055_v31  ;;  %1260 = vmatprep.subr.bf16.mxu1 %v4057_v32  ;;  %5887 = vst [vmem:[#allocation41_spill] sm:$0xff] %v4069_v62  ;;  %5888 = vst [vmem:[#allocation42_spill] sm:$0xff] %v4071_v0  ;;  %v4079_v32 = vld [vmem:[#allocation8 + $0x144] ss:$16 sps:$4 sm:$0xff]   ;;  %v4085_v31 = vld [vmem:[#allocation8 + $0x148] ss:$16 sps:$4 sm:$0xff]  }
  0x98   :  { %5890 = vst [vmem:[#allocation44_spill] sm:$0xff] %v4079_v32  ;;  %5893 = vst [vmem:[#allocation47_spill] sm:$0xff] %v4085_v31 }
  0x9a   :  { %1220 = vmatpush1.bf16.msra.mxu0 %v4059_v35  ;;  %1261 = vmatpush1.bf16.msra.mxu1 %v4061_v30  ;;  %v4081_v35 = vld [vmem:[#allocation8 + $0x14c] ss:$16 sps:$4 sm:$0xff]   ;;  %v4083_v30 = vld [vmem:[#allocation8 + $0x140] ss:$16 sps:$4 sm:$0xff]  }
  0x9b   :  { %1221 = vmatprep.subr.bf16.mxu0 %v4067_v53  ;;  %1262 = vmatprep.subr.bf16.mxu1 %v4069_v62  ;;  %5891 = vst [vmem:[#allocation45_spill] sm:$0xff] %v4081_v35  ;;  %5892 = vst [vmem:[#allocation46_spill] sm:$0xff] %v4083_v30  ;;  %v4091_v62 = vld [vmem:[#allocation8 + $0x164] ss:$16 sps:$4 sm:$0xff]   ;;  %v4097_v53 = vld [vmem:[#allocation8 + $0x168] ss:$16 sps:$4 sm:$0xff]  }
  0x9c   :  { %5894 = vst [vmem:[#allocation48_spill] sm:$0xff] %v4091_v62  ;;  %5897 = vst [vmem:[#allocation51_spill] sm:$0xff] %v4097_v53 }
  0x9e   :  { %1222 = vmatpush1.bf16.msra.mxu0 %v4071_v0  ;;  %1263 = vmatpush1.bf16.msra.mxu1 %v4073_v44  ;;  %v4093_v0 = vld [vmem:[#allocation8 + $0x16c] ss:$16 sps:$4 sm:$0xff]   ;;  %v4095_v44 = vld [vmem:[#allocation8 + $0x160] ss:$16 sps:$4 sm:$0xff]  }
  0x9f   :  { %1223 = vmatprep.subr.bf16.mxu0 %v4079_v32  ;;  %1264 = vmatprep.subr.bf16.mxu1 %v4081_v35  ;;  %5895 = vst [vmem:[#allocation49_spill] sm:$0xff] %v4093_v0  ;;  %5896 = vst [vmem:[#allocation50_spill] sm:$0xff] %v4095_v44  ;;  %v4103_v35 = vld [vmem:[#allocation8 + $0x184] ss:$16 sps:$4 sm:$0xff]   ;;  %v4109_v32 = vld [vmem:[#allocation8 + $0x188] ss:$16 sps:$4 sm:$0xff]  }
  0xa0   :  { %5898 = vst [vmem:[#allocation52_spill] sm:$0xff] %v4103_v35  ;;  %5901 = vst [vmem:[#allocation55_spill] sm:$0xff] %v4109_v32 }
  0xa2   :  { %1224 = vmatpush1.bf16.msra.mxu0 %v4083_v30  ;;  %1265 = vmatpush1.bf16.msra.mxu1 %v4085_v31  ;;  %v4105_v30 = vld [vmem:[#allocation8 + $0x18c] ss:$16 sps:$4 sm:$0xff]   ;;  %v4107_v31 = vld [vmem:[#allocation8 + $0x180] ss:$16 sps:$4 sm:$0xff]  }
  0xa3   :  { %1225 = vmatprep.subr.bf16.mxu0 %v4091_v62  ;;  %1266 = vmatprep.subr.bf16.mxu1 %v4093_v0  ;;  %5899 = vst [vmem:[#allocation53_spill] sm:$0xff] %v4105_v30  ;;  %5900 = vst [vmem:[#allocation54_spill] sm:$0xff] %v4107_v31  ;;  %v4115_v0 = vld [vmem:[#allocation8 + $0x1a4] ss:$16 sps:$4 sm:$0xff]   ;;  %v4121_v62 = vld [vmem:[#allocation8 + $0x1a8] ss:$16 sps:$4 sm:$0xff]  }
  0xa4   :  { %5902 = vst [vmem:[#allocation56_spill] sm:$0xff] %v4115_v0  ;;  %5905 = vst [vmem:[#allocation59_spill] sm:$0xff] %v4121_v62 }
  0xa6   :  { %1226 = vmatpush1.bf16.msra.mxu0 %v4095_v44  ;;  %1267 = vmatpush1.bf16.msra.mxu1 %v4097_v53  ;;  %v4117_v44 = vld [vmem:[#allocation8 + $0x1ac] ss:$16 sps:$4 sm:$0xff]   ;;  %v4119_v53 = vld [vmem:[#allocation8 + $0x1a0] ss:$16 sps:$4 sm:$0xff]  }
  0xa7   :  { %1227 = vmatprep.subr.bf16.mxu0 %v4103_v35  ;;  %1268 = vmatprep.subr.bf16.mxu1 %v4105_v30  ;;  %5903 = vst [vmem:[#allocation57_spill] sm:$0xff] %v4117_v44  ;;  %5904 = vst [vmem:[#allocation58_spill] sm:$0xff] %v4119_v53  ;;  %v4127_v30 = vld [vmem:[#allocation8 + $0x1c4] ss:$16 sps:$4 sm:$0xff]   ;;  %v4133_v35 = vld [vmem:[#allocation8 + $0x1c8] ss:$16 sps:$4 sm:$0xff]  }
  0xa8   :  { %5906 = vst [vmem:[#allocation60_spill] sm:$0xff] %v4127_v30  ;;  %5909 = vst [vmem:[#allocation63_spill] sm:$0xff] %v4133_v35 }
  0xaa   :  { %1228 = vmatpush1.bf16.msra.mxu0 %v4107_v31  ;;  %1269 = vmatpush1.bf16.msra.mxu1 %v4109_v32  ;;  %v4129_v31 = vld [vmem:[#allocation8 + $0x1cc] ss:$16 sps:$4 sm:$0xff]   ;;  %v4131_v32 = vld [vmem:[#allocation8 + $0x1c0] ss:$16 sps:$4 sm:$0xff]  }
  0xab   :  { %1229 = vmatprep.subr.bf16.mxu0 %v4115_v0  ;;  %1270 = vmatprep.subr.bf16.mxu1 %v4117_v44  ;;  %5907 = vst [vmem:[#allocation61_spill] sm:$0xff] %v4129_v31  ;;  %5908 = vst [vmem:[#allocation62_spill] sm:$0xff] %v4131_v32  ;;  %v4139_v44 = vld [vmem:[#allocation8 + $0x1e4] ss:$16 sps:$4 sm:$0xff]   ;;  %v4145_v0 = vld [vmem:[#allocation8 + $0x1e8] ss:$16 sps:$4 sm:$0xff]  }
  0xac   :  { %5910 = vst [vmem:[#allocation64_spill] sm:$0xff] %v4139_v44  ;;  %5913 = vst [vmem:[#allocation67_spill] sm:$0xff] %v4145_v0 }
  0xae   :  { %1230 = vmatpush1.bf16.msra.mxu0 %v4119_v53  ;;  %1271 = vmatpush1.bf16.msra.mxu1 %v4121_v62  ;;  %v4141_v53 = vld [vmem:[#allocation8 + $0x1ec] ss:$16 sps:$4 sm:$0xff]   ;;  %v4143_v62 = vld [vmem:[#allocation8 + $0x1e0] ss:$16 sps:$4 sm:$0xff]  }
  0xaf   :  { %1231 = vmatprep.subr.bf16.mxu0 %v4127_v30  ;;  %1272 = vmatprep.subr.bf16.mxu1 %v4129_v31  ;;  %5911 = vst [vmem:[#allocation65_spill] sm:$0xff] %v4141_v53  ;;  %5912 = vst [vmem:[#allocation66_spill] sm:$0xff] %v4143_v62 }
  0xb2   :  { %1232 = vmatpush1.bf16.msra.mxu0 %v4131_v32  ;;  %1273 = vmatpush1.bf16.msra.mxu1 %v4133_v35  ;;  %v114_v35 = vlaneseq }
  0xb3   :  { %1233 = vmatprep.subr.bf16.mxu0 %v4139_v44  ;;  %1274 = vmatprep.subr.bf16.mxu1 %v4141_v53  ;;  %v112_v53 = vld [vmem:[%s5509_s3] sm:$0xf] }
  0xb4   :  { %v4153_v32 = vshrl.u32 %v114_v35, 7 }
  0xb6   :  { %1234 = vmatpush1.bf16.msra.mxu0 %v4143_v62  ;;  %1275 = vmatpush1.bf16.msra.mxu1 %v4145_v0  ;;  %5914 = vst [vmem:[#allocation68_spill] sm:$0xff] %v4153_v32  ;;  %v5609_v31 = vsub.s32 2, %v4153_v32  ;;  %v5618_v30 = vsub.s32 3, %v4153_v32  ;;  %v5619_v29 = vsub.s32 0, %v4153_v32  ;;  %v5626_v62 = vsub.s32 1, %v4153_v32 }
  0xb7   :  { %1307 = vmatprep.subr.bf16.mxu0 %v3839_v33  ;;  %1348 = vmatprep.subr.bf16.mxu1 %v3841_v34 }
  0xb8   :  { %v4164_v33 = vrot.slane %v112_v53, %v5609_v31  ;;  %v4172_v0 = vrot.slane %v112_v53, %v5618_v30  ;;  %v117_v44 = vrot.slane %v112_v53, %v5619_v29  ;;  %v121_v26 = vrot.slane %v112_v53, %v5626_v62 }
 0x12b   :  { %v4166_v34 = vpop.f32.mrb[0].mxu0  ;;  %v4168_v35 = vpop.f32.mrb[0].mxu1 }
 0x12c   :  { %v354_v28 = vpop.f32.mrb[1].mxu0  ;;  %v427_v27 = vpop.f32.mrb[1].mxu1 }
 0x12d   :  { %v356_v25 = vpop.f32.mrb[2].mxu0  ;;  %v429_v24 = vpop.f32.mrb[2].mxu1 }
 0x12e   :  { %v4178_v31 = vadd.f32 %v356_v25, %v117_v44  ;;  %v358_v23 = vpop.f32.mrb[3].mxu0  ;;  %v4181_v22 = vadd.f32 %v429_v24, %v4164_v33  ;;  %v431_v21 = vpop.f32.mrb[3].mxu1 }
 0x12f   :  { %v4183_v20 = vadd.f32 %v358_v23, %v121_v26  ;;  %v4186_v30 = vadd.f32 %v431_v21, %v4172_v0 }
 0x130   :  { %5915 = vst [vmem:[#allocation69_spill] sm:$0xff] %v4178_v31  ;;  %5916 = vst [vmem:[#allocation70_spill] sm:$0xff] %v4181_v22 }
 0x131   :  { %5917 = vst [vmem:[#allocation71_spill] sm:$0xff] %v4183_v20  ;;  %5918 = vst [vmem:[#allocation72_spill] sm:$0xff] %v4186_v30 }
 0x133   :  { %v362_v29 = vpop.f32.mrb[4].mxu0  ;;  %v435_v19 = vpop.f32.mrb[4].mxu1 }
 0x134   :  { %v4188_v18 = vadd.f32 %v362_v29, %v117_v44  ;;  %v364_v32 = vpop.f32.mrb[5].mxu0  ;;  %v4191_v53 = vadd.f32 %v435_v19, %v4164_v33  ;;  %v437_v25 = vpop.f32.mrb[5].mxu1 }
 0x135   :  { %v4193_v62 = vadd.f32 %v364_v32, %v121_v26  ;;  %v366_v31 = vpop.f32.mrb[6].mxu0  ;;  %v4196_v24 = vadd.f32 %v437_v25, %v4172_v0  ;;  %v439_v23 = vpop.f32.mrb[6].mxu1 }
 0x136   :  { %5919 = vst [vmem:[#allocation73_spill] sm:$0xff] %v4188_v18  ;;  %5920 = vst [vmem:[#allocation74_spill] sm:$0xff] %v4191_v53  ;;  %v4198_v20 = vadd.f32 %v366_v31, %v117_v44  ;;  %v368_v21 = vpop.f32.mrb[7].mxu0  ;;  %v4201_v30 = vadd.f32 %v439_v23, %v4164_v33  ;;  %v441_v29 = vpop.f32.mrb[7].mxu1 }
 0x137   :  { %5921 = vst [vmem:[#allocation75_spill] sm:$0xff] %v4193_v62  ;;  %5922 = vst [vmem:[#allocation76_spill] sm:$0xff] %v4196_v24  ;;  %v4203_v18 = vadd.f32 %v368_v21, %v121_v26  ;;  %v4206_v19 = vadd.f32 %v441_v29, %v4172_v0 }
 0x138   :  { %5923 = vst [vmem:[#allocation77_spill] sm:$0xff] %v4198_v20  ;;  %5924 = vst [vmem:[#allocation78_spill] sm:$0xff] %v4201_v30 }
 0x139   :  { %5925 = vst [vmem:[#allocation79_spill] sm:$0xff] %v4203_v18  ;;  %5926 = vst [vmem:[#allocation80_spill] sm:$0xff] %v4206_v19 }
 0x13b   :  { %v372_v53 = vpop.f32.mrb[8].mxu0  ;;  %v445_v32 = vpop.f32.mrb[8].mxu1 }
 0x13c   :  { %v4208_v62 = vadd.f32 %v372_v53, %v117_v44  ;;  %v374_v22 = vpop.f32.mrb[9].mxu0  ;;  %v4211_v25 = vadd.f32 %v445_v32, %v4164_v33  ;;  %v447_v31 = vpop.f32.mrb[9].mxu1 }
 0x13d   :  { %v4213_v20 = vadd.f32 %v374_v22, %v121_v26  ;;  %v376_v24 = vpop.f32.mrb[10].mxu0  ;;  %v4216_v23 = vadd.f32 %v447_v31, %v4172_v0  ;;  %v449_v21 = vpop.f32.mrb[10].mxu1 }
 0x13e   :  { %5927 = vst [vmem:[#allocation81_spill] sm:$0xff] %v4208_v62  ;;  %5928 = vst [vmem:[#allocation82_spill] sm:$0xff] %v4211_v25  ;;  %v4218_v18 = vadd.f32 %v376_v24, %v117_v44  ;;  %v378_v29 = vpop.f32.mrb[11].mxu0  ;;  %v4221_v19 = vadd.f32 %v449_v21, %v4164_v33  ;;  %v451_v53 = vpop.f32.mrb[11].mxu1 }
 0x13f   :  { %5929 = vst [vmem:[#allocation83_spill] sm:$0xff] %v4213_v20  ;;  %5930 = vst [vmem:[#allocation84_spill] sm:$0xff] %v4216_v23  ;;  %v4223_v62 = vadd.f32 %v378_v29, %v121_v26  ;;  %v4226_v32 = vadd.f32 %v451_v53, %v4172_v0 }
 0x140   :  { %5931 = vst [vmem:[#allocation85_spill] sm:$0xff] %v4218_v18  ;;  %5932 = vst [vmem:[#allocation86_spill] sm:$0xff] %v4221_v19 }
 0x141   :  { %5933 = vst [vmem:[#allocation87_spill] sm:$0xff] %v4223_v62  ;;  %5934 = vst [vmem:[#allocation88_spill] sm:$0xff] %v4226_v32 }
 0x143   :  { %v382_v25 = vpop.f32.mrb[12].mxu0  ;;  %v455_v22 = vpop.f32.mrb[12].mxu1 }
 0x144   :  { %v4228_v20 = vadd.f32 %v382_v25, %v117_v44  ;;  %v384_v30 = vpop.f32.mrb[13].mxu0  ;;  %v4231_v31 = vadd.f32 %v455_v22, %v4164_v33  ;;  %v457_v24 = vpop.f32.mrb[13].mxu1 }
 0x145   :  { %v4233_v18 = vadd.f32 %v384_v30, %v121_v26  ;;  %v386_v23 = vpop.f32.mrb[14].mxu0  ;;  %v4236_v21 = vadd.f32 %v457_v24, %v4172_v0  ;;  %v459_v29 = vpop.f32.mrb[14].mxu1  ;;  %v353_v30 = vadd.f32 %v4166_v34, %v117_v44  ;;  %v355_v24 = vadd.f32 %v354_v28, %v121_v26 }
 0x146   :  { %5935 = vst [vmem:[#allocation89_spill] sm:$0xff] %v4228_v20  ;;  %5936 = vst [vmem:[#allocation90_spill] sm:$0xff] %v4231_v31  ;;  %v4238_v62 = vadd.f32 %v386_v23, %v117_v44  ;;  %v388_v53 = vpop.f32.mrb[15].mxu0  ;;  %v4241_v32 = vadd.f32 %v459_v29, %v4164_v33  ;;  %v461_v25 = vpop.f32.mrb[15].mxu1 }
 0x147   :  { %5937 = vst [vmem:[#allocation91_spill] sm:$0xff] %v4233_v18  ;;  %5938 = vst [vmem:[#allocation92_spill] sm:$0xff] %v4236_v21  ;;  %v4243_v20 = vadd.f32 %v388_v53, %v121_v26  ;;  %v4246_v22 = vadd.f32 %v461_v25, %v4172_v0  ;;  %v426_v18 = vadd.f32 %v4168_v35, %v4164_v33 }
 0x148   :  { %5939 = vst [vmem:[#allocation93_spill] sm:$0xff] %v4238_v62  ;;  %5940 = vst [vmem:[#allocation94_spill] sm:$0xff] %v4241_v32  ;;  %v428_v21 = vadd.f32 %v427_v27, %v4172_v0 }
 0x149   :  { %5941 = vst [vmem:[#allocation95_spill] sm:$0xff] %v4243_v20  ;;  %5942 = vst [vmem:[#allocation96_spill] sm:$0xff] %v4246_v22 }
 0x14b   :  { %v748_v23 = vpop.f32.mrb[16].mxu0  ;;  %v789_v62 = vpop.f32.mrb[16].mxu1 }
 0x14c   :  { %v796_v31 = vadd.f32 %v748_v23, %v353_v30  ;;  %v798_v19 = vadd.f32 %v789_v62, %v426_v18  ;;  %v750_v29 = vpop.f32.mrb[17].mxu0  ;;  %v791_v32 = vpop.f32.mrb[17].mxu1  ;;  %v5974_v30 = vld [vmem:[#allocation43_spill] sm:$0xff]  ;;  %v5976_v23 = vld [vmem:[#allocation45_spill] sm:$0xff] }
 0x14d   :  { %v797_v17 = vadd.f32 %v750_v29, %v355_v24  ;;  %v799_v53 = vadd.f32 %v791_v32, %v428_v21  ;;  %v752_v20 = vpop.f32.mrb[18].mxu0  ;;  %v793_v16 = vpop.f32.mrb[18].mxu1  ;;  %v5975_v24 = vld [vmem:[#allocation44_spill] sm:$0xff]  ;;  %v5977_v29 = vld [vmem:[#allocation46_spill] sm:$0xff] }
 0x14e   :  { %v800_v25 = vmul.f32 0.5, %v796_v31  ;;  %v753_v22 = vpop.f32.mrb[19].mxu0  ;;  %v794_v15 = vpop.f32.mrb[19].mxu1 }
 0x14f   :  { %v804_v44 = vmul.f32 0.5, %v797_v17  ;;  %v809_v26 = vmul.f32 0.5, %v799_v53  ;;  %v5943_v22 = vmov 0   ;;  %v5978_v53 = vld [vmem:[#allocation47_spill] sm:$0xff] }
 0x150   :  { %3285 = vtanh.f32 %v800_v25  ;;  %v5979_v25 = vld [vmem:[#allocation48_spill] sm:$0xff] }
 0x151   :  { %3287 = vtanh.f32 %v804_v44  ;;  %v5980_v44 = vld [vmem:[#allocation49_spill] sm:$0xff] }
 0x152   :  { %3289 = vtanh.f32 %v798_v19 }
 0x153   :  { %3291 = vtanh.f32 %v809_v26  ;;  %v5981_v26 = vld [vmem:[#allocation50_spill] sm:$0xff] }
 0x15a   :  { %v3286_v28 = vpop.eup %3285 }
 0x15b   :  { %v3288_v0 = vpop.eup %3287  ;;  %v802_v27 = vadd.f32 1.0, %v3286_v28  ;;  %v5982_v28 = vld [vmem:[#allocation51_spill] sm:$0xff] }
 0x15c   :  { %v806_v33 = vadd.f32 1.0, %v3288_v0  ;;  %v3290_v62 = vpop.eup %3289  ;;  %v5983_v0 = vld [vmem:[#allocation52_spill] sm:$0xff] }
 0x15d   :  { %v803_v18 = vmul.f32 0.5, %v802_v27  ;;  %v3292_v15 = vpop.eup %3291  ;;  %v5984_v27 = vld [vmem:[#allocation53_spill] sm:$0xff] }
 0x15e   :  { %v807_v34 = vmul.f32 0.5, %v806_v33  ;;  %v811_v16 = vadd.f32 1.0, %v3292_v15  ;;  %v5985_v33 = vld [vmem:[#allocation54_spill] sm:$0xff]  ;;  %v5991_v15 = vld [vmem:[#allocation60_spill] sm:$0xff] }
 0x15f   :  { %v814_v35 = vmul.f32 %v3290_v62, %v803_v18  ;;  %v5986_v18 = vld [vmem:[#allocation55_spill] sm:$0xff]  ;;  %v5987_v62 = vld [vmem:[#allocation56_spill] sm:$0xff] }
 0x160   :  { %v813_v32 = vmul.f32 0.0, %v807_v34  ;;  %v812_v17 = vmul.f32 0.5, %v811_v16  ;;  %v5988_v34 = vld [vmem:[#allocation57_spill] sm:$0xff] }
 0x161   :  { %v5992_v16 = vld [vmem:[#allocation61_spill] sm:$0xff] }
 0x162   :  { %v4252_v20 = vadd.f32 %v814_v35, %v813_v32  ;;  %v5989_v35 = vld [vmem:[#allocation58_spill] sm:$0xff]  ;;  %v5990_v32 = vld [vmem:[#allocation59_spill] sm:$0xff] }
 0x164   :  { %3293 = vtanh.f32 %v4252_v20 }
 0x16e   :  { %v3294_v31 = vpop.eup %3293 }
 0x16f   :  { %v817_v19 = vmul.f32 %v3294_v31, %v812_v17  ;;  %v5993_v17 = vld [vmem:[#allocation62_spill] sm:$0xff]  ;;  %v5994_v31 = vld [vmem:[#allocation63_spill] sm:$0xff] }
 0x171   :  { %v818_v21 = vpack.c.bf16 %v817_v19, %v817_v19  ;;  %v5995_v19 = vld [vmem:[#allocation64_spill] sm:$0xff] }
 0x173   :  { %1236 = vmatmul.mubr.bf16.vlgmr.msra.gmra.mrb[20].mxu0 %v818_v21  ;;  %1277 = vmatmul.mubr.bf16.vlgmr.msra.gmra.mrb[20].mxu1 %v818_v21 }
 0x174   :  { %1308 = vmatpush1.bf16.msra.mxu0 %v3846_v36  ;;  %1349 = vmatpush1.bf16.msra.mxu1 %v3848_v37  ;;  %v5944_v36 = vld [vmem:[#allocation13_spill] sm:$0xff]  ;;  %v5945_v37 = vld [vmem:[#allocation14_spill] sm:$0xff] }
 0x175   :  { %1309 = vmatprep.subr.bf16.mxu0 %v3852_v38  ;;  %1350 = vmatprep.subr.bf16.mxu1 %v3854_v39  ;;  %v5946_v38 = vld [vmem:[#allocation15_spill] sm:$0xff]  ;;  %v5947_v39 = vld [vmem:[#allocation16_spill] sm:$0xff] }
 0x176   :  { %1339 = vmatprep.mubr.bf16.mxu0 %v5943_v22  ;;  %1380 = vmatprep.mubr.bf16.mxu1 %v5943_v22 }
 0x178   :  { %1310 = vmatpush1.bf16.msra.mxu0 %v3856_v40  ;;  %1351 = vmatpush1.bf16.msra.mxu1 %v3860_v41  ;;  %v5948_v40 = vld [vmem:[#allocation17_spill] sm:$0xff]  ;;  %v5949_v41 = vld [vmem:[#allocation18_spill] sm:$0xff] }
 0x179   :  { %1311 = vmatprep.subr.bf16.mxu0 %v3864_v42  ;;  %1352 = vmatprep.subr.bf16.mxu1 %v3866_v43  ;;  %v5950_v42 = vld [vmem:[#allocation19_spill] sm:$0xff]  ;;  %v5951_v43 = vld [vmem:[#allocation20_spill] sm:$0xff] }
 0x17c   :  { %1312 = vmatpush1.bf16.msra.mxu0 %v3873_v45  ;;  %1353 = vmatpush1.bf16.msra.mxu1 %v3875_v46  ;;  %v5952_v45 = vld [vmem:[#allocation21_spill] sm:$0xff]  ;;  %v5953_v46 = vld [vmem:[#allocation22_spill] sm:$0xff] }
 0x17d   :  { %1313 = vmatprep.subr.bf16.mxu0 %v3879_v47  ;;  %1354 = vmatprep.subr.bf16.mxu1 %v3883_v48  ;;  %v5954_v47 = vld [vmem:[#allocation23_spill] sm:$0xff]  ;;  %v5955_v48 = vld [vmem:[#allocation24_spill] sm:$0xff] }
 0x180   :  { %1314 = vmatpush1.bf16.msra.mxu0 %v3885_v49  ;;  %1355 = vmatpush1.bf16.msra.mxu1 %v3887_v50  ;;  %v5956_v49 = vld [vmem:[#allocation25_spill] sm:$0xff]  ;;  %v5957_v50 = vld [vmem:[#allocation26_spill] sm:$0xff] }
 0x181   :  { %1315 = vmatprep.subr.bf16.mxu0 %v3891_v51  ;;  %1356 = vmatprep.subr.bf16.mxu1 %v3895_v52  ;;  %v5958_v51 = vld [vmem:[#allocation27_spill] sm:$0xff]  ;;  %v5959_v52 = vld [vmem:[#allocation28_spill] sm:$0xff] }
 0x184   :  { %1316 = vmatpush1.bf16.msra.mxu0 %v3902_v54  ;;  %1357 = vmatpush1.bf16.msra.mxu1 %v3904_v55  ;;  %v5960_v54 = vld [vmem:[#allocation29_spill] sm:$0xff]  ;;  %v5961_v55 = vld [vmem:[#allocation30_spill] sm:$0xff] }
 0x185   :  { %1317 = vmatprep.subr.bf16.mxu0 %v3906_v56  ;;  %1358 = vmatprep.subr.bf16.mxu1 %v3908_v57  ;;  %v5962_v56 = vld [vmem:[#allocation31_spill] sm:$0xff]  ;;  %v5963_v57 = vld [vmem:[#allocation32_spill] sm:$0xff] }
 0x188   :  { %1318 = vmatpush1.bf16.msra.mxu0 %v3914_v58  ;;  %1359 = vmatpush1.bf16.msra.mxu1 %v3916_v59  ;;  %v5964_v58 = vld [vmem:[#allocation33_spill] sm:$0xff]  ;;  %v5965_v59 = vld [vmem:[#allocation34_spill] sm:$0xff] }
 0x189   :  { %1319 = vmatprep.subr.bf16.mxu0 %v3918_v60  ;;  %1360 = vmatprep.subr.bf16.mxu1 %v3920_v61  ;;  %v5966_v60 = vld [vmem:[#allocation35_spill] sm:$0xff]  ;;  %v5967_v61 = vld [vmem:[#allocation36_spill] sm:$0xff] }
 0x18c   :  { %1320 = vmatpush1.bf16.msra.mxu0 %v3931_v63  ;;  %1361 = vmatpush1.bf16.msra.mxu1 %v3933_v1  ;;  %v5968_v63 = vld [vmem:[#allocation37_spill] sm:$0xff]  ;;  %v5969_v1 = vld [vmem:[#allocation38_spill] sm:$0xff] }
 0x18d   :  { %1321 = vmatprep.subr.bf16.mxu0 %v3935_v2  ;;  %1362 = vmatprep.subr.bf16.mxu1 %v3937_v3  ;;  %v5970_v2 = vld [vmem:[#allocation39_spill] sm:$0xff]  ;;  %v5971_v3 = vld [vmem:[#allocation40_spill] sm:$0xff] }
 0x190   :  { %1322 = vmatpush1.bf16.msra.mxu0 %v3943_v4  ;;  %1363 = vmatpush1.bf16.msra.mxu1 %v3945_v5  ;;  %v5972_v4 = vld [vmem:[#allocation41_spill] sm:$0xff]  ;;  %v5973_v5 = vld [vmem:[#allocation42_spill] sm:$0xff] }
 0x191   :  { %1413 = vmatprep.subr.bf16.mxu0 %v3959_v6  ;;  %1454 = vmatprep.subr.bf16.mxu1 %v3961_v7 }
 0x193   :  { %1340 = vmatmul.mubr.bf16.vlgmr.msra.gmra.mrb[24].mxu0 %v818_v21  ;;  %1381 = vmatmul.mubr.bf16.vlgmr.msra.gmra.mrb[24].mxu1 %v818_v21  ;;  %v5996_v21 = vld [vmem:[#allocation65_spill] sm:$0xff] }
 0x194   :  { %1414 = vmatpush1.bf16.msra.mxu0 %v3965_v8  ;;  %1455 = vmatpush1.bf16.msra.mxu1 %v3967_v9 }
 0x195   :  { %1415 = vmatprep.subr.bf16.mxu0 %v3971_v10  ;;  %1456 = vmatprep.subr.bf16.mxu1 %v3973_v11 }
 0x198   :  { %1416 = vmatpush1.bf16.msra.mxu0 %v3975_v12  ;;  %1457 = vmatpush1.bf16.msra.mxu1 %v3977_v13 }
 0x199   :  { %1417 = vmatprep.subr.bf16.mxu0 %v3983_v14  ;;  %1458 = vmatprep.subr.bf16.mxu1 %v5944_v36 }
 0x19c   :  { %1418 = vmatpush1.bf16.msra.mxu0 %v5945_v37  ;;  %1459 = vmatpush1.bf16.msra.mxu1 %v5946_v38 }
 0x19d   :  { %1419 = vmatprep.subr.bf16.mxu0 %v5947_v39  ;;  %1460 = vmatprep.subr.bf16.mxu1 %v5948_v40 }
 0x1a0   :  { %1420 = vmatpush1.bf16.msra.mxu0 %v5949_v41  ;;  %1461 = vmatpush1.bf16.msra.mxu1 %v5950_v42 }
 0x1a1   :  { %1421 = vmatprep.subr.bf16.mxu0 %v5951_v43  ;;  %1462 = vmatprep.subr.bf16.mxu1 %v5952_v45 }
 0x1a4   :  { %1422 = vmatpush1.bf16.msra.mxu0 %v5953_v46  ;;  %1463 = vmatpush1.bf16.msra.mxu1 %v5954_v47 }
 0x1a5   :  { %1423 = vmatprep.subr.bf16.mxu0 %v5955_v48  ;;  %1464 = vmatprep.subr.bf16.mxu1 %v5956_v49 }
 0x1a8   :  { %1424 = vmatpush1.bf16.msra.mxu0 %v5957_v50  ;;  %1465 = vmatpush1.bf16.msra.mxu1 %v5958_v51 }
 0x1a9   :  { %1425 = vmatprep.subr.bf16.mxu0 %v5959_v52  ;;  %1466 = vmatprep.subr.bf16.mxu1 %v5960_v54 }
 0x1ac   :  { %1426 = vmatpush1.bf16.msra.mxu0 %v5961_v55  ;;  %1467 = vmatpush1.bf16.msra.mxu1 %v5962_v56 }
 0x1ad   :  { %1427 = vmatprep.subr.bf16.mxu0 %v5963_v57  ;;  %1468 = vmatprep.subr.bf16.mxu1 %v5964_v58 }
 0x1b0   :  { %1428 = vmatpush1.bf16.msra.mxu0 %v5965_v59  ;;  %1469 = vmatpush1.bf16.msra.mxu1 %v5966_v60 }
 0x1b1   :  { %1429 = vmatprep.subr.bf16.mxu0 %v5967_v61  ;;  %1470 = vmatprep.subr.bf16.mxu1 %v5968_v63 }
 0x1b4   :  { %1430 = vmatpush1.bf16.msra.mxu0 %v5969_v1  ;;  %1471 = vmatpush1.bf16.msra.mxu1 %v5970_v2 }
 0x1b5   :  { %1431 = vmatprep.subr.bf16.mxu0 %v5971_v3  ;;  %1472 = vmatprep.subr.bf16.mxu1 %v5972_v4 }
 0x1b8   :  { %1432 = vmatpush1.bf16.msra.mxu0 %v5973_v5  ;;  %1473 = vmatpush1.bf16.msra.mxu1 %v5974_v30 }
 0x1b9   :  { %1433 = vmatprep.subr.bf16.mxu0 %v5975_v24  ;;  %1474 = vmatprep.subr.bf16.mxu1 %v5976_v23 }
 0x1bc   :  { %1434 = vmatpush1.bf16.msra.mxu0 %v5977_v29  ;;  %1475 = vmatpush1.bf16.msra.mxu1 %v5978_v53 }
 0x1bd   :  { %1435 = vmatprep.subr.bf16.mxu0 %v5979_v25  ;;  %1476 = vmatprep.subr.bf16.mxu1 %v5980_v44 }
 0x1c0   :  { %1436 = vmatpush1.bf16.msra.mxu0 %v5981_v26  ;;  %1477 = vmatpush1.bf16.msra.mxu1 %v5982_v28 }
 0x1c1   :  { %1437 = vmatprep.subr.bf16.mxu0 %v5983_v0  ;;  %1478 = vmatprep.subr.bf16.mxu1 %v5984_v27 }
 0x1c4   :  { %1438 = vmatpush1.bf16.msra.mxu0 %v5985_v33  ;;  %1479 = vmatpush1.bf16.msra.mxu1 %v5986_v18  ;;  %v5997_v18 = vld [vmem:[#allocation66_spill] sm:$0xff] }
 0x1c5   :  { %1439 = vmatprep.subr.bf16.mxu0 %v5987_v62  ;;  %1480 = vmatprep.subr.bf16.mxu1 %v5988_v34  ;;  %v5998_v62 = vld [vmem:[#allocation67_spill] sm:$0xff]  ;;  %v4351_v34 = vld [vmem:[#allocation6 + $0x4] ss:$16 sps:$4 sm:$0xff]  }
 0x1c6   :  { %5999 = vst [vmem:[#allocation13_spill] sm:$0xff] %v4351_v34 }
 0x1c8   :  { %1440 = vmatpush1.bf16.msra.mxu0 %v5989_v35  ;;  %1481 = vmatpush1.bf16.msra.mxu1 %v5990_v32  ;;  %v4354_v32 = vld [vmem:[#allocation6 + $0xc] ss:$16 sps:$4 sm:$0xff]  }
 0x1c9   :  { %1441 = vmatprep.subr.bf16.mxu0 %v5991_v15  ;;  %1482 = vmatprep.subr.bf16.mxu1 %v5992_v16  ;;  %6000 = vst [vmem:[#allocation14_spill] sm:$0xff] %v4354_v32 }
 0x1cc   :  { %1442 = vmatpush1.bf16.msra.mxu0 %v5993_v17  ;;  %1483 = vmatpush1.bf16.msra.mxu1 %v5994_v31  ;;  %v496_v31 = vld [vmem:[%s5511_s5] sm:$0xf] }
 0x1cd   :  { %1443 = vmatprep.subr.bf16.mxu0 %v5995_v19  ;;  %1484 = vmatprep.subr.bf16.mxu1 %v5996_v21  ;;  %v6001_v17 = vld [vmem:[#allocation68_spill] sm:$0xff] }
 0x1ce   :  { %v6002_v19 = vsub.s32 0, %v6001_v17  ;;  %v6006_v35 = vsub.s32 2, %v6001_v17  ;;  %v6008_v29 = vsub.s32 3, %v6001_v17 }
 0x1d0   :  { %1444 = vmatpush1.bf16.msra.mxu0 %v5997_v18  ;;  %1485 = vmatpush1.bf16.msra.mxu1 %v5998_v62  ;;  %v4362_v16 = vrot.slane %v496_v31, %v6002_v19  ;;  %v6004_v18 = vsub.s32 1, %v6001_v17  ;;  %v4371_v33 = vrot.slane %v496_v31, %v6006_v35 }
 0x1d1   :  { %1517 = vmatprep.subr.bf16.mxu0 %v4351_v34  ;;  %1558 = vmatprep.subr.bf16.mxu1 %v4354_v32 }
 0x1d2   :  { %6003 = vst [vmem:[#allocation15_spill] sm:$0xff] %v4362_v16  ;;  %v4366_v21 = vrot.slane %v496_v31, %v6004_v18  ;;  %6007 = vst [vmem:[#allocation17_spill] sm:$0xff] %v4371_v33 }
 0x1d4   :  { %6005 = vst [vmem:[#allocation16_spill] sm:$0xff] %v4366_v21 }
 0x246   :  { %v1237_v62 = vpop.f32.mrb[20].mxu0  ;;  %v1278_v15 = vpop.f32.mrb[20].mxu1 }
 0x247   :  { %v1238_v34 = vadd.f32 %v1237_v62, %v4362_v16  ;;  %v1239_v32 = vpop.f32.mrb[21].mxu0  ;;  %v1280_v27 = vpop.f32.mrb[21].mxu1  ;;  %v1279_v18 = vadd.f32 %v1278_v15, %v4371_v33  ;;  %v4377_v62 = vrot.slane %v496_v31, %v6008_v29 }
 0x248   :  { %v1240_v0 = vadd.f32 %v1239_v32, %v4366_v21  ;;  %v1241_v28 = vpop.f32.mrb[22].mxu0  ;;  %v1282_v26 = vpop.f32.mrb[22].mxu1 }
 0x249   :  { %v1285_v19 = vmul.f32 0.5, %v1238_v34  ;;  %v1242_v44 = vpop.f32.mrb[23].mxu0  ;;  %v1283_v25 = vpop.f32.mrb[23].mxu1  ;;  %6009 = vst [vmem:[#allocation18_spill] sm:$0xff] %v4377_v62  ;;  %v1281_v35 = vadd.f32 %v1280_v27, %v4377_v62  ;;  %v6011_v27 = vld [vmem:[#allocation69_spill] sm:$0xff] }
 0x24a   :  { %v1289_v53 = vmul.f32 0.5, %v1240_v0 }
 0x24b   :  { %3295 = vtanh.f32 %v1285_v19  ;;  %v1294_v16 = vmul.f32 0.5, %v1281_v35  ;;  %v6012_v35 = vld [vmem:[#allocation70_spill] sm:$0xff] }
 0x24c   :  { %3297 = vtanh.f32 %v1289_v53 }
 0x24d   :  { %3299 = vtanh.f32 %v1279_v18 }
 0x24e   :  { %3301 = vtanh.f32 %v1294_v16 }
 0x255   :  { %v3296_v23 = vpop.eup %3295 }
 0x256   :  { %v3298_v32 = vpop.eup %3297  ;;  %v1287_v28 = vadd.f32 1.0, %v3296_v23 }
 0x257   :  { %v1291_v26 = vadd.f32 1.0, %v3298_v32  ;;  %v3300_v25 = vpop.eup %3299 }
 0x258   :  { %v1288_v44 = vmul.f32 0.5, %v1287_v28  ;;  %v3302_v29 = vpop.eup %3301  ;;  %v6013_v28 = vld [vmem:[#allocation71_spill] sm:$0xff] }
 0x259   :  { %v1292_v0 = vmul.f32 0.5, %v1291_v26  ;;  %v1296_v53 = vadd.f32 1.0, %v3302_v29  ;;  %v6014_v26 = vld [vmem:[#allocation72_spill] sm:$0xff] }
 0x25a   :  { %v1299_v34 = vmul.f32 %v3300_v25, %v1288_v44 }
 0x25b   :  { %v1298_v19 = vmul.f32 0.0, %v1292_v0  ;;  %v1297_v16 = vmul.f32 0.5, %v1296_v53 }
 0x25d   :  { %v4380_v15 = vadd.f32 %v1299_v34, %v1298_v19 }
 0x25f   :  { %6010 = vst [vmem:[#allocation19_spill] sm:$0xff] %v4380_v15  ;;  %3303 = vtanh.f32 %v4380_v15 }
 0x266   :  { %v1341_v17 = vpop.f32.mrb[24].mxu0  ;;  %v1382_v31 = vpop.f32.mrb[24].mxu1 }
 0x267   :  { %v1389_v18 = vadd.f32 %v1341_v17, %v6011_v27  ;;  %v1391_v62 = vadd.f32 %v1382_v31, %v6012_v35  ;;  %v1343_v23 = vpop.f32.mrb[25].mxu0  ;;  %v1384_v32 = vpop.f32.mrb[25].mxu1 }
 0x268   :  { %v1390_v33 = vadd.f32 %v1343_v23, %v6013_v28  ;;  %v1392_v44 = vadd.f32 %v1384_v32, %v6014_v26  ;;  %v1345_v25 = vpop.f32.mrb[26].mxu0  ;;  %v1386_v0 = vpop.f32.mrb[26].mxu1 }
 0x269   :  { %v3304_v34 = vpop.eup %3303  ;;  %v1393_v19 = vmul.f32 0.5, %v1389_v18  ;;  %v1346_v15 = vpop.f32.mrb[27].mxu0  ;;  %v4395_v0 = vld [vmem:[#allocation6] ss:$16 sps:$4 sm:$0xff]  }
 0x26a   :  { %v1387_v21 = vpop.f32.mrb[27].mxu1  ;;  %v1397_v29 = vmul.f32 0.5, %v1390_v33  ;;  %v1302_v24 = vmul.f32 %v3304_v34, %v1297_v16  ;;  %v1402_v31 = vmul.f32 0.5, %v1392_v44  ;;  %v4401_v34 = vld [vmem:[#allocation6 + $0x24] ss:$16 sps:$4 sm:$0xff]  }
 0x26b   :  { %3305 = vtanh.f32 %v1393_v19  ;;  %v4404_v19 = vld [vmem:[#allocation6 + $0x2c] ss:$16 sps:$4 sm:$0xff]  }
 0x26c   :  { %3307 = vtanh.f32 %v1397_v29  ;;  %v1412_v17 = vpack.c.bf16 %v1302_v24, %v1302_v24  ;;  %v4409_v29 = vld [vmem:[#allocation6 + $0x20] ss:$16 sps:$4 sm:$0xff]  }
 0x26d   :  { %3309 = vtanh.f32 %v1391_v62 }
 0x26e   :  { %1445 = vmatprep.mubr.bf16.mxu0 %v1412_v17  ;;  %1486 = vmatprep.mubr.bf16.mxu1 %v1412_v17  ;;  %3311 = vtanh.f32 %v1402_v31  ;;  %v4412_v17 = vld [vmem:[#allocation6 + $0x28] ss:$16 sps:$4 sm:$0xff]   ;;  %v4415_v31 = vld [vmem:[#allocation6 + $0x44] ss:$16 sps:$4 sm:$0xff]  }
 0x275   :  { %v3306_v53 = vpop.eup %3305 }
 0x276   :  { %v3308_v27 = vpop.eup %3307  ;;  %v1395_v35 = vadd.f32 1.0, %v3306_v53  ;;  %v4418_v53 = vld [vmem:[#allocation6 + $0x4c] ss:$16 sps:$4 sm:$0xff]  }
 0x277   :  { %v1399_v23 = vadd.f32 1.0, %v3308_v27  ;;  %v3310_v28 = vpop.eup %3309  ;;  %v4421_v27 = vld [vmem:[#allocation6 + $0x40] ss:$16 sps:$4 sm:$0xff]  }
 0x278   :  { %v1396_v32 = vmul.f32 0.5, %v1395_v35  ;;  %v3312_v24 = vpop.eup %3311  ;;  %v4424_v35 = vld [vmem:[#allocation6 + $0x48] ss:$16 sps:$4 sm:$0xff]  }
 0x279   :  { %v1400_v26 = vmul.f32 0.5, %v1399_v23  ;;  %v1404_v15 = vadd.f32 1.0, %v3312_v24  ;;  %v4427_v23 = vld [vmem:[#allocation6 + $0x64] ss:$16 sps:$4 sm:$0xff]   ;;  %v4445_v24 = vld [vmem:[#allocation6 + $0x80] ss:$16 sps:$4 sm:$0xff]  }
 0x27a   :  { %v1407_v18 = vmul.f32 %v3310_v28, %v1396_v32  ;;  %v4430_v32 = vld [vmem:[#allocation6 + $0x6c] ss:$16 sps:$4 sm:$0xff]   ;;  %v4433_v28 = vld [vmem:[#allocation6 + $0x60] ss:$16 sps:$4 sm:$0xff]   ;;  %6016 = vst [vmem:[#allocation21_spill] sm:$0xff] %v4445_v24 }
 0x27b   :  { %v1406_v21 = vmul.f32 %v1400_v26, %v4252_v20  ;;  %v1405_v16 = vmul.f32 0.5, %v1404_v15  ;;  %v4398_v20 = vld [vmem:[#allocation6 + $0x8] ss:$16 sps:$4 sm:$0xff]  }
 0x27c   :  { %v4436_v26 = vld [vmem:[#allocation6 + $0x68] ss:$16 sps:$4 sm:$0xff]  }
 0x27d   :  { %v4388_v33 = vadd.f32 %v1407_v18, %v1406_v21  ;;  %v4439_v18 = vld [vmem:[#allocation6 + $0x84] ss:$16 sps:$4 sm:$0xff]   ;;  %v4442_v21 = vld [vmem:[#allocation6 + $0x8c] ss:$16 sps:$4 sm:$0xff]   ;;  %v4448_v15 = vld [vmem:[#allocation6 + $0x88] ss:$16 sps:$4 sm:$0xff]  }
 0x27e   :  { %6015 = vst [vmem:[#allocation20_spill] sm:$0xff] %v4442_v21  ;;  %6017 = vst [vmem:[#allocation22_spill] sm:$0xff] %v4448_v15 }
 0x27f   :  { %3313 = vtanh.f32 %v4388_v33 }
 0x289   :  { %v3314_v62 = vpop.eup %3313 }
 0x28a   :  { %v1410_v44 = vmul.f32 %v3314_v62, %v1405_v16  ;;  %v4451_v16 = vld [vmem:[#allocation6 + $0xa4] ss:$16 sps:$4 sm:$0xff]   ;;  %v4454_v62 = vld [vmem:[#allocation6 + $0xac] ss:$16 sps:$4 sm:$0xff]  }
 0x28b   :  { %6018 = vst [vmem:[#allocation23_spill] sm:$0xff] %v4451_v16  ;;  %6019 = vst [vmem:[#allocation24_spill] sm:$0xff] %v4454_v62 }
 0x28c   :  { %v4391_v25 = vpack.c.bf16 %v1410_v44, %v1410_v44  ;;  %v4457_v44 = vld [vmem:[#allocation6 + $0xa0] ss:$16 sps:$4 sm:$0xff]  }
 0x28d   :  { %6020 = vst [vmem:[#allocation25_spill] sm:$0xff] %v4457_v44 }
 0x28e   :  { %1446 = vmatmul.mubr.bf16.vlgmr.msra.gmra.mrb[28].mxu0 %v4391_v25  ;;  %1487 = vmatmul.mubr.bf16.vlgmr.msra.gmra.mrb[28].mxu1 %v4391_v25 }
 0x28f   :  { %1518 = vmatpush1.bf16.msra.mxu0 %v4395_v0  ;;  %1559 = vmatpush1.bf16.msra.mxu1 %v4398_v20 }
 0x290   :  { %1519 = vmatprep.subr.bf16.mxu0 %v4401_v34  ;;  %1560 = vmatprep.subr.bf16.mxu1 %v4404_v19 }
 0x291   :  { %1549 = vmatprep.mubr.bf16.mxu0 %v5943_v22  ;;  %1590 = vmatprep.mubr.bf16.mxu1 %v5943_v22 }
 0x293   :  { %1520 = vmatpush1.bf16.msra.mxu0 %v4409_v29  ;;  %1561 = vmatpush1.bf16.msra.mxu1 %v4412_v17 }
 0x294   :  { %1521 = vmatprep.subr.bf16.mxu0 %v4415_v31  ;;  %1562 = vmatprep.subr.bf16.mxu1 %v4418_v53 }
 0x297   :  { %1522 = vmatpush1.bf16.msra.mxu0 %v4421_v27  ;;  %1563 = vmatpush1.bf16.msra.mxu1 %v4424_v35 }
 0x298   :  { %1523 = vmatprep.subr.bf16.mxu0 %v4427_v23  ;;  %1564 = vmatprep.subr.bf16.mxu1 %v4430_v32 }
 0x29b   :  { %1524 = vmatpush1.bf16.msra.mxu0 %v4433_v28  ;;  %1565 = vmatpush1.bf16.msra.mxu1 %v4436_v26 }
 0x29c   :  { %1525 = vmatprep.subr.bf16.mxu0 %v4439_v18  ;;  %1566 = vmatprep.subr.bf16.mxu1 %v4442_v21  ;;  %v4460_v21 = vld [vmem:[#allocation6 + $0xa8] ss:$16 sps:$4 sm:$0xff]  }
 0x29d   :  { %6021 = vst [vmem:[#allocation26_spill] sm:$0xff] %v4460_v21 }
 0x29f   :  { %1526 = vmatpush1.bf16.msra.mxu0 %v4445_v24  ;;  %1567 = vmatpush1.bf16.msra.mxu1 %v4448_v15  ;;  %v4463_v24 = vld [vmem:[#allocation6 + $0xc4] ss:$16 sps:$4 sm:$0xff]   ;;  %v4466_v15 = vld [vmem:[#allocation6 + $0xcc] ss:$16 sps:$4 sm:$0xff]  }
 0x2a0   :  { %1527 = vmatprep.subr.bf16.mxu0 %v4451_v16  ;;  %1568 = vmatprep.subr.bf16.mxu1 %v4454_v62  ;;  %6022 = vst [vmem:[#allocation27_spill] sm:$0xff] %v4463_v24  ;;  %6023 = vst [vmem:[#allocation28_spill] sm:$0xff] %v4466_v15  ;;  %v4469_v16 = vld [vmem:[#allocation6 + $0xc0] ss:$16 sps:$4 sm:$0xff]   ;;  %v4472_v62 = vld [vmem:[#allocation6 + $0xc8] ss:$16 sps:$4 sm:$0xff]  }
 0x2a3   :  { %1528 = vmatpush1.bf16.msra.mxu0 %v4457_v44  ;;  %1569 = vmatpush1.bf16.msra.mxu1 %v4460_v21  ;;  %v4475_v44 = vld [vmem:[#allocation6 + $0xe4] ss:$16 sps:$4 sm:$0xff]   ;;  %v4478_v21 = vld [vmem:[#allocation6 + $0xec] ss:$16 sps:$4 sm:$0xff]  }
 0x2a4   :  { %1529 = vmatprep.subr.bf16.mxu0 %v4463_v24  ;;  %1570 = vmatprep.subr.bf16.mxu1 %v4466_v15  ;;  %v4481_v24 = vld [vmem:[#allocation6 + $0xe0] ss:$16 sps:$4 sm:$0xff]   ;;  %v4484_v15 = vld [vmem:[#allocation6 + $0xe8] ss:$16 sps:$4 sm:$0xff]  }
 0x2a7   :  { %1530 = vmatpush1.bf16.msra.mxu0 %v4469_v16  ;;  %1571 = vmatpush1.bf16.msra.mxu1 %v4472_v62 }
 0x2a8   :  { %1531 = vmatprep.subr.bf16.mxu0 %v4475_v44  ;;  %1572 = vmatprep.subr.bf16.mxu1 %v4478_v21 }
 0x2ab   :  { %1532 = vmatpush1.bf16.msra.mxu0 %v4481_v24  ;;  %1573 = vmatpush1.bf16.msra.mxu1 %v4484_v15 }
 0x2ac   :  { %1623 = vmatprep.subr.bf16.mxu0 %v3959_v6  ;;  %1664 = vmatprep.subr.bf16.mxu1 %v3961_v7  ;;  %v6024_v6 = vld [vmem:[#allocation44_spill] sm:$0xff]  ;;  %v6025_v7 = vld [vmem:[#allocation45_spill] sm:$0xff] }
 0x2ae   :  { %1550 = vmatmul.mubr.bf16.vlgmr.msra.gmra.mrb[32].mxu0 %v4391_v25  ;;  %1591 = vmatmul.mubr.bf16.vlgmr.msra.gmra.mrb[32].mxu1 %v4391_v25  ;;  %v6052_v25 = vld [vmem:[#allocation17_spill] sm:$0xff] }
 0x2af   :  { %1624 = vmatpush1.bf16.msra.mxu0 %v3965_v8  ;;  %1665 = vmatpush1.bf16.msra.mxu1 %v3967_v9  ;;  %v6026_v8 = vld [vmem:[#allocation46_spill] sm:$0xff]  ;;  %v6027_v9 = vld [vmem:[#allocation47_spill] sm:$0xff] }
 0x2b0   :  { %1625 = vmatprep.subr.bf16.mxu0 %v3971_v10  ;;  %1666 = vmatprep.subr.bf16.mxu1 %v3973_v11  ;;  %v6028_v10 = vld [vmem:[#allocation48_spill] sm:$0xff]  ;;  %v6029_v11 = vld [vmem:[#allocation49_spill] sm:$0xff] }
 0x2b3   :  { %1626 = vmatpush1.bf16.msra.mxu0 %v3975_v12  ;;  %1667 = vmatpush1.bf16.msra.mxu1 %v3977_v13  ;;  %v6030_v12 = vld [vmem:[#allocation50_spill] sm:$0xff]  ;;  %v6031_v13 = vld [vmem:[#allocation51_spill] sm:$0xff] }
 0x2b4   :  { %1627 = vmatprep.subr.bf16.mxu0 %v3983_v14  ;;  %1668 = vmatprep.subr.bf16.mxu1 %v5944_v36  ;;  %v6032_v14 = vld [vmem:[#allocation52_spill] sm:$0xff]  ;;  %v6033_v36 = vld [vmem:[#allocation53_spill] sm:$0xff] }
 0x2b7   :  { %1628 = vmatpush1.bf16.msra.mxu0 %v5945_v37  ;;  %1669 = vmatpush1.bf16.msra.mxu1 %v5946_v38  ;;  %v6034_v37 = vld [vmem:[#allocation54_spill] sm:$0xff]  ;;  %v6035_v38 = vld [vmem:[#allocation55_spill] sm:$0xff] }
 0x2b8   :  { %1629 = vmatprep.subr.bf16.mxu0 %v5947_v39  ;;  %1670 = vmatprep.subr.bf16.mxu1 %v5948_v40  ;;  %v6036_v39 = vld [vmem:[#allocation56_spill] sm:$0xff]  ;;  %v6037_v40 = vld [vmem:[#allocation57_spill] sm:$0xff] }
 0x2bb   :  { %1630 = vmatpush1.bf16.msra.mxu0 %v5949_v41  ;;  %1671 = vmatpush1.bf16.msra.mxu1 %v5950_v42  ;;  %v6038_v41 = vld [vmem:[#allocation58_spill] sm:$0xff]  ;;  %v6039_v42 = vld [vmem:[#allocation59_spill] sm:$0xff] }
 0x2bc   :  { %1631 = vmatprep.subr.bf16.mxu0 %v5951_v43  ;;  %1672 = vmatprep.subr.bf16.mxu1 %v5952_v45  ;;  %v6040_v43 = vld [vmem:[#allocation60_spill] sm:$0xff]  ;;  %v6041_v45 = vld [vmem:[#allocation61_spill] sm:$0xff] }
 0x2bf   :  { %1632 = vmatpush1.bf16.msra.mxu0 %v5953_v46  ;;  %1673 = vmatpush1.bf16.msra.mxu1 %v5954_v47  ;;  %v6042_v46 = vld [vmem:[#allocation62_spill] sm:$0xff]  ;;  %v6043_v47 = vld [vmem:[#allocation63_spill] sm:$0xff] }
 0x2c0   :  { %1633 = vmatprep.subr.bf16.mxu0 %v5955_v48  ;;  %1674 = vmatprep.subr.bf16.mxu1 %v5956_v49  ;;  %v6044_v48 = vld [vmem:[#allocation64_spill] sm:$0xff]  ;;  %v6045_v49 = vld [vmem:[#allocation65_spill] sm:$0xff] }
 0x2c3   :  { %1634 = vmatpush1.bf16.msra.mxu0 %v5957_v50  ;;  %1675 = vmatpush1.bf16.msra.mxu1 %v5958_v51  ;;  %v6046_v50 = vld [vmem:[#allocation66_spill] sm:$0xff]  ;;  %v6047_v51 = vld [vmem:[#allocation67_spill] sm:$0xff] }
 0x2c4   :  { %1635 = vmatprep.subr.bf16.mxu0 %v5959_v52  ;;  %1676 = vmatprep.subr.bf16.mxu1 %v5960_v54  ;;  %v6048_v52 = vld [vmem:[#allocation13_spill] sm:$0xff]  ;;  %v6049_v54 = vld [vmem:[#allocation14_spill] sm:$0xff] }
 0x2c7   :  { %1636 = vmatpush1.bf16.msra.mxu0 %v5961_v55  ;;  %1677 = vmatpush1.bf16.msra.mxu1 %v5962_v56 }
 0x2c8   :  { %1637 = vmatprep.subr.bf16.mxu0 %v5963_v57  ;;  %1678 = vmatprep.subr.bf16.mxu1 %v5964_v58  ;;  %v6050_v57 = vld [vmem:[#allocation15_spill] sm:$0xff] }
 0x2cb   :  { %1638 = vmatpush1.bf16.msra.mxu0 %v5965_v59  ;;  %1679 = vmatpush1.bf16.msra.mxu1 %v5966_v60 }
 0x2cc   :  { %1639 = vmatprep.subr.bf16.mxu0 %v5967_v61  ;;  %1680 = vmatprep.subr.bf16.mxu1 %v5968_v63  ;;  %v6051_v61 = vld [vmem:[#allocation16_spill] sm:$0xff] }
 0x2cf   :  { %1640 = vmatpush1.bf16.msra.mxu0 %v5969_v1  ;;  %1681 = vmatpush1.bf16.msra.mxu1 %v5970_v2 }
 0x2d0   :  { %1641 = vmatprep.subr.bf16.mxu0 %v5971_v3  ;;  %1682 = vmatprep.subr.bf16.mxu1 %v5972_v4 }
 0x2d3   :  { %1642 = vmatpush1.bf16.msra.mxu0 %v5973_v5  ;;  %1683 = vmatpush1.bf16.msra.mxu1 %v5974_v30 }
 0x2d4   :  { %1643 = vmatprep.subr.bf16.mxu0 %v6024_v6  ;;  %1684 = vmatprep.subr.bf16.mxu1 %v6025_v7  ;;  %v6053_v7 = vld [vmem:[#allocation18_spill] sm:$0xff] }
 0x2d7   :  { %1644 = vmatpush1.bf16.msra.mxu0 %v6026_v8  ;;  %1685 = vmatpush1.bf16.msra.mxu1 %v6027_v9 }
 0x2d8   :  { %1645 = vmatprep.subr.bf16.mxu0 %v6028_v10  ;;  %1686 = vmatprep.subr.bf16.mxu1 %v6029_v11 }
 0x2db   :  { %1646 = vmatpush1.bf16.msra.mxu0 %v6030_v12  ;;  %1687 = vmatpush1.bf16.msra.mxu1 %v6031_v13 }
 0x2dc   :  { %1647 = vmatprep.subr.bf16.mxu0 %v6032_v14  ;;  %1688 = vmatprep.subr.bf16.mxu1 %v6033_v36 }
 0x2df   :  { %1648 = vmatpush1.bf16.msra.mxu0 %v6034_v37  ;;  %1689 = vmatpush1.bf16.msra.mxu1 %v6035_v38 }
 0x2e0   :  { %1649 = vmatprep.subr.bf16.mxu0 %v6036_v39  ;;  %1690 = vmatprep.subr.bf16.mxu1 %v6037_v40  ;;  %v6054_v39 = vld [vmem:[#allocation19_spill] sm:$0xff] }
 0x2e3   :  { %1650 = vmatpush1.bf16.msra.mxu0 %v6038_v41  ;;  %1691 = vmatpush1.bf16.msra.mxu1 %v6039_v42 }
 0x2e4   :  { %1651 = vmatprep.subr.bf16.mxu0 %v6040_v43  ;;  %1692 = vmatprep.subr.bf16.mxu1 %v6041_v45 }
 0x2e7   :  { %1652 = vmatpush1.bf16.msra.mxu0 %v6042_v46  ;;  %1693 = vmatpush1.bf16.msra.mxu1 %v6043_v47  ;;  %v6055_v47 = vld [vmem:[#allocation73_spill] sm:$0xff] }
 0x2e8   :  { %1653 = vmatprep.subr.bf16.mxu0 %v6044_v48  ;;  %1694 = vmatprep.subr.bf16.mxu1 %v6045_v49  ;;  %v6056_v49 = vld [vmem:[#allocation74_spill] sm:$0xff] }
 0x2eb   :  { %1654 = vmatpush1.bf16.msra.mxu0 %v6046_v50  ;;  %1695 = vmatpush1.bf16.msra.mxu1 %v6047_v51 }
 0x2ec   :  { %1727 = vmatprep.subr.bf16.mxu0 %v6048_v52  ;;  %1768 = vmatprep.subr.bf16.mxu1 %v6049_v54 }
 0x361   :  { %v1447_v55 = vpop.f32.mrb[28].mxu0  ;;  %v1488_v56 = vpop.f32.mrb[28].mxu1 }
 0x362   :  { %v1448_v58 = vadd.f32 %v1447_v55, %v6050_v57  ;;  %v1449_v59 = vpop.f32.mrb[29].mxu0  ;;  %v1490_v60 = vpop.f32.mrb[29].mxu1  ;;  %v1489_v6 = vadd.f32 %v1488_v56, %v6052_v25 }
 0x363   :  { %v1450_v63 = vadd.f32 %v1449_v59, %v6051_v61  ;;  %v1451_v1 = vpop.f32.mrb[30].mxu0  ;;  %v1492_v2 = vpop.f32.mrb[30].mxu1  ;;  %v1491_v8 = vadd.f32 %v1490_v60, %v6053_v7  ;;  %v6058_v60 = vld [vmem:[#allocation76_spill] sm:$0xff] }
 0x364   :  { %v1495_v3 = vmul.f32 0.5, %v1448_v58  ;;  %v1452_v4 = vpop.f32.mrb[31].mxu0  ;;  %v1493_v5 = vpop.f32.mrb[31].mxu1  ;;  %v6057_v58 = vld [vmem:[#allocation75_spill] sm:$0xff] }
 0x365   :  { %v1499_v30 = vmul.f32 0.5, %v1450_v63  ;;  %v1504_v9 = vmul.f32 0.5, %v1491_v8 }
 0x366   :  { %3315 = vtanh.f32 %v1495_v3 }
 0x367   :  { %3317 = vtanh.f32 %v1499_v30 }
 0x368   :  { %3319 = vtanh.f32 %v1489_v6 }
 0x369   :  { %3321 = vtanh.f32 %v1504_v9 }
 0x370   :  { %v3316_v10 = vpop.eup %3315 }
 0x371   :  { %v3318_v11 = vpop.eup %3317  ;;  %v1497_v12 = vadd.f32 1.0, %v3316_v10 }
 0x372   :  { %v1501_v13 = vadd.f32 1.0, %v3318_v11  ;;  %v3320_v36 = vpop.eup %3319 }
 0x373   :  { %v1498_v14 = vmul.f32 0.5, %v1497_v12  ;;  %v3322_v42 = vpop.eup %3321 }
 0x374   :  { %v1502_v37 = vmul.f32 0.5, %v1501_v13  ;;  %v1506_v43 = vadd.f32 1.0, %v3322_v42 }
 0x375   :  { %v1509_v38 = vmul.f32 %v3320_v36, %v1498_v14 }
 0x376   :  { %v1508_v40 = vmul.f32 %v1502_v37, %v6054_v39  ;;  %v1507_v56 = vmul.f32 0.5, %v1506_v43 }
 0x378   :  { %v4560_v41 = vadd.f32 %v1509_v38, %v1508_v40 }
 0x37a   :  { %3323 = vtanh.f32 %v4560_v41 }
 0x381   :  { %v1551_v45 = vpop.f32.mrb[32].mxu0  ;;  %v1592_v46 = vpop.f32.mrb[32].mxu1 }
 0x382   :  { %v1599_v48 = vadd.f32 %v1551_v45, %v6055_v47  ;;  %v1601_v50 = vadd.f32 %v1592_v46, %v6056_v49  ;;  %v1553_v51 = vpop.f32.mrb[33].mxu0  ;;  %v1594_v55 = vpop.f32.mrb[33].mxu1 }
 0x383   :  { %v1600_v59 = vadd.f32 %v1553_v51, %v6057_v58  ;;  %v1602_v63 = vadd.f32 %v1594_v55, %v6058_v60  ;;  %v1555_v1 = vpop.f32.mrb[34].mxu0  ;;  %v1596_v2 = vpop.f32.mrb[34].mxu1  ;;  %v6061_v51 = vld [vmem:[#allocation22_spill] sm:$0xff]  ;;  %v6062_v55 = vld [vmem:[#allocation23_spill] sm:$0xff]  ;;  %v6064_v58 = vld [vmem:[#allocation25_spill] sm:$0xff] }
 0x384   :  { %v3324_v3 = vpop.eup %3323  ;;  %v1603_v4 = vmul.f32 0.5, %v1599_v48  ;;  %v1556_v5 = vpop.f32.mrb[35].mxu0  ;;  %v6066_v60 = vld [vmem:[#allocation27_spill] sm:$0xff]  ;;  %v4603_v1 = vld [vmem:[#allocation8 + $0x4] ss:$16 sps:$4 sm:$0xff]  }
 0x385   :  { %v1597_v30 = vpop.f32.mrb[35].mxu1  ;;  %v1607_v6 = vmul.f32 0.5, %v1600_v59  ;;  %v1512_v8 = vmul.f32 %v3324_v3, %v1507_v56  ;;  %v1612_v10 = vmul.f32 0.5, %v1602_v63  ;;  %v6063_v56 = vld [vmem:[#allocation24_spill] sm:$0xff]  ;;  %v6065_v59 = vld [vmem:[#allocation26_spill] sm:$0xff] }
 0x386   :  { %3325 = vtanh.f32 %v1603_v4  ;;  %v6067_v63 = vld [vmem:[#allocation28_spill] sm:$0xff]  ;;  %v4606_v2 = vld [vmem:[#allocation8 + $0xc] ss:$16 sps:$4 sm:$0xff]   ;;  %v4612_v4 = vld [vmem:[#allocation8 + $0x8] ss:$16 sps:$4 sm:$0xff]  }
 0x387   :  { %3327 = vtanh.f32 %v1607_v6  ;;  %v1622_v9 = vpack.c.bf16 %v1512_v8, %v1512_v8  ;;  %v4609_v3 = vld [vmem:[#allocation8] ss:$16 sps:$4 sm:$0xff]   ;;  %v4615_v5 = vld [vmem:[#allocation8 + $0x24] ss:$16 sps:$4 sm:$0xff]   ;;  %v4618_v30 = vld [vmem:[#allocation8 + $0x2c] ss:$16 sps:$4 sm:$0xff]  }
 0x388   :  { %3329 = vtanh.f32 %v1601_v50  ;;  %v6060_v50 = vld [vmem:[#allocation21_spill] sm:$0xff]  ;;  %v4621_v6 = vld [vmem:[#allocation8 + $0x20] ss:$16 sps:$4 sm:$0xff]  }
 0x389   :  { %1655 = vmatprep.mubr.bf16.mxu0 %v1622_v9  ;;  %1696 = vmatprep.mubr.bf16.mxu1 %v1622_v9  ;;  %3331 = vtanh.f32 %v1612_v10  ;;  %v4624_v8 = vld [vmem:[#allocation8 + $0x28] ss:$16 sps:$4 sm:$0xff]   ;;  %v4627_v9 = vld [vmem:[#allocation8 + $0x44] ss:$16 sps:$4 sm:$0xff]   ;;  %v4630_v10 = vld [vmem:[#allocation8 + $0x4c] ss:$16 sps:$4 sm:$0xff]  }
 0x390   :  { %v3326_v11 = vpop.eup %3325 }
 0x391   :  { %v3328_v12 = vpop.eup %3327  ;;  %v1605_v13 = vadd.f32 1.0, %v3326_v11  ;;  %v4633_v11 = vld [vmem:[#allocation8 + $0x40] ss:$16 sps:$4 sm:$0xff]  }
 0x392   :  { %v1609_v14 = vadd.f32 1.0, %v3328_v12  ;;  %v3330_v37 = vpop.eup %3329  ;;  %6068 = vst [vmem:[#allocation29_spill] sm:$0xff] %v4633_v11  ;;  %v4636_v12 = vld [vmem:[#allocation8 + $0x48] ss:$16 sps:$4 sm:$0xff]  }
 0x393   :  { %v1606_v36 = vmul.f32 0.5, %v1605_v13  ;;  %v3332_v43 = vpop.eup %3331  ;;  %6069 = vst [vmem:[#allocation30_spill] sm:$0xff] %v4636_v12  ;;  %v4639_v13 = vld [vmem:[#allocation8 + $0x64] ss:$16 sps:$4 sm:$0xff]  }
 0x394   :  { %v1610_v38 = vmul.f32 0.5, %v1609_v14  ;;  %v1614_v45 = vadd.f32 1.0, %v3332_v43  ;;  %6070 = vst [vmem:[#allocation31_spill] sm:$0xff] %v4639_v13  ;;  %v4642_v14 = vld [vmem:[#allocation8 + $0x6c] ss:$16 sps:$4 sm:$0xff]  }
 0x395   :  { %v1617_v39 = vmul.f32 %v3330_v37, %v1606_v36  ;;  %6071 = vst [vmem:[#allocation32_spill] sm:$0xff] %v4642_v14  ;;  %v4645_v36 = vld [vmem:[#allocation8 + $0x60] ss:$16 sps:$4 sm:$0xff]   ;;  %v4648_v37 = vld [vmem:[#allocation8 + $0x68] ss:$16 sps:$4 sm:$0xff]  }
 0x396   :  { %v1616_v40 = vmul.f32 %v1610_v38, %v4388_v33  ;;  %v1615_v46 = vmul.f32 0.5, %v1614_v45  ;;  %v6059_v33 = vld [vmem:[#allocation20_spill] sm:$0xff]  ;;  %6072 = vst [vmem:[#allocation33_spill] sm:$0xff] %v4645_v36  ;;  %6073 = vst [vmem:[#allocation34_spill] sm:$0xff] %v4648_v37  ;;  %v4660_v43 = vld [vmem:[#allocation8 + $0x88] ss:$16 sps:$4 sm:$0xff]  }
 0x397   :  { %v4651_v38 = vld [vmem:[#allocation8 + $0x84] ss:$16 sps:$4 sm:$0xff]   ;;  %6077 = vst [vmem:[#allocation38_spill] sm:$0xff] %v4660_v43 }
 0x398   :  { %v4568_v42 = vadd.f32 %v1617_v39, %v1616_v40  ;;  %6074 = vst [vmem:[#allocation35_spill] sm:$0xff] %v4651_v38  ;;  %v4654_v39 = vld [vmem:[#allocation8 + $0x8c] ss:$16 sps:$4 sm:$0xff]   ;;  %v4657_v40 = vld [vmem:[#allocation8 + $0x80] ss:$16 sps:$4 sm:$0xff]  }
 0x399   :  { %6075 = vst [vmem:[#allocation36_spill] sm:$0xff] %v4654_v39  ;;  %6076 = vst [vmem:[#allocation37_spill] sm:$0xff] %v4657_v40  ;;  %v4663_v45 = vld [vmem:[#allocation8 + $0xa4] ss:$16 sps:$4 sm:$0xff]  }
 0x39a   :  { %3333 = vtanh.f32 %v4568_v42  ;;  %6078 = vst [vmem:[#allocation39_spill] sm:$0xff] %v4663_v45 }
 0x3a4   :  { %v3334_v47 = vpop.eup %3333 }
 0x3a5   :  { %v1620_v48 = vmul.f32 %v3334_v47, %v1615_v46  ;;  %v4666_v46 = vld [vmem:[#allocation8 + $0xac] ss:$16 sps:$4 sm:$0xff]   ;;  %v4669_v47 = vld [vmem:[#allocation8 + $0xa0] ss:$16 sps:$4 sm:$0xff]  }
 0x3a6   :  { %6079 = vst [vmem:[#allocation40_spill] sm:$0xff] %v4666_v46  ;;  %6080 = vst [vmem:[#allocation41_spill] sm:$0xff] %v4669_v47 }
 0x3a7   :  { %v1621_v49 = vpack.c.bf16 %v1620_v48, %v1620_v48  ;;  %v4672_v48 = vld [vmem:[#allocation8 + $0xa8] ss:$16 sps:$4 sm:$0xff]  }
 0x3a8   :  { %6081 = vst [vmem:[#allocation42_spill] sm:$0xff] %v4672_v48 }
 0x3a9   :  { %1656 = vmatmul.mubr.bf16.vlgmr.msra.gmra.mrb[36].mxu0 %v1621_v49  ;;  %1697 = vmatmul.mubr.bf16.vlgmr.msra.gmra.mrb[36].mxu1 %v1621_v49 }
 0x3aa   :  { %1728 = vmatpush1.bf16.msra.mxu0 %v4395_v0  ;;  %1769 = vmatpush1.bf16.msra.mxu1 %v4398_v20 }
 0x3ab   :  { %1729 = vmatprep.subr.bf16.mxu0 %v4401_v34  ;;  %1770 = vmatprep.subr.bf16.mxu1 %v4404_v19 }
 0x3ac   :  { %1759 = vmatprep.mubr.bf16.mxu0 %v5943_v22  ;;  %1800 = vmatprep.mubr.bf16.mxu1 %v5943_v22 }
 0x3ae   :  { %1730 = vmatpush1.bf16.msra.mxu0 %v4409_v29  ;;  %1771 = vmatpush1.bf16.msra.mxu1 %v4412_v17 }
 0x3af   :  { %1731 = vmatprep.subr.bf16.mxu0 %v4415_v31  ;;  %1772 = vmatprep.subr.bf16.mxu1 %v4418_v53 }
 0x3b2   :  { %1732 = vmatpush1.bf16.msra.mxu0 %v4421_v27  ;;  %1773 = vmatpush1.bf16.msra.mxu1 %v4424_v35 }
 0x3b3   :  { %1733 = vmatprep.subr.bf16.mxu0 %v4427_v23  ;;  %1774 = vmatprep.subr.bf16.mxu1 %v4430_v32 }
 0x3b6   :  { %1734 = vmatpush1.bf16.msra.mxu0 %v4433_v28  ;;  %1775 = vmatpush1.bf16.msra.mxu1 %v4436_v26 }
 0x3b7   :  { %1735 = vmatprep.subr.bf16.mxu0 %v4439_v18  ;;  %1776 = vmatprep.subr.bf16.mxu1 %v6059_v33 }
 0x3ba   :  { %1736 = vmatpush1.bf16.msra.mxu0 %v6060_v50  ;;  %1777 = vmatpush1.bf16.msra.mxu1 %v6061_v51 }
 0x3bb   :  { %1737 = vmatprep.subr.bf16.mxu0 %v6062_v55  ;;  %1778 = vmatprep.subr.bf16.mxu1 %v6063_v56 }
 0x3be   :  { %1738 = vmatpush1.bf16.msra.mxu0 %v6064_v58  ;;  %1779 = vmatpush1.bf16.msra.mxu1 %v6065_v59 }
 0x3bf   :  { %1739 = vmatprep.subr.bf16.mxu0 %v6066_v60  ;;  %1780 = vmatprep.subr.bf16.mxu1 %v6067_v63 }
 0x3c2   :  { %1740 = vmatpush1.bf16.msra.mxu0 %v4469_v16  ;;  %1781 = vmatpush1.bf16.msra.mxu1 %v4472_v62 }
 0x3c3   :  { %1741 = vmatprep.subr.bf16.mxu0 %v4475_v44  ;;  %1782 = vmatprep.subr.bf16.mxu1 %v4478_v21 }
 0x3c6   :  { %1742 = vmatpush1.bf16.msra.mxu0 %v4481_v24  ;;  %1783 = vmatpush1.bf16.msra.mxu1 %v4484_v15 }
 0x3c7   :  { %1833 = vmatprep.subr.bf16.mxu0 %v4603_v1  ;;  %1874 = vmatprep.subr.bf16.mxu1 %v4606_v2 }
 0x3c9   :  { %1760 = vmatmul.mubr.bf16.vlgmr.msra.gmra.mrb[40].mxu0 %v1621_v49  ;;  %1801 = vmatmul.mubr.bf16.vlgmr.msra.gmra.mrb[40].mxu1 %v1621_v49  ;;  %v4675_v49 = vld [vmem:[#allocation8 + $0xc4] ss:$16 sps:$4 sm:$0xff]  }
 0x3ca   :  { %1834 = vmatpush1.bf16.msra.mxu0 %v4609_v3  ;;  %1875 = vmatpush1.bf16.msra.mxu1 %v4612_v4  ;;  %6082 = vst [vmem:[#allocation43_spill] sm:$0xff] %v4675_v49 }
 0x3cb   :  { %1835 = vmatprep.subr.bf16.mxu0 %v4615_v5  ;;  %1876 = vmatprep.subr.bf16.mxu1 %v4618_v30 }
 0x3ce   :  { %1836 = vmatpush1.bf16.msra.mxu0 %v4621_v6  ;;  %1877 = vmatpush1.bf16.msra.mxu1 %v4624_v8 }
 0x3cf   :  { %1837 = vmatprep.subr.bf16.mxu0 %v4627_v9  ;;  %1878 = vmatprep.subr.bf16.mxu1 %v4630_v10 }
 0x3d2   :  { %1838 = vmatpush1.bf16.msra.mxu0 %v4633_v11  ;;  %1879 = vmatpush1.bf16.msra.mxu1 %v4636_v12 }
 0x3d3   :  { %1839 = vmatprep.subr.bf16.mxu0 %v4639_v13  ;;  %1880 = vmatprep.subr.bf16.mxu1 %v4642_v14 }
 0x3d6   :  { %1840 = vmatpush1.bf16.msra.mxu0 %v4645_v36  ;;  %1881 = vmatpush1.bf16.msra.mxu1 %v4648_v37 }
 0x3d7   :  { %1841 = vmatprep.subr.bf16.mxu0 %v4651_v38  ;;  %1882 = vmatprep.subr.bf16.mxu1 %v4654_v39 }
 0x3da   :  { %1842 = vmatpush1.bf16.msra.mxu0 %v4657_v40  ;;  %1883 = vmatpush1.bf16.msra.mxu1 %v4660_v43  ;;  %v4678_v43 = vld [vmem:[#allocation8 + $0xcc] ss:$16 sps:$4 sm:$0xff]  }
 0x3db   :  { %1843 = vmatprep.subr.bf16.mxu0 %v4663_v45  ;;  %1884 = vmatprep.subr.bf16.mxu1 %v4666_v46  ;;  %6083 = vst [vmem:[#allocation68_spill] sm:$0xff] %v4678_v43  ;;  %v4681_v45 = vld [vmem:[#allocation8 + $0xc0] ss:$16 sps:$4 sm:$0xff]   ;;  %v4684_v46 = vld [vmem:[#allocation8 + $0xc8] ss:$16 sps:$4 sm:$0xff]  }
 0x3dc   :  { %6084 = vst [vmem:[#allocation69_spill] sm:$0xff] %v4681_v45  ;;  %6085 = vst [vmem:[#allocation70_spill] sm:$0xff] %v4684_v46 }
 0x3de   :  { %1844 = vmatpush1.bf16.msra.mxu0 %v4669_v47  ;;  %1885 = vmatpush1.bf16.msra.mxu1 %v4672_v48  ;;  %v4687_v47 = vld [vmem:[#allocation8 + $0xe4] ss:$16 sps:$4 sm:$0xff]   ;;  %v4690_v48 = vld [vmem:[#allocation8 + $0xec] ss:$16 sps:$4 sm:$0xff]  }
 0x3df   :  { %1845 = vmatprep.subr.bf16.mxu0 %v4675_v49  ;;  %1886 = vmatprep.subr.bf16.mxu1 %v4678_v43  ;;  %6086 = vst [vmem:[#allocation71_spill] sm:$0xff] %v4687_v47  ;;  %6087 = vst [vmem:[#allocation72_spill] sm:$0xff] %v4690_v48  ;;  %v4693_v49 = vld [vmem:[#allocation8 + $0xe0] ss:$16 sps:$4 sm:$0xff]   ;;  %v4696_v43 = vld [vmem:[#allocation8 + $0xe8] ss:$16 sps:$4 sm:$0xff]  }
 0x3e0   :  { %6088 = vst [vmem:[#allocation44_spill] sm:$0xff] %v4693_v49  ;;  %6089 = vst [vmem:[#allocation45_spill] sm:$0xff] %v4696_v43 }
 0x3e2   :  { %1846 = vmatpush1.bf16.msra.mxu0 %v4681_v45  ;;  %1887 = vmatpush1.bf16.msra.mxu1 %v4684_v46  ;;  %v4699_v45 = vld [vmem:[#allocation8 + $0x104] ss:$16 sps:$4 sm:$0xff]   ;;  %v4702_v46 = vld [vmem:[#allocation8 + $0x10c] ss:$16 sps:$4 sm:$0xff]  }
 0x3e3   :  { %1847 = vmatprep.subr.bf16.mxu0 %v4687_v47  ;;  %1888 = vmatprep.subr.bf16.mxu1 %v4690_v48  ;;  %6090 = vst [vmem:[#allocation46_spill] sm:$0xff] %v4699_v45  ;;  %6091 = vst [vmem:[#allocation47_spill] sm:$0xff] %v4702_v46  ;;  %v4705_v47 = vld [vmem:[#allocation8 + $0x100] ss:$16 sps:$4 sm:$0xff]   ;;  %v4708_v48 = vld [vmem:[#allocation8 + $0x108] ss:$16 sps:$4 sm:$0xff]  }
 0x3e4   :  { %6092 = vst [vmem:[#allocation48_spill] sm:$0xff] %v4705_v47  ;;  %6093 = vst [vmem:[#allocation49_spill] sm:$0xff] %v4708_v48 }
 0x3e6   :  { %1848 = vmatpush1.bf16.msra.mxu0 %v4693_v49  ;;  %1889 = vmatpush1.bf16.msra.mxu1 %v4696_v43  ;;  %v4711_v49 = vld [vmem:[#allocation8 + $0x124] ss:$16 sps:$4 sm:$0xff]   ;;  %v4714_v43 = vld [vmem:[#allocation8 + $0x12c] ss:$16 sps:$4 sm:$0xff]  }
 0x3e7   :  { %1849 = vmatprep.subr.bf16.mxu0 %v4699_v45  ;;  %1890 = vmatprep.subr.bf16.mxu1 %v4702_v46  ;;  %6094 = vst [vmem:[#allocation50_spill] sm:$0xff] %v4711_v49  ;;  %6095 = vst [vmem:[#allocation51_spill] sm:$0xff] %v4714_v43  ;;  %v4717_v45 = vld [vmem:[#allocation8 + $0x120] ss:$16 sps:$4 sm:$0xff]   ;;  %v4720_v46 = vld [vmem:[#allocation8 + $0x128] ss:$16 sps:$4 sm:$0xff]  }
 0x3e8   :  { %6096 = vst [vmem:[#allocation52_spill] sm:$0xff] %v4717_v45  ;;  %6097 = vst [vmem:[#allocation53_spill] sm:$0xff] %v4720_v46 }
 0x3ea   :  { %1850 = vmatpush1.bf16.msra.mxu0 %v4705_v47  ;;  %1891 = vmatpush1.bf16.msra.mxu1 %v4708_v48  ;;  %v4723_v47 = vld [vmem:[#allocation8 + $0x144] ss:$16 sps:$4 sm:$0xff]   ;;  %v4726_v48 = vld [vmem:[#allocation8 + $0x14c] ss:$16 sps:$4 sm:$0xff]  }
 0x3eb   :  { %1851 = vmatprep.subr.bf16.mxu0 %v4711_v49  ;;  %1892 = vmatprep.subr.bf16.mxu1 %v4714_v43  ;;  %6098 = vst [vmem:[#allocation54_spill] sm:$0xff] %v4723_v47  ;;  %6099 = vst [vmem:[#allocation55_spill] sm:$0xff] %v4726_v48  ;;  %v4729_v49 = vld [vmem:[#allocation8 + $0x140] ss:$16 sps:$4 sm:$0xff]   ;;  %v4732_v43 = vld [vmem:[#allocation8 + $0x148] ss:$16 sps:$4 sm:$0xff]  }
 0x3ec   :  { %6100 = vst [vmem:[#allocation56_spill] sm:$0xff] %v4729_v49  ;;  %6101 = vst [vmem:[#allocation57_spill] sm:$0xff] %v4732_v43 }
 0x3ee   :  { %1852 = vmatpush1.bf16.msra.mxu0 %v4717_v45  ;;  %1893 = vmatpush1.bf16.msra.mxu1 %v4720_v46  ;;  %v4735_v45 = vld [vmem:[#allocation8 + $0x164] ss:$16 sps:$4 sm:$0xff]   ;;  %v4738_v46 = vld [vmem:[#allocation8 + $0x16c] ss:$16 sps:$4 sm:$0xff]  }
 0x3ef   :  { %1853 = vmatprep.subr.bf16.mxu0 %v4723_v47  ;;  %1894 = vmatprep.subr.bf16.mxu1 %v4726_v48  ;;  %6102 = vst [vmem:[#allocation58_spill] sm:$0xff] %v4735_v45  ;;  %6103 = vst [vmem:[#allocation59_spill] sm:$0xff] %v4738_v46  ;;  %v4741_v47 = vld [vmem:[#allocation8 + $0x160] ss:$16 sps:$4 sm:$0xff]   ;;  %v4744_v48 = vld [vmem:[#allocation8 + $0x168] ss:$16 sps:$4 sm:$0xff]  }
 0x3f0   :  { %6104 = vst [vmem:[#allocation60_spill] sm:$0xff] %v4741_v47  ;;  %6105 = vst [vmem:[#allocation61_spill] sm:$0xff] %v4744_v48 }
 0x3f2   :  { %1854 = vmatpush1.bf16.msra.mxu0 %v4729_v49  ;;  %1895 = vmatpush1.bf16.msra.mxu1 %v4732_v43  ;;  %v4747_v49 = vld [vmem:[#allocation8 + $0x184] ss:$16 sps:$4 sm:$0xff]   ;;  %v4750_v43 = vld [vmem:[#allocation8 + $0x18c] ss:$16 sps:$4 sm:$0xff]  }
 0x3f3   :  { %1855 = vmatprep.subr.bf16.mxu0 %v4735_v45  ;;  %1896 = vmatprep.subr.bf16.mxu1 %v4738_v46  ;;  %6106 = vst [vmem:[#allocation62_spill] sm:$0xff] %v4747_v49  ;;  %6107 = vst [vmem:[#allocation63_spill] sm:$0xff] %v4750_v43  ;;  %v4753_v45 = vld [vmem:[#allocation8 + $0x180] ss:$16 sps:$4 sm:$0xff]   ;;  %v4756_v46 = vld [vmem:[#allocation8 + $0x188] ss:$16 sps:$4 sm:$0xff]  }
 0x3f4   :  { %6108 = vst [vmem:[#allocation64_spill] sm:$0xff] %v4753_v45  ;;  %6109 = vst [vmem:[#allocation65_spill] sm:$0xff] %v4756_v46 }
 0x3f6   :  { %1856 = vmatpush1.bf16.msra.mxu0 %v4741_v47  ;;  %1897 = vmatpush1.bf16.msra.mxu1 %v4744_v48  ;;  %v4759_v47 = vld [vmem:[#allocation8 + $0x1a4] ss:$16 sps:$4 sm:$0xff]   ;;  %v4762_v48 = vld [vmem:[#allocation8 + $0x1ac] ss:$16 sps:$4 sm:$0xff]  }
 0x3f7   :  { %1857 = vmatprep.subr.bf16.mxu0 %v4747_v49  ;;  %1898 = vmatprep.subr.bf16.mxu1 %v4750_v43  ;;  %6110 = vst [vmem:[#allocation66_spill] sm:$0xff] %v4759_v47  ;;  %6111 = vst [vmem:[#allocation67_spill] sm:$0xff] %v4762_v48  ;;  %v4765_v49 = vld [vmem:[#allocation8 + $0x1a0] ss:$16 sps:$4 sm:$0xff]   ;;  %v4768_v43 = vld [vmem:[#allocation8 + $0x1a8] ss:$16 sps:$4 sm:$0xff]  }
 0x3f8   :  { %6112 = vst [vmem:[#allocation13_spill] sm:$0xff] %v4765_v49  ;;  %6113 = vst [vmem:[#allocation14_spill] sm:$0xff] %v4768_v43 }
 0x3fa   :  { %1858 = vmatpush1.bf16.msra.mxu0 %v4753_v45  ;;  %1899 = vmatpush1.bf16.msra.mxu1 %v4756_v46  ;;  %v4771_v45 = vld [vmem:[#allocation8 + $0x1c4] ss:$16 sps:$4 sm:$0xff]   ;;  %v4774_v46 = vld [vmem:[#allocation8 + $0x1cc] ss:$16 sps:$4 sm:$0xff]  }
 0x3fb   :  { %1859 = vmatprep.subr.bf16.mxu0 %v4759_v47  ;;  %1900 = vmatprep.subr.bf16.mxu1 %v4762_v48  ;;  %6114 = vst [vmem:[#allocation19_spill] sm:$0xff] %v4771_v45  ;;  %6115 = vst [vmem:[#allocation73_spill] sm:$0xff] %v4774_v46  ;;  %v4777_v47 = vld [vmem:[#allocation8 + $0x1c0] ss:$16 sps:$4 sm:$0xff]   ;;  %v4780_v48 = vld [vmem:[#allocation8 + $0x1c8] ss:$16 sps:$4 sm:$0xff]  }
 0x3fc   :  { %6116 = vst [vmem:[#allocation74_spill] sm:$0xff] %v4777_v47  ;;  %6117 = vst [vmem:[#allocation75_spill] sm:$0xff] %v4780_v48 }
 0x3fe   :  { %1860 = vmatpush1.bf16.msra.mxu0 %v4765_v49  ;;  %1901 = vmatpush1.bf16.msra.mxu1 %v4768_v43  ;;  %v4783_v49 = vld [vmem:[#allocation8 + $0x1e4] ss:$16 sps:$4 sm:$0xff]   ;;  %v4786_v43 = vld [vmem:[#allocation8 + $0x1ec] ss:$16 sps:$4 sm:$0xff]  }
 0x3ff   :  { %1861 = vmatprep.subr.bf16.mxu0 %v4771_v45  ;;  %1902 = vmatprep.subr.bf16.mxu1 %v4774_v46  ;;  %6118 = vst [vmem:[#allocation76_spill] sm:$0xff] %v4783_v49  ;;  %6119 = vst [vmem:[#allocation20_spill] sm:$0xff] %v4786_v43  ;;  %v4789_v45 = vld [vmem:[#allocation8 + $0x1e0] ss:$16 sps:$4 sm:$0xff]   ;;  %v4792_v46 = vld [vmem:[#allocation8 + $0x1e8] ss:$16 sps:$4 sm:$0xff]  }
 0x400   :  { %6120 = vst [vmem:[#allocation21_spill] sm:$0xff] %v4789_v45  ;;  %6121 = vst [vmem:[#allocation22_spill] sm:$0xff] %v4792_v46 }
 0x402   :  { %1862 = vmatpush1.bf16.msra.mxu0 %v4777_v47  ;;  %1903 = vmatpush1.bf16.msra.mxu1 %v4780_v48 }
 0x403   :  { %1863 = vmatprep.subr.bf16.mxu0 %v4783_v49  ;;  %1904 = vmatprep.subr.bf16.mxu1 %v4786_v43 }
 0x406   :  { %1864 = vmatpush1.bf16.msra.mxu0 %v4789_v45  ;;  %1905 = vmatpush1.bf16.msra.mxu1 %v4792_v46 }
 0x407   :  { %1937 = vmatprep.subr.bf16.mxu0 %v6048_v52  ;;  %1978 = vmatprep.subr.bf16.mxu1 %v6049_v54 }
 0x47c   :  { %v1657_v48 = vpop.f32.mrb[36].mxu0  ;;  %v1698_v47 = vpop.f32.mrb[36].mxu1 }
 0x47d   :  { %v1658_v49 = vadd.f32 %v1657_v48, %v6050_v57  ;;  %v1659_v40 = vpop.f32.mrb[37].mxu0  ;;  %v1700_v39 = vpop.f32.mrb[37].mxu1  ;;  %v1699_v46 = vadd.f32 %v1698_v47, %v6052_v25 }
 0x47e   :  { %v1660_v43 = vadd.f32 %v1659_v40, %v6051_v61  ;;  %v1661_v38 = vpop.f32.mrb[38].mxu0  ;;  %v1702_v37 = vpop.f32.mrb[38].mxu1  ;;  %v1701_v52 = vadd.f32 %v1700_v39, %v6053_v7  ;;  %v6125_v7 = vld [vmem:[#allocation79_spill] sm:$0xff] }
 0x47f   :  { %v1705_v36 = vmul.f32 0.5, %v1658_v49  ;;  %v1662_v45 = vpop.f32.mrb[39].mxu0  ;;  %v1703_v14 = vpop.f32.mrb[39].mxu1 }
 0x480   :  { %v1709_v13 = vmul.f32 0.5, %v1660_v43  ;;  %v1714_v54 = vmul.f32 0.5, %v1701_v52  ;;  %v6124_v52 = vld [vmem:[#allocation78_spill] sm:$0xff] }
 0x481   :  { %3335 = vtanh.f32 %v1705_v36 }
 0x482   :  { %3337 = vtanh.f32 %v1709_v13 }
 0x483   :  { %3339 = vtanh.f32 %v1699_v46  ;;  %v6123_v46 = vld [vmem:[#allocation77_spill] sm:$0xff] }
 0x484   :  { %3341 = vtanh.f32 %v1714_v54 }
 0x48b   :  { %v3336_v12 = vpop.eup %3335 }
 0x48c   :  { %v3338_v48 = vpop.eup %3337  ;;  %v1707_v57 = vadd.f32 1.0, %v3336_v12 }
 0x48d   :  { %v1711_v11 = vadd.f32 1.0, %v3338_v48  ;;  %v3340_v38 = vpop.eup %3339 }
 0x48e   :  { %v1708_v40 = vmul.f32 0.5, %v1707_v57  ;;  %v3342_v13 = vpop.eup %3341 }
 0x48f   :  { %v1712_v37 = vmul.f32 0.5, %v1711_v11  ;;  %v1716_v36 = vadd.f32 1.0, %v3342_v13 }
 0x490   :  { %v1719_v49 = vmul.f32 %v3340_v38, %v1708_v40  ;;  %v6126_v40 = vld [vmem:[#allocation80_spill] sm:$0xff] }
 0x491   :  { %v1718_v14 = vmul.f32 %v1712_v37, %v4560_v41  ;;  %v1717_v57 = vmul.f32 0.5, %v1716_v36 }
 0x493   :  { %v4802_v43 = vadd.f32 %v1719_v49, %v1718_v14 }
 0x495   :  { %6122 = vst [vmem:[#allocation23_spill] sm:$0xff] %v4802_v43  ;;  %3343 = vtanh.f32 %v4802_v43 }
 0x49c   :  { %v1761_v45 = vpop.f32.mrb[40].mxu0  ;;  %v1802_v39 = vpop.f32.mrb[40].mxu1 }
 0x49d   :  { %v1809_v47 = vadd.f32 %v1761_v45, %v6123_v46  ;;  %v1811_v12 = vadd.f32 %v1802_v39, %v6124_v52  ;;  %v1763_v48 = vpop.f32.mrb[41].mxu0  ;;  %v1804_v54 = vpop.f32.mrb[41].mxu1 }
 0x49e   :  { %v1810_v11 = vadd.f32 %v1763_v48, %v6125_v7  ;;  %v1812_v38 = vadd.f32 %v1804_v54, %v6126_v40  ;;  %v1765_v41 = vpop.f32.mrb[42].mxu0  ;;  %v1806_v37 = vpop.f32.mrb[42].mxu1 }
 0x49f   :  { %v3344_v49 = vpop.eup %3343  ;;  %v1813_v14 = vmul.f32 0.5, %v1809_v47  ;;  %v1766_v43 = vpop.f32.mrb[43].mxu0  ;;  %v6158_v37 = vld [vmem:[#allocation55_spill] sm:$0xff] }
 0x4a0   :  { %v1807_v25 = vpop.f32.mrb[43].mxu1  ;;  %v1817_v13 = vmul.f32 0.5, %v1810_v11  ;;  %v1722_v61 = vmul.f32 %v3344_v49, %v1717_v57  ;;  %v1822_v39 = vmul.f32 0.5, %v1812_v38  ;;  %v6159_v49 = vld [vmem:[#allocation56_spill] sm:$0xff] }
 0x4a1   :  { %3345 = vtanh.f32 %v1813_v14  ;;  %v6160_v14 = vld [vmem:[#allocation57_spill] sm:$0xff] }
 0x4a2   :  { %3347 = vtanh.f32 %v1817_v13  ;;  %v1832_v45 = vpack.c.bf16 %v1722_v61, %v1722_v61  ;;  %v6161_v13 = vld [vmem:[#allocation58_spill] sm:$0xff] }
 0x4a3   :  { %3349 = vtanh.f32 %v1811_v12 }
 0x4a4   :  { %1865 = vmatprep.mubr.bf16.mxu0 %v1832_v45  ;;  %1906 = vmatprep.mubr.bf16.mxu1 %v1832_v45  ;;  %3351 = vtanh.f32 %v1822_v39  ;;  %v6162_v45 = vld [vmem:[#allocation59_spill] sm:$0xff]  ;;  %v6163_v39 = vld [vmem:[#allocation60_spill] sm:$0xff] }
 0x4ab   :  { %v3346_v36 = vpop.eup %3345 }
 0x4ac   :  { %v3348_v46 = vpop.eup %3347  ;;  %v1815_v7 = vadd.f32 1.0, %v3346_v36  ;;  %v6164_v36 = vld [vmem:[#allocation61_spill] sm:$0xff] }
 0x4ad   :  { %v1819_v52 = vadd.f32 1.0, %v3348_v46  ;;  %v3350_v54 = vpop.eup %3349  ;;  %v6165_v46 = vld [vmem:[#allocation62_spill] sm:$0xff] }
 0x4ae   :  { %v1816_v48 = vmul.f32 0.5, %v1815_v7  ;;  %v3352_v61 = vpop.eup %3351  ;;  %v6166_v7 = vld [vmem:[#allocation63_spill] sm:$0xff] }
 0x4af   :  { %v1820_v40 = vmul.f32 0.5, %v1819_v52  ;;  %v1824_v57 = vadd.f32 1.0, %v3352_v61  ;;  %v6167_v52 = vld [vmem:[#allocation64_spill] sm:$0xff]  ;;  %v6173_v61 = vld [vmem:[#allocation19_spill] sm:$0xff] }
 0x4b0   :  { %v1827_v47 = vmul.f32 %v3350_v54, %v1816_v48  ;;  %v6168_v48 = vld [vmem:[#allocation65_spill] sm:$0xff]  ;;  %v6169_v54 = vld [vmem:[#allocation66_spill] sm:$0xff] }
 0x4b1   :  { %v1826_v25 = vmul.f32 %v1820_v40, %v4568_v42  ;;  %v1825_v11 = vmul.f32 0.5, %v1824_v57  ;;  %v6148_v42 = vld [vmem:[#allocation45_spill] sm:$0xff]  ;;  %v6170_v40 = vld [vmem:[#allocation67_spill] sm:$0xff] }
 0x4b2   :  { %v6174_v57 = vld [vmem:[#allocation73_spill] sm:$0xff] }
 0x4b3   :  { %v4810_v43 = vadd.f32 %v1827_v47, %v1826_v25  ;;  %v6171_v47 = vld [vmem:[#allocation13_spill] sm:$0xff]  ;;  %v6172_v25 = vld [vmem:[#allocation14_spill] sm:$0xff] }
 0x4b5   :  { %3353 = vtanh.f32 %v4810_v43 }
 0x4bf   :  { %v3354_v12 = vpop.eup %3353 }
 0x4c0   :  { %v1830_v38 = vmul.f32 %v3354_v12, %v1825_v11  ;;  %v6175_v11 = vld [vmem:[#allocation74_spill] sm:$0xff]  ;;  %v6176_v12 = vld [vmem:[#allocation75_spill] sm:$0xff] }
 0x4c2   :  { %v1831_v41 = vpack.c.bf16 %v1830_v38, %v1830_v38  ;;  %v6177_v38 = vld [vmem:[#allocation76_spill] sm:$0xff] }
 0x4c4   :  { %1866 = vmatmul.mubr.bf16.vlgmr.msra.gmra.mrb[44].mxu0 %v1831_v41  ;;  %1907 = vmatmul.mubr.bf16.vlgmr.msra.gmra.mrb[44].mxu1 %v1831_v41 }
 0x4c5   :  { %1938 = vmatpush1.bf16.msra.mxu0 %v4395_v0  ;;  %1979 = vmatpush1.bf16.msra.mxu1 %v4398_v20  ;;  %v6127_v0 = vld [vmem:[#allocation29_spill] sm:$0xff]  ;;  %v6128_v20 = vld [vmem:[#allocation30_spill] sm:$0xff] }
 0x4c6   :  { %1939 = vmatprep.subr.bf16.mxu0 %v4401_v34  ;;  %1980 = vmatprep.subr.bf16.mxu1 %v4404_v19  ;;  %v6129_v34 = vld [vmem:[#allocation31_spill] sm:$0xff]  ;;  %v6130_v19 = vld [vmem:[#allocation32_spill] sm:$0xff] }
 0x4c7   :  { %1969 = vmatprep.mubr.bf16.mxu0 %v5943_v22  ;;  %2010 = vmatprep.mubr.bf16.mxu1 %v5943_v22 }
 0x4c9   :  { %1940 = vmatpush1.bf16.msra.mxu0 %v4409_v29  ;;  %1981 = vmatpush1.bf16.msra.mxu1 %v4412_v17  ;;  %v6131_v29 = vld [vmem:[#allocation33_spill] sm:$0xff]  ;;  %v6132_v17 = vld [vmem:[#allocation34_spill] sm:$0xff] }
 0x4ca   :  { %1941 = vmatprep.subr.bf16.mxu0 %v4415_v31  ;;  %1982 = vmatprep.subr.bf16.mxu1 %v4418_v53  ;;  %v6133_v31 = vld [vmem:[#allocation35_spill] sm:$0xff]  ;;  %v6134_v53 = vld [vmem:[#allocation36_spill] sm:$0xff] }
 0x4cd   :  { %1942 = vmatpush1.bf16.msra.mxu0 %v4421_v27  ;;  %1983 = vmatpush1.bf16.msra.mxu1 %v4424_v35  ;;  %v6135_v27 = vld [vmem:[#allocation37_spill] sm:$0xff]  ;;  %v6136_v35 = vld [vmem:[#allocation38_spill] sm:$0xff] }
 0x4ce   :  { %1943 = vmatprep.subr.bf16.mxu0 %v4427_v23  ;;  %1984 = vmatprep.subr.bf16.mxu1 %v4430_v32  ;;  %v6137_v23 = vld [vmem:[#allocation39_spill] sm:$0xff]  ;;  %v6138_v32 = vld [vmem:[#allocation40_spill] sm:$0xff] }
 0x4d1   :  { %1944 = vmatpush1.bf16.msra.mxu0 %v4433_v28  ;;  %1985 = vmatpush1.bf16.msra.mxu1 %v4436_v26  ;;  %v6139_v28 = vld [vmem:[#allocation41_spill] sm:$0xff]  ;;  %v6140_v26 = vld [vmem:[#allocation42_spill] sm:$0xff] }
 0x4d2   :  { %1945 = vmatprep.subr.bf16.mxu0 %v4439_v18  ;;  %1986 = vmatprep.subr.bf16.mxu1 %v6059_v33  ;;  %v6141_v18 = vld [vmem:[#allocation43_spill] sm:$0xff]  ;;  %v6149_v33 = vld [vmem:[#allocation46_spill] sm:$0xff] }
 0x4d5   :  { %1946 = vmatpush1.bf16.msra.mxu0 %v6060_v50  ;;  %1987 = vmatpush1.bf16.msra.mxu1 %v6061_v51  ;;  %v6150_v50 = vld [vmem:[#allocation47_spill] sm:$0xff]  ;;  %v6151_v51 = vld [vmem:[#allocation48_spill] sm:$0xff] }
 0x4d6   :  { %1947 = vmatprep.subr.bf16.mxu0 %v6062_v55  ;;  %1988 = vmatprep.subr.bf16.mxu1 %v6063_v56  ;;  %v6152_v55 = vld [vmem:[#allocation49_spill] sm:$0xff]  ;;  %v6153_v56 = vld [vmem:[#allocation50_spill] sm:$0xff] }
 0x4d9   :  { %1948 = vmatpush1.bf16.msra.mxu0 %v6064_v58  ;;  %1989 = vmatpush1.bf16.msra.mxu1 %v6065_v59  ;;  %v6154_v58 = vld [vmem:[#allocation51_spill] sm:$0xff]  ;;  %v6155_v59 = vld [vmem:[#allocation52_spill] sm:$0xff] }
 0x4da   :  { %1949 = vmatprep.subr.bf16.mxu0 %v6066_v60  ;;  %1990 = vmatprep.subr.bf16.mxu1 %v6067_v63  ;;  %v6156_v60 = vld [vmem:[#allocation53_spill] sm:$0xff]  ;;  %v6157_v63 = vld [vmem:[#allocation54_spill] sm:$0xff] }
 0x4dd   :  { %1950 = vmatpush1.bf16.msra.mxu0 %v4469_v16  ;;  %1991 = vmatpush1.bf16.msra.mxu1 %v4472_v62  ;;  %v6145_v16 = vld [vmem:[#allocation71_spill] sm:$0xff]  ;;  %v6146_v62 = vld [vmem:[#allocation72_spill] sm:$0xff] }
 0x4de   :  { %1951 = vmatprep.subr.bf16.mxu0 %v4475_v44  ;;  %1992 = vmatprep.subr.bf16.mxu1 %v4478_v21  ;;  %v6142_v21 = vld [vmem:[#allocation68_spill] sm:$0xff] }
 0x4df   :  { %v6147_v44 = vld [vmem:[#allocation44_spill] sm:$0xff] }
 0x4e1   :  { %1952 = vmatpush1.bf16.msra.mxu0 %v4481_v24  ;;  %1993 = vmatpush1.bf16.msra.mxu1 %v4484_v15  ;;  %v6143_v24 = vld [vmem:[#allocation69_spill] sm:$0xff]  ;;  %v6144_v15 = vld [vmem:[#allocation70_spill] sm:$0xff] }
 0x4e2   :  { %2043 = vmatprep.subr.bf16.mxu0 %v4603_v1  ;;  %2084 = vmatprep.subr.bf16.mxu1 %v4606_v2 }
 0x4e4   :  { %1970 = vmatmul.mubr.bf16.vlgmr.msra.gmra.mrb[48].mxu0 %v1831_v41  ;;  %2011 = vmatmul.mubr.bf16.vlgmr.msra.gmra.mrb[48].mxu1 %v1831_v41  ;;  %v6178_v41 = vld [vmem:[#allocation20_spill] sm:$0xff] }
 0x4e5   :  { %2044 = vmatpush1.bf16.msra.mxu0 %v4609_v3  ;;  %2085 = vmatpush1.bf16.msra.mxu1 %v4612_v4 }
 0x4e6   :  { %2045 = vmatprep.subr.bf16.mxu0 %v4615_v5  ;;  %2086 = vmatprep.subr.bf16.mxu1 %v4618_v30 }
 0x4e9   :  { %2046 = vmatpush1.bf16.msra.mxu0 %v4621_v6  ;;  %2087 = vmatpush1.bf16.msra.mxu1 %v4624_v8 }
 0x4ea   :  { %2047 = vmatprep.subr.bf16.mxu0 %v4627_v9  ;;  %2088 = vmatprep.subr.bf16.mxu1 %v4630_v10 }
 0x4ed   :  { %2048 = vmatpush1.bf16.msra.mxu0 %v6127_v0  ;;  %2089 = vmatpush1.bf16.msra.mxu1 %v6128_v20 }
 0x4ee   :  { %2049 = vmatprep.subr.bf16.mxu0 %v6129_v34  ;;  %2090 = vmatprep.subr.bf16.mxu1 %v6130_v19 }
 0x4f1   :  { %2050 = vmatpush1.bf16.msra.mxu0 %v6131_v29  ;;  %2091 = vmatpush1.bf16.msra.mxu1 %v6132_v17 }
 0x4f2   :  { %2051 = vmatprep.subr.bf16.mxu0 %v6133_v31  ;;  %2092 = vmatprep.subr.bf16.mxu1 %v6134_v53 }
 0x4f5   :  { %2052 = vmatpush1.bf16.msra.mxu0 %v6135_v27  ;;  %2093 = vmatpush1.bf16.msra.mxu1 %v6136_v35 }
 0x4f6   :  { %2053 = vmatprep.subr.bf16.mxu0 %v6137_v23  ;;  %2094 = vmatprep.subr.bf16.mxu1 %v6138_v32 }
 0x4f9   :  { %2054 = vmatpush1.bf16.msra.mxu0 %v6139_v28  ;;  %2095 = vmatpush1.bf16.msra.mxu1 %v6140_v26 }
 0x4fa   :  { %2055 = vmatprep.subr.bf16.mxu0 %v6141_v18  ;;  %2096 = vmatprep.subr.bf16.mxu1 %v6142_v21 }
 0x4fd   :  { %2056 = vmatpush1.bf16.msra.mxu0 %v6143_v24  ;;  %2097 = vmatpush1.bf16.msra.mxu1 %v6144_v15 }
 0x4fe   :  { %2057 = vmatprep.subr.bf16.mxu0 %v6145_v16  ;;  %2098 = vmatprep.subr.bf16.mxu1 %v6146_v62 }
 0x501   :  { %2058 = vmatpush1.bf16.msra.mxu0 %v6147_v44  ;;  %2099 = vmatpush1.bf16.msra.mxu1 %v6148_v42 }
 0x502   :  { %2059 = vmatprep.subr.bf16.mxu0 %v6149_v33  ;;  %2100 = vmatprep.subr.bf16.mxu1 %v6150_v50 }
 0x505   :  { %2060 = vmatpush1.bf16.msra.mxu0 %v6151_v51  ;;  %2101 = vmatpush1.bf16.msra.mxu1 %v6152_v55 }
 0x506   :  { %2061 = vmatprep.subr.bf16.mxu0 %v6153_v56  ;;  %2102 = vmatprep.subr.bf16.mxu1 %v6154_v58 }
 0x509   :  { %2062 = vmatpush1.bf16.msra.mxu0 %v6155_v59  ;;  %2103 = vmatpush1.bf16.msra.mxu1 %v6156_v60 }
 0x50a   :  { %2063 = vmatprep.subr.bf16.mxu0 %v6157_v63  ;;  %2104 = vmatprep.subr.bf16.mxu1 %v6158_v37 }
 0x50d   :  { %2064 = vmatpush1.bf16.msra.mxu0 %v6159_v49  ;;  %2105 = vmatpush1.bf16.msra.mxu1 %v6160_v14 }
 0x50e   :  { %2065 = vmatprep.subr.bf16.mxu0 %v6161_v13  ;;  %2106 = vmatprep.subr.bf16.mxu1 %v6162_v45 }
 0x511   :  { %2066 = vmatpush1.bf16.msra.mxu0 %v6163_v39  ;;  %2107 = vmatpush1.bf16.msra.mxu1 %v6164_v36 }
 0x512   :  { %2067 = vmatprep.subr.bf16.mxu0 %v6165_v46  ;;  %2108 = vmatprep.subr.bf16.mxu1 %v6166_v7 }
 0x515   :  { %2068 = vmatpush1.bf16.msra.mxu0 %v6167_v52  ;;  %2109 = vmatpush1.bf16.msra.mxu1 %v6168_v48  ;;  %v6179_v48 = vld [vmem:[#allocation21_spill] sm:$0xff]  ;;  %v6184_v52 = vld [vmem:[#allocation16_spill] sm:$0xff] }
 0x516   :  { %2069 = vmatprep.subr.bf16.mxu0 %v6169_v54  ;;  %2110 = vmatprep.subr.bf16.mxu1 %v6170_v40  ;;  %v6180_v54 = vld [vmem:[#allocation22_spill] sm:$0xff] }
 0x517   :  { %v4909_v40 = vld [vmem:[#allocation6 + $0x4] ss:$16 sps:$4 sm:$0xff]  }
 0x518   :  { %6181 = vst [vmem:[#allocation24_spill] sm:$0xff] %v4909_v40 }
 0x519   :  { %2070 = vmatpush1.bf16.msra.mxu0 %v6171_v47  ;;  %2111 = vmatpush1.bf16.msra.mxu1 %v6172_v25  ;;  %v4912_v25 = vld [vmem:[#allocation6 + $0xc] ss:$16 sps:$4 sm:$0xff]  }
 0x51a   :  { %2071 = vmatprep.subr.bf16.mxu0 %v6173_v61  ;;  %2112 = vmatprep.subr.bf16.mxu1 %v6174_v57  ;;  %6182 = vst [vmem:[#allocation25_spill] sm:$0xff] %v4912_v25  ;;  %v6183_v61 = vld [vmem:[#allocation15_spill] sm:$0xff] }
 0x51d   :  { %2072 = vmatpush1.bf16.msra.mxu0 %v6175_v11  ;;  %2113 = vmatpush1.bf16.msra.mxu1 %v6176_v12 }
 0x51e   :  { %2073 = vmatprep.subr.bf16.mxu0 %v6177_v38  ;;  %2114 = vmatprep.subr.bf16.mxu1 %v6178_v41 }
 0x521   :  { %2074 = vmatpush1.bf16.msra.mxu0 %v6179_v48  ;;  %2115 = vmatpush1.bf16.msra.mxu1 %v6180_v54 }
 0x522   :  { %2147 = vmatprep.subr.bf16.mxu0 %v4909_v40  ;;  %2188 = vmatprep.subr.bf16.mxu1 %v4912_v25  ;;  %v6185_v40 = vld [vmem:[#allocation17_spill] sm:$0xff]  ;;  %v6186_v25 = vld [vmem:[#allocation18_spill] sm:$0xff] }
 0x597   :  { %v1867_v57 = vpop.f32.mrb[44].mxu0  ;;  %v1908_v11 = vpop.f32.mrb[44].mxu1 }
 0x598   :  { %v1868_v12 = vadd.f32 %v1867_v57, %v6183_v61  ;;  %v1869_v47 = vpop.f32.mrb[45].mxu0  ;;  %v1910_v38 = vpop.f32.mrb[45].mxu1  ;;  %v1909_v45 = vadd.f32 %v1908_v11, %v6185_v40  ;;  %v6191_v40 = vld [vmem:[#allocation83_spill] sm:$0xff] }
 0x599   :  { %v1870_v41 = vadd.f32 %v1869_v47, %v6184_v52  ;;  %v1871_v7 = vpop.f32.mrb[46].mxu0  ;;  %v1912_v48 = vpop.f32.mrb[46].mxu1  ;;  %v1911_v13 = vadd.f32 %v1910_v38, %v6186_v25  ;;  %v6190_v25 = vld [vmem:[#allocation82_spill] sm:$0xff] }
 0x59a   :  { %v1915_v46 = vmul.f32 0.5, %v1868_v12  ;;  %v1872_v54 = vpop.f32.mrb[47].mxu0  ;;  %v1913_v36 = vpop.f32.mrb[47].mxu1 }
 0x59b   :  { %v1919_v39 = vmul.f32 0.5, %v1870_v41  ;;  %v1924_v14 = vmul.f32 0.5, %v1911_v13  ;;  %v6187_v54 = vld [vmem:[#allocation23_spill] sm:$0xff]  ;;  %v6189_v13 = vld [vmem:[#allocation81_spill] sm:$0xff] }
 0x59c   :  { %3355 = vtanh.f32 %v1915_v46 }
 0x59d   :  { %3357 = vtanh.f32 %v1919_v39 }
 0x59e   :  { %3359 = vtanh.f32 %v1909_v45 }
 0x59f   :  { %3361 = vtanh.f32 %v1924_v14 }
 0x5a6   :  { %v3356_v49 = vpop.eup %3355 }
 0x5a7   :  { %v3358_v57 = vpop.eup %3357  ;;  %v1917_v61 = vadd.f32 1.0, %v3356_v49 }
 0x5a8   :  { %v1921_v37 = vadd.f32 1.0, %v3358_v57  ;;  %v3360_v7 = vpop.eup %3359 }
 0x5a9   :  { %v1918_v47 = vmul.f32 0.5, %v1917_v61  ;;  %v3362_v39 = vpop.eup %3361 }
 0x5aa   :  { %v1922_v48 = vmul.f32 0.5, %v1921_v37  ;;  %v1926_v45 = vadd.f32 1.0, %v3362_v39 }
 0x5ab   :  { %v1929_v12 = vmul.f32 %v3360_v7, %v1918_v47  ;;  %v6192_v47 = vld [vmem:[#allocation84_spill] sm:$0xff] }
 0x5ac   :  { %v1928_v36 = vmul.f32 %v1922_v48, %v6187_v54  ;;  %v1927_v61 = vmul.f32 0.5, %v1926_v45 }
 0x5ae   :  { %v4920_v41 = vadd.f32 %v1929_v12, %v1928_v36 }
 0x5b0   :  { %6188 = vst [vmem:[#allocation26_spill] sm:$0xff] %v4920_v41  ;;  %3363 = vtanh.f32 %v4920_v41 }
 0x5b7   :  { %v1971_v46 = vpop.f32.mrb[48].mxu0  ;;  %v2012_v11 = vpop.f32.mrb[48].mxu1 }
 0x5b8   :  { %v2019_v38 = vadd.f32 %v1971_v46, %v6189_v13  ;;  %v2021_v49 = vadd.f32 %v2012_v11, %v6190_v25  ;;  %v1973_v57 = vpop.f32.mrb[49].mxu0  ;;  %v2014_v14 = vpop.f32.mrb[49].mxu1 }
 0x5b9   :  { %v2020_v37 = vadd.f32 %v1973_v57, %v6191_v40  ;;  %v2022_v7 = vadd.f32 %v2014_v14, %v6192_v47  ;;  %v1975_v48 = vpop.f32.mrb[50].mxu0  ;;  %v2016_v12 = vpop.f32.mrb[50].mxu1 }
 0x5ba   :  { %v3364_v54 = vpop.eup %3363  ;;  %v2023_v36 = vmul.f32 0.5, %v2019_v38  ;;  %v1976_v41 = vpop.f32.mrb[51].mxu0  ;;  %v4935_v12 = vld [vmem:[#allocation6] ss:$16 sps:$4 sm:$0xff]  }
 0x5bb   :  { %v2017_v52 = vpop.f32.mrb[51].mxu1  ;;  %v2027_v39 = vmul.f32 0.5, %v2020_v37  ;;  %v1932_v63 = vmul.f32 %v3364_v54, %v1927_v61  ;;  %v2032_v25 = vmul.f32 0.5, %v2022_v7  ;;  %v4941_v54 = vld [vmem:[#allocation6 + $0x24] ss:$16 sps:$4 sm:$0xff]  }
 0x5bc   :  { %3365 = vtanh.f32 %v2023_v36  ;;  %v4944_v36 = vld [vmem:[#allocation6 + $0x2c] ss:$16 sps:$4 sm:$0xff]  }
 0x5bd   :  { %3367 = vtanh.f32 %v2027_v39  ;;  %v2042_v46 = vpack.c.bf16 %v1932_v63, %v1932_v63  ;;  %v4949_v39 = vld [vmem:[#allocation6 + $0x20] ss:$16 sps:$4 sm:$0xff]  }
 0x5be   :  { %3369 = vtanh.f32 %v2021_v49 }
 0x5bf   :  { %2075 = vmatprep.mubr.bf16.mxu0 %v2042_v46  ;;  %2116 = vmatprep.mubr.bf16.mxu1 %v2042_v46  ;;  %3371 = vtanh.f32 %v2032_v25  ;;  %v4952_v46 = vld [vmem:[#allocation6 + $0x28] ss:$16 sps:$4 sm:$0xff]   ;;  %v4955_v25 = vld [vmem:[#allocation6 + $0x44] ss:$16 sps:$4 sm:$0xff]  }
 0x5c6   :  { %v3366_v45 = vpop.eup %3365 }
 0x5c7   :  { %v3368_v11 = vpop.eup %3367  ;;  %v2025_v40 = vadd.f32 1.0, %v3366_v45  ;;  %v4958_v45 = vld [vmem:[#allocation6 + $0x4c] ss:$16 sps:$4 sm:$0xff]  }
 0x5c8   :  { %v2029_v13 = vadd.f32 1.0, %v3368_v11  ;;  %v3370_v14 = vpop.eup %3369  ;;  %v4961_v11 = vld [vmem:[#allocation6 + $0x40] ss:$16 sps:$4 sm:$0xff]  }
 0x5c9   :  { %v2026_v57 = vmul.f32 0.5, %v2025_v40  ;;  %v3372_v63 = vpop.eup %3371  ;;  %v4964_v40 = vld [vmem:[#allocation6 + $0x48] ss:$16 sps:$4 sm:$0xff]  }
 0x5ca   :  { %v2030_v47 = vmul.f32 0.5, %v2029_v13  ;;  %v2034_v61 = vadd.f32 1.0, %v3372_v63  ;;  %v4967_v13 = vld [vmem:[#allocation6 + $0x64] ss:$16 sps:$4 sm:$0xff]   ;;  %v4985_v63 = vld [vmem:[#allocation6 + $0x80] ss:$16 sps:$4 sm:$0xff]  }
 0x5cb   :  { %v2037_v38 = vmul.f32 %v3370_v14, %v2026_v57  ;;  %v4970_v57 = vld [vmem:[#allocation6 + $0x6c] ss:$16 sps:$4 sm:$0xff]   ;;  %v4973_v14 = vld [vmem:[#allocation6 + $0x60] ss:$16 sps:$4 sm:$0xff]   ;;  %6194 = vst [vmem:[#allocation28_spill] sm:$0xff] %v4985_v63 }
 0x5cc   :  { %v2036_v52 = vmul.f32 %v2030_v47, %v4810_v43  ;;  %v2035_v37 = vmul.f32 0.5, %v2034_v61  ;;  %v4938_v43 = vld [vmem:[#allocation6 + $0x8] ss:$16 sps:$4 sm:$0xff]  }
 0x5cd   :  { %v4976_v47 = vld [vmem:[#allocation6 + $0x68] ss:$16 sps:$4 sm:$0xff]  }
 0x5ce   :  { %v4928_v41 = vadd.f32 %v2037_v38, %v2036_v52  ;;  %v4979_v38 = vld [vmem:[#allocation6 + $0x84] ss:$16 sps:$4 sm:$0xff]   ;;  %v4982_v52 = vld [vmem:[#allocation6 + $0x8c] ss:$16 sps:$4 sm:$0xff]   ;;  %v4988_v61 = vld [vmem:[#allocation6 + $0x88] ss:$16 sps:$4 sm:$0xff]  }
 0x5cf   :  { %6193 = vst [vmem:[#allocation27_spill] sm:$0xff] %v4982_v52  ;;  %6195 = vst [vmem:[#allocation77_spill] sm:$0xff] %v4988_v61 }
 0x5d0   :  { %3373 = vtanh.f32 %v4928_v41 }
 0x5da   :  { %v3374_v49 = vpop.eup %3373 }
 0x5db   :  { %v2040_v7 = vmul.f32 %v3374_v49, %v2035_v37  ;;  %v4991_v37 = vld [vmem:[#allocation6 + $0xa4] ss:$16 sps:$4 sm:$0xff]   ;;  %v4994_v49 = vld [vmem:[#allocation6 + $0xac] ss:$16 sps:$4 sm:$0xff]  }
 0x5dc   :  { %6196 = vst [vmem:[#allocation78_spill] sm:$0xff] %v4991_v37  ;;  %6197 = vst [vmem:[#allocation79_spill] sm:$0xff] %v4994_v49 }
 0x5dd   :  { %v4931_v48 = vpack.c.bf16 %v2040_v7, %v2040_v7  ;;  %v4997_v7 = vld [vmem:[#allocation6 + $0xa0] ss:$16 sps:$4 sm:$0xff]  }
 0x5de   :  { %6198 = vst [vmem:[#allocation80_spill] sm:$0xff] %v4997_v7 }
 0x5df   :  { %2076 = vmatmul.mubr.bf16.vlgmr.msra.gmra.mrb[52].mxu0 %v4931_v48  ;;  %2117 = vmatmul.mubr.bf16.vlgmr.msra.gmra.mrb[52].mxu1 %v4931_v48 }
 0x5e0   :  { %2148 = vmatpush1.bf16.msra.mxu0 %v4935_v12  ;;  %2189 = vmatpush1.bf16.msra.mxu1 %v4938_v43 }
 0x5e1   :  { %2149 = vmatprep.subr.bf16.mxu0 %v4941_v54  ;;  %2190 = vmatprep.subr.bf16.mxu1 %v4944_v36 }
 0x5e2   :  { %2179 = vmatprep.mubr.bf16.mxu0 %v5943_v22  ;;  %2220 = vmatprep.mubr.bf16.mxu1 %v5943_v22 }
 0x5e4   :  { %2150 = vmatpush1.bf16.msra.mxu0 %v4949_v39  ;;  %2191 = vmatpush1.bf16.msra.mxu1 %v4952_v46 }
 0x5e5   :  { %2151 = vmatprep.subr.bf16.mxu0 %v4955_v25  ;;  %2192 = vmatprep.subr.bf16.mxu1 %v4958_v45 }
 0x5e8   :  { %2152 = vmatpush1.bf16.msra.mxu0 %v4961_v11  ;;  %2193 = vmatpush1.bf16.msra.mxu1 %v4964_v40 }
 0x5e9   :  { %2153 = vmatprep.subr.bf16.mxu0 %v4967_v13  ;;  %2194 = vmatprep.subr.bf16.mxu1 %v4970_v57 }
 0x5ec   :  { %2154 = vmatpush1.bf16.msra.mxu0 %v4973_v14  ;;  %2195 = vmatpush1.bf16.msra.mxu1 %v4976_v47 }
 0x5ed   :  { %2155 = vmatprep.subr.bf16.mxu0 %v4979_v38  ;;  %2196 = vmatprep.subr.bf16.mxu1 %v4982_v52  ;;  %v5000_v52 = vld [vmem:[#allocation6 + $0xa8] ss:$16 sps:$4 sm:$0xff]  }
 0x5ee   :  { %6199 = vst [vmem:[#allocation29_spill] sm:$0xff] %v5000_v52 }
 0x5f0   :  { %2156 = vmatpush1.bf16.msra.mxu0 %v4985_v63  ;;  %2197 = vmatpush1.bf16.msra.mxu1 %v4988_v61  ;;  %v5003_v63 = vld [vmem:[#allocation6 + $0xc4] ss:$16 sps:$4 sm:$0xff]   ;;  %v5006_v61 = vld [vmem:[#allocation6 + $0xcc] ss:$16 sps:$4 sm:$0xff]  }
 0x5f1   :  { %2157 = vmatprep.subr.bf16.mxu0 %v4991_v37  ;;  %2198 = vmatprep.subr.bf16.mxu1 %v4994_v49  ;;  %6200 = vst [vmem:[#allocation30_spill] sm:$0xff] %v5003_v63  ;;  %6201 = vst [vmem:[#allocation31_spill] sm:$0xff] %v5006_v61  ;;  %v5009_v37 = vld [vmem:[#allocation6 + $0xc0] ss:$16 sps:$4 sm:$0xff]   ;;  %v5012_v49 = vld [vmem:[#allocation6 + $0xc8] ss:$16 sps:$4 sm:$0xff]  }
 0x5f4   :  { %2158 = vmatpush1.bf16.msra.mxu0 %v4997_v7  ;;  %2199 = vmatpush1.bf16.msra.mxu1 %v5000_v52  ;;  %v5015_v7 = vld [vmem:[#allocation6 + $0xe4] ss:$16 sps:$4 sm:$0xff]   ;;  %v5018_v52 = vld [vmem:[#allocation6 + $0xec] ss:$16 sps:$4 sm:$0xff]  }
 0x5f5   :  { %2159 = vmatprep.subr.bf16.mxu0 %v5003_v63  ;;  %2200 = vmatprep.subr.bf16.mxu1 %v5006_v61  ;;  %v5021_v63 = vld [vmem:[#allocation6 + $0xe0] ss:$16 sps:$4 sm:$0xff]   ;;  %v5024_v61 = vld [vmem:[#allocation6 + $0xe8] ss:$16 sps:$4 sm:$0xff]  }
 0x5f8   :  { %2160 = vmatpush1.bf16.msra.mxu0 %v5009_v37  ;;  %2201 = vmatpush1.bf16.msra.mxu1 %v5012_v49 }
 0x5f9   :  { %2161 = vmatprep.subr.bf16.mxu0 %v5015_v7  ;;  %2202 = vmatprep.subr.bf16.mxu1 %v5018_v52 }
 0x5fc   :  { %2162 = vmatpush1.bf16.msra.mxu0 %v5021_v63  ;;  %2203 = vmatpush1.bf16.msra.mxu1 %v5024_v61 }
 0x5fd   :  { %2253 = vmatprep.subr.bf16.mxu0 %v4603_v1  ;;  %2294 = vmatprep.subr.bf16.mxu1 %v4606_v2  ;;  %v6202_v1 = vld [vmem:[#allocation54_spill] sm:$0xff]  ;;  %v6203_v2 = vld [vmem:[#allocation55_spill] sm:$0xff] }
 0x5ff   :  { %2180 = vmatmul.mubr.bf16.vlgmr.msra.gmra.mrb[56].mxu0 %v4931_v48  ;;  %2221 = vmatmul.mubr.bf16.vlgmr.msra.gmra.mrb[56].mxu1 %v4931_v48  ;;  %v6230_v48 = vld [vmem:[#allocation17_spill] sm:$0xff] }
 0x600   :  { %2254 = vmatpush1.bf16.msra.mxu0 %v4609_v3  ;;  %2295 = vmatpush1.bf16.msra.mxu1 %v4612_v4  ;;  %v6204_v3 = vld [vmem:[#allocation56_spill] sm:$0xff]  ;;  %v6205_v4 = vld [vmem:[#allocation57_spill] sm:$0xff] }
 0x601   :  { %2255 = vmatprep.subr.bf16.mxu0 %v4615_v5  ;;  %2296 = vmatprep.subr.bf16.mxu1 %v4618_v30  ;;  %v6206_v5 = vld [vmem:[#allocation58_spill] sm:$0xff]  ;;  %v6207_v30 = vld [vmem:[#allocation59_spill] sm:$0xff] }
 0x604   :  { %2256 = vmatpush1.bf16.msra.mxu0 %v4621_v6  ;;  %2297 = vmatpush1.bf16.msra.mxu1 %v4624_v8  ;;  %v6208_v6 = vld [vmem:[#allocation60_spill] sm:$0xff]  ;;  %v6209_v8 = vld [vmem:[#allocation61_spill] sm:$0xff] }
 0x605   :  { %2257 = vmatprep.subr.bf16.mxu0 %v4627_v9  ;;  %2298 = vmatprep.subr.bf16.mxu1 %v4630_v10  ;;  %v6210_v9 = vld [vmem:[#allocation62_spill] sm:$0xff]  ;;  %v6211_v10 = vld [vmem:[#allocation63_spill] sm:$0xff] }
 0x608   :  { %2258 = vmatpush1.bf16.msra.mxu0 %v6127_v0  ;;  %2299 = vmatpush1.bf16.msra.mxu1 %v6128_v20  ;;  %v6212_v0 = vld [vmem:[#allocation64_spill] sm:$0xff]  ;;  %v6213_v20 = vld [vmem:[#allocation65_spill] sm:$0xff] }
 0x609   :  { %2259 = vmatprep.subr.bf16.mxu0 %v6129_v34  ;;  %2300 = vmatprep.subr.bf16.mxu1 %v6130_v19  ;;  %v6214_v34 = vld [vmem:[#allocation66_spill] sm:$0xff]  ;;  %v6215_v19 = vld [vmem:[#allocation67_spill] sm:$0xff] }
 0x60c   :  { %2260 = vmatpush1.bf16.msra.mxu0 %v6131_v29  ;;  %2301 = vmatpush1.bf16.msra.mxu1 %v6132_v17  ;;  %v6216_v29 = vld [vmem:[#allocation13_spill] sm:$0xff]  ;;  %v6217_v17 = vld [vmem:[#allocation14_spill] sm:$0xff] }
 0x60d   :  { %2261 = vmatprep.subr.bf16.mxu0 %v6133_v31  ;;  %2302 = vmatprep.subr.bf16.mxu1 %v6134_v53  ;;  %v6218_v31 = vld [vmem:[#allocation19_spill] sm:$0xff]  ;;  %v6219_v53 = vld [vmem:[#allocation73_spill] sm:$0xff] }
 0x610   :  { %2262 = vmatpush1.bf16.msra.mxu0 %v6135_v27  ;;  %2303 = vmatpush1.bf16.msra.mxu1 %v6136_v35  ;;  %v6220_v27 = vld [vmem:[#allocation74_spill] sm:$0xff]  ;;  %v6221_v35 = vld [vmem:[#allocation75_spill] sm:$0xff] }
 0x611   :  { %2263 = vmatprep.subr.bf16.mxu0 %v6137_v23  ;;  %2304 = vmatprep.subr.bf16.mxu1 %v6138_v32  ;;  %v6222_v23 = vld [vmem:[#allocation76_spill] sm:$0xff] }
 0x612   :  { %v6223_v32 = vld [vmem:[#allocation20_spill] sm:$0xff] }
 0x614   :  { %2264 = vmatpush1.bf16.msra.mxu0 %v6139_v28  ;;  %2305 = vmatpush1.bf16.msra.mxu1 %v6140_v26  ;;  %v6224_v28 = vld [vmem:[#allocation21_spill] sm:$0xff]  ;;  %v6225_v26 = vld [vmem:[#allocation22_spill] sm:$0xff] }
 0x615   :  { %2265 = vmatprep.subr.bf16.mxu0 %v6141_v18  ;;  %2306 = vmatprep.subr.bf16.mxu1 %v6142_v21  ;;  %v6226_v18 = vld [vmem:[#allocation24_spill] sm:$0xff]  ;;  %v6227_v21 = vld [vmem:[#allocation25_spill] sm:$0xff] }
 0x618   :  { %2266 = vmatpush1.bf16.msra.mxu0 %v6143_v24  ;;  %2307 = vmatpush1.bf16.msra.mxu1 %v6144_v15 }
 0x619   :  { %2267 = vmatprep.subr.bf16.mxu0 %v6145_v16  ;;  %2308 = vmatprep.subr.bf16.mxu1 %v6146_v62  ;;  %v6228_v16 = vld [vmem:[#allocation15_spill] sm:$0xff] }
 0x61c   :  { %2268 = vmatpush1.bf16.msra.mxu0 %v6147_v44  ;;  %2309 = vmatpush1.bf16.msra.mxu1 %v6148_v42 }
 0x61d   :  { %2269 = vmatprep.subr.bf16.mxu0 %v6149_v33  ;;  %2310 = vmatprep.subr.bf16.mxu1 %v6150_v50  ;;  %v6229_v33 = vld [vmem:[#allocation16_spill] sm:$0xff] }
 0x620   :  { %2270 = vmatpush1.bf16.msra.mxu0 %v6151_v51  ;;  %2311 = vmatpush1.bf16.msra.mxu1 %v6152_v55 }
 0x621   :  { %2271 = vmatprep.subr.bf16.mxu0 %v6153_v56  ;;  %2312 = vmatprep.subr.bf16.mxu1 %v6154_v58 }
 0x624   :  { %2272 = vmatpush1.bf16.msra.mxu0 %v6155_v59  ;;  %2313 = vmatpush1.bf16.msra.mxu1 %v6156_v60 }
 0x625   :  { %2273 = vmatprep.subr.bf16.mxu0 %v6202_v1  ;;  %2314 = vmatprep.subr.bf16.mxu1 %v6203_v2  ;;  %v6231_v2 = vld [vmem:[#allocation18_spill] sm:$0xff] }
 0x628   :  { %2274 = vmatpush1.bf16.msra.mxu0 %v6204_v3  ;;  %2315 = vmatpush1.bf16.msra.mxu1 %v6205_v4 }
 0x629   :  { %2275 = vmatprep.subr.bf16.mxu0 %v6206_v5  ;;  %2316 = vmatprep.subr.bf16.mxu1 %v6207_v30 }
 0x62c   :  { %2276 = vmatpush1.bf16.msra.mxu0 %v6208_v6  ;;  %2317 = vmatpush1.bf16.msra.mxu1 %v6209_v8 }
 0x62d   :  { %2277 = vmatprep.subr.bf16.mxu0 %v6210_v9  ;;  %2318 = vmatprep.subr.bf16.mxu1 %v6211_v10 }
 0x630   :  { %2278 = vmatpush1.bf16.msra.mxu0 %v6212_v0  ;;  %2319 = vmatpush1.bf16.msra.mxu1 %v6213_v20 }
 0x631   :  { %2279 = vmatprep.subr.bf16.mxu0 %v6214_v34  ;;  %2320 = vmatprep.subr.bf16.mxu1 %v6215_v19  ;;  %v6232_v34 = vld [vmem:[#allocation26_spill] sm:$0xff] }
 0x634   :  { %2280 = vmatpush1.bf16.msra.mxu0 %v6216_v29  ;;  %2321 = vmatpush1.bf16.msra.mxu1 %v6217_v17 }
 0x635   :  { %2281 = vmatprep.subr.bf16.mxu0 %v6218_v31  ;;  %2322 = vmatprep.subr.bf16.mxu1 %v6219_v53 }
 0x638   :  { %2282 = vmatpush1.bf16.msra.mxu0 %v6220_v27  ;;  %2323 = vmatpush1.bf16.msra.mxu1 %v6221_v35  ;;  %v6233_v35 = vld [vmem:[#allocation85_spill] sm:$0xff] }
 0x639   :  { %2283 = vmatprep.subr.bf16.mxu0 %v6222_v23  ;;  %2324 = vmatprep.subr.bf16.mxu1 %v6223_v32  ;;  %v6234_v32 = vld [vmem:[#allocation86_spill] sm:$0xff] }
 0x63c   :  { %2284 = vmatpush1.bf16.msra.mxu0 %v6224_v28  ;;  %2325 = vmatpush1.bf16.msra.mxu1 %v6225_v26 }
 0x63d   :  { %2357 = vmatprep.subr.bf16.mxu0 %v6226_v18  ;;  %2398 = vmatprep.subr.bf16.mxu1 %v6227_v21 }
 0x6b2   :  { %v2077_v24 = vpop.f32.mrb[52].mxu0  ;;  %v2118_v15 = vpop.f32.mrb[52].mxu1 }
 0x6b3   :  { %v2078_v62 = vadd.f32 %v2077_v24, %v6228_v16  ;;  %v2079_v44 = vpop.f32.mrb[53].mxu0  ;;  %v2120_v42 = vpop.f32.mrb[53].mxu1  ;;  %v2119_v1 = vadd.f32 %v2118_v15, %v6230_v48 }
 0x6b4   :  { %v2080_v50 = vadd.f32 %v2079_v44, %v6229_v33  ;;  %v2081_v51 = vpop.f32.mrb[54].mxu0  ;;  %v2122_v55 = vpop.f32.mrb[54].mxu1  ;;  %v2121_v3 = vadd.f32 %v2120_v42, %v6231_v2  ;;  %v6236_v42 = vld [vmem:[#allocation88_spill] sm:$0xff] }
 0x6b5   :  { %v2125_v56 = vmul.f32 0.5, %v2078_v62  ;;  %v2082_v58 = vpop.f32.mrb[55].mxu0  ;;  %v2123_v59 = vpop.f32.mrb[55].mxu1  ;;  %v6235_v62 = vld [vmem:[#allocation87_spill] sm:$0xff] }
 0x6b6   :  { %v2129_v60 = vmul.f32 0.5, %v2080_v50  ;;  %v2134_v4 = vmul.f32 0.5, %v2121_v3 }
 0x6b7   :  { %3375 = vtanh.f32 %v2125_v56 }
 0x6b8   :  { %3377 = vtanh.f32 %v2129_v60 }
 0x6b9   :  { %3379 = vtanh.f32 %v2119_v1 }
 0x6ba   :  { %3381 = vtanh.f32 %v2134_v4 }
 0x6c1   :  { %v3376_v5 = vpop.eup %3375 }
 0x6c2   :  { %v3378_v30 = vpop.eup %3377  ;;  %v2127_v6 = vadd.f32 1.0, %v3376_v5 }
 0x6c3   :  { %v2131_v8 = vadd.f32 1.0, %v3378_v30  ;;  %v3380_v10 = vpop.eup %3379 }
 0x6c4   :  { %v2128_v9 = vmul.f32 0.5, %v2127_v6  ;;  %v3382_v17 = vpop.eup %3381 }
 0x6c5   :  { %v2132_v0 = vmul.f32 0.5, %v2131_v8  ;;  %v2136_v31 = vadd.f32 1.0, %v3382_v17 }
 0x6c6   :  { %v2139_v20 = vmul.f32 %v3380_v10, %v2128_v9 }
 0x6c7   :  { %v2138_v19 = vmul.f32 %v2132_v0, %v6232_v34  ;;  %v2137_v15 = vmul.f32 0.5, %v2136_v31 }
 0x6c9   :  { %v5100_v29 = vadd.f32 %v2139_v20, %v2138_v19 }
 0x6cb   :  { %3383 = vtanh.f32 %v5100_v29 }
 0x6d2   :  { %v2181_v53 = vpop.f32.mrb[56].mxu0  ;;  %v2222_v27 = vpop.f32.mrb[56].mxu1 }
 0x6d3   :  { %v2229_v23 = vadd.f32 %v2181_v53, %v6233_v35  ;;  %v2231_v28 = vadd.f32 %v2222_v27, %v6234_v32  ;;  %v2183_v26 = vpop.f32.mrb[57].mxu0  ;;  %v2224_v24 = vpop.f32.mrb[57].mxu1 }
 0x6d4   :  { %v2230_v44 = vadd.f32 %v2183_v26, %v6235_v62  ;;  %v2232_v50 = vadd.f32 %v2224_v24, %v6236_v42  ;;  %v2185_v51 = vpop.f32.mrb[58].mxu0  ;;  %v2226_v55 = vpop.f32.mrb[58].mxu1  ;;  %v6239_v26 = vld [vmem:[#allocation77_spill] sm:$0xff]  ;;  %v6240_v24 = vld [vmem:[#allocation78_spill] sm:$0xff]  ;;  %v6242_v62 = vld [vmem:[#allocation80_spill] sm:$0xff] }
 0x6d5   :  { %v3384_v56 = vpop.eup %3383  ;;  %v2233_v58 = vmul.f32 0.5, %v2229_v23  ;;  %v2186_v59 = vpop.f32.mrb[59].mxu0  ;;  %v6244_v42 = vld [vmem:[#allocation30_spill] sm:$0xff]  ;;  %v5146_v55 = vld [vmem:[#allocation8 + $0xc] ss:$16 sps:$4 sm:$0xff]  }
 0x6d6   :  { %v2227_v60 = vpop.f32.mrb[59].mxu1  ;;  %v2237_v1 = vmul.f32 0.5, %v2230_v44  ;;  %v2142_v3 = vmul.f32 %v3384_v56, %v2137_v15  ;;  %v2242_v5 = vmul.f32 0.5, %v2232_v50  ;;  %v6241_v15 = vld [vmem:[#allocation79_spill] sm:$0xff]  ;;  %v6243_v44 = vld [vmem:[#allocation29_spill] sm:$0xff] }
 0x6d7   :  { %3385 = vtanh.f32 %v2233_v58  ;;  %v6245_v50 = vld [vmem:[#allocation31_spill] sm:$0xff]  ;;  %v5143_v51 = vld [vmem:[#allocation8 + $0x4] ss:$16 sps:$4 sm:$0xff]   ;;  %v5149_v56 = vld [vmem:[#allocation8] ss:$16 sps:$4 sm:$0xff]  }
 0x6d8   :  { %3387 = vtanh.f32 %v2237_v1  ;;  %v2252_v4 = vpack.c.bf16 %v2142_v3, %v2142_v3  ;;  %v5152_v58 = vld [vmem:[#allocation8 + $0x8] ss:$16 sps:$4 sm:$0xff]   ;;  %v5155_v59 = vld [vmem:[#allocation8 + $0x24] ss:$16 sps:$4 sm:$0xff]   ;;  %v5158_v60 = vld [vmem:[#allocation8 + $0x2c] ss:$16 sps:$4 sm:$0xff]  }
 0x6d9   :  { %3389 = vtanh.f32 %v2231_v28  ;;  %v6238_v28 = vld [vmem:[#allocation28_spill] sm:$0xff]  ;;  %v5164_v3 = vld [vmem:[#allocation8 + $0x28] ss:$16 sps:$4 sm:$0xff]  }
 0x6da   :  { %2285 = vmatprep.mubr.bf16.mxu0 %v2252_v4  ;;  %2326 = vmatprep.mubr.bf16.mxu1 %v2252_v4  ;;  %3391 = vtanh.f32 %v2242_v5  ;;  %v5161_v1 = vld [vmem:[#allocation8 + $0x20] ss:$16 sps:$4 sm:$0xff]   ;;  %v5167_v4 = vld [vmem:[#allocation8 + $0x44] ss:$16 sps:$4 sm:$0xff]   ;;  %v5170_v5 = vld [vmem:[#allocation8 + $0x4c] ss:$16 sps:$4 sm:$0xff]  }
 0x6e1   :  { %v3386_v30 = vpop.eup %3385 }
 0x6e2   :  { %v3388_v6 = vpop.eup %3387  ;;  %v2235_v8 = vadd.f32 1.0, %v3386_v30  ;;  %v5173_v30 = vld [vmem:[#allocation8 + $0x40] ss:$16 sps:$4 sm:$0xff]  }
 0x6e3   :  { %v2239_v9 = vadd.f32 1.0, %v3388_v6  ;;  %v3390_v0 = vpop.eup %3389  ;;  %6246 = vst [vmem:[#allocation32_spill] sm:$0xff] %v5173_v30  ;;  %v5176_v6 = vld [vmem:[#allocation8 + $0x48] ss:$16 sps:$4 sm:$0xff]  }
 0x6e4   :  { %v2236_v10 = vmul.f32 0.5, %v2235_v8  ;;  %v3392_v31 = vpop.eup %3391  ;;  %6247 = vst [vmem:[#allocation33_spill] sm:$0xff] %v5176_v6  ;;  %v5179_v8 = vld [vmem:[#allocation8 + $0x64] ss:$16 sps:$4 sm:$0xff]  }
 0x6e5   :  { %v2240_v20 = vmul.f32 0.5, %v2239_v9  ;;  %v2244_v53 = vadd.f32 1.0, %v3392_v31  ;;  %6248 = vst [vmem:[#allocation34_spill] sm:$0xff] %v5179_v8  ;;  %v5182_v9 = vld [vmem:[#allocation8 + $0x6c] ss:$16 sps:$4 sm:$0xff]  }
 0x6e6   :  { %v2247_v34 = vmul.f32 %v3390_v0, %v2236_v10  ;;  %6249 = vst [vmem:[#allocation35_spill] sm:$0xff] %v5182_v9  ;;  %v5185_v10 = vld [vmem:[#allocation8 + $0x60] ss:$16 sps:$4 sm:$0xff]   ;;  %v5188_v0 = vld [vmem:[#allocation8 + $0x68] ss:$16 sps:$4 sm:$0xff]  }
 0x6e7   :  { %v2246_v19 = vmul.f32 %v2240_v20, %v4928_v41  ;;  %v2245_v27 = vmul.f32 0.5, %v2244_v53  ;;  %v6237_v41 = vld [vmem:[#allocation27_spill] sm:$0xff]  ;;  %6250 = vst [vmem:[#allocation36_spill] sm:$0xff] %v5185_v10  ;;  %6251 = vst [vmem:[#allocation37_spill] sm:$0xff] %v5188_v0  ;;  %v5191_v20 = vld [vmem:[#allocation8 + $0x84] ss:$16 sps:$4 sm:$0xff]  }
 0x6e8   :  { %6252 = vst [vmem:[#allocation38_spill] sm:$0xff] %v5191_v20  ;;  %v5200_v31 = vld [vmem:[#allocation8 + $0x88] ss:$16 sps:$4 sm:$0xff]   ;;  %v5203_v53 = vld [vmem:[#allocation8 + $0xa4] ss:$16 sps:$4 sm:$0xff]  }
 0x6e9   :  { %v5108_v17 = vadd.f32 %v2247_v34, %v2246_v19  ;;  %v5194_v34 = vld [vmem:[#allocation8 + $0x8c] ss:$16 sps:$4 sm:$0xff]   ;;  %v5197_v19 = vld [vmem:[#allocation8 + $0x80] ss:$16 sps:$4 sm:$0xff]   ;;  %6255 = vst [vmem:[#allocation41_spill] sm:$0xff] %v5200_v31  ;;  %6256 = vst [vmem:[#allocation42_spill] sm:$0xff] %v5203_v53 }
 0x6ea   :  { %6253 = vst [vmem:[#allocation39_spill] sm:$0xff] %v5194_v34  ;;  %6254 = vst [vmem:[#allocation40_spill] sm:$0xff] %v5197_v19 }
 0x6eb   :  { %3393 = vtanh.f32 %v5108_v17 }
 0x6f5   :  { %v3394_v35 = vpop.eup %3393 }
 0x6f6   :  { %v2250_v23 = vmul.f32 %v3394_v35, %v2245_v27  ;;  %v5206_v27 = vld [vmem:[#allocation8 + $0xac] ss:$16 sps:$4 sm:$0xff]   ;;  %v5209_v35 = vld [vmem:[#allocation8 + $0xa0] ss:$16 sps:$4 sm:$0xff]  }
 0x6f7   :  { %6257 = vst [vmem:[#allocation43_spill] sm:$0xff] %v5206_v27  ;;  %6258 = vst [vmem:[#allocation68_spill] sm:$0xff] %v5209_v35 }
 0x6f8   :  { %v2251_v32 = vpack.c.bf16 %v2250_v23, %v2250_v23  ;;  %v5212_v23 = vld [vmem:[#allocation8 + $0xa8] ss:$16 sps:$4 sm:$0xff]  }
 0x6f9   :  { %6259 = vst [vmem:[#allocation69_spill] sm:$0xff] %v5212_v23 }
 0x6fa   :  { %2286 = vmatmul.mubr.bf16.vlgmr.msra.gmra.mrb[60].mxu0 %v2251_v32  ;;  %2327 = vmatmul.mubr.bf16.vlgmr.msra.gmra.mrb[60].mxu1 %v2251_v32 }
 0x6fb   :  { %2358 = vmatpush1.bf16.msra.mxu0 %v4935_v12  ;;  %2399 = vmatpush1.bf16.msra.mxu1 %v4938_v43 }
 0x6fc   :  { %2359 = vmatprep.subr.bf16.mxu0 %v4941_v54  ;;  %2400 = vmatprep.subr.bf16.mxu1 %v4944_v36 }
 0x6fd   :  { %2389 = vmatprep.mubr.bf16.mxu0 %v5943_v22  ;;  %2430 = vmatprep.mubr.bf16.mxu1 %v5943_v22 }
 0x6ff   :  { %2360 = vmatpush1.bf16.msra.mxu0 %v4949_v39  ;;  %2401 = vmatpush1.bf16.msra.mxu1 %v4952_v46 }
 0x700   :  { %2361 = vmatprep.subr.bf16.mxu0 %v4955_v25  ;;  %2402 = vmatprep.subr.bf16.mxu1 %v4958_v45 }
 0x703   :  { %2362 = vmatpush1.bf16.msra.mxu0 %v4961_v11  ;;  %2403 = vmatpush1.bf16.msra.mxu1 %v4964_v40 }
 0x704   :  { %2363 = vmatprep.subr.bf16.mxu0 %v4967_v13  ;;  %2404 = vmatprep.subr.bf16.mxu1 %v4970_v57 }
 0x707   :  { %2364 = vmatpush1.bf16.msra.mxu0 %v4973_v14  ;;  %2405 = vmatpush1.bf16.msra.mxu1 %v4976_v47 }
 0x708   :  { %2365 = vmatprep.subr.bf16.mxu0 %v4979_v38  ;;  %2406 = vmatprep.subr.bf16.mxu1 %v6237_v41 }
 0x70b   :  { %2366 = vmatpush1.bf16.msra.mxu0 %v6238_v28  ;;  %2407 = vmatpush1.bf16.msra.mxu1 %v6239_v26 }
 0x70c   :  { %2367 = vmatprep.subr.bf16.mxu0 %v6240_v24  ;;  %2408 = vmatprep.subr.bf16.mxu1 %v6241_v15 }
 0x70f   :  { %2368 = vmatpush1.bf16.msra.mxu0 %v6242_v62  ;;  %2409 = vmatpush1.bf16.msra.mxu1 %v6243_v44 }
 0x710   :  { %2369 = vmatprep.subr.bf16.mxu0 %v6244_v42  ;;  %2410 = vmatprep.subr.bf16.mxu1 %v6245_v50 }
 0x713   :  { %2370 = vmatpush1.bf16.msra.mxu0 %v5009_v37  ;;  %2411 = vmatpush1.bf16.msra.mxu1 %v5012_v49 }
 0x714   :  { %2371 = vmatprep.subr.bf16.mxu0 %v5015_v7  ;;  %2412 = vmatprep.subr.bf16.mxu1 %v5018_v52 }
 0x717   :  { %2372 = vmatpush1.bf16.msra.mxu0 %v5021_v63  ;;  %2413 = vmatpush1.bf16.msra.mxu1 %v5024_v61 }
 0x718   :  { %2463 = vmatprep.subr.bf16.mxu0 %v5143_v51  ;;  %2504 = vmatprep.subr.bf16.mxu1 %v5146_v55 }
 0x71a   :  { %2390 = vmatmul.mubr.bf16.vlgmr.msra.gmra.mrb[64].mxu0 %v2251_v32  ;;  %2431 = vmatmul.mubr.bf16.vlgmr.msra.gmra.mrb[64].mxu1 %v2251_v32  ;;  %v5215_v32 = vld [vmem:[#allocation8 + $0xc4] ss:$16 sps:$4 sm:$0xff]  }
 0x71b   :  { %2464 = vmatpush1.bf16.msra.mxu0 %v5149_v56  ;;  %2505 = vmatpush1.bf16.msra.mxu1 %v5152_v58  ;;  %6260 = vst [vmem:[#allocation70_spill] sm:$0xff] %v5215_v32 }
 0x71c   :  { %2465 = vmatprep.subr.bf16.mxu0 %v5155_v59  ;;  %2506 = vmatprep.subr.bf16.mxu1 %v5158_v60 }
 0x71f   :  { %2466 = vmatpush1.bf16.msra.mxu0 %v5161_v1  ;;  %2507 = vmatpush1.bf16.msra.mxu1 %v5164_v3 }
 0x720   :  { %2467 = vmatprep.subr.bf16.mxu0 %v5167_v4  ;;  %2508 = vmatprep.subr.bf16.mxu1 %v5170_v5 }
 0x723   :  { %2468 = vmatpush1.bf16.msra.mxu0 %v5173_v30  ;;  %2509 = vmatpush1.bf16.msra.mxu1 %v5176_v6 }
 0x724   :  { %2469 = vmatprep.subr.bf16.mxu0 %v5179_v8  ;;  %2510 = vmatprep.subr.bf16.mxu1 %v5182_v9 }
 0x727   :  { %2470 = vmatpush1.bf16.msra.mxu0 %v5185_v10  ;;  %2511 = vmatpush1.bf16.msra.mxu1 %v5188_v0 }
 0x728   :  { %2471 = vmatprep.subr.bf16.mxu0 %v5191_v20  ;;  %2512 = vmatprep.subr.bf16.mxu1 %v5194_v34 }
 0x72b   :  { %2472 = vmatpush1.bf16.msra.mxu0 %v5197_v19  ;;  %2513 = vmatpush1.bf16.msra.mxu1 %v5200_v31  ;;  %v5218_v31 = vld [vmem:[#allocation8 + $0xcc] ss:$16 sps:$4 sm:$0xff]  }
 0x72c   :  { %2473 = vmatprep.subr.bf16.mxu0 %v5203_v53  ;;  %2514 = vmatprep.subr.bf16.mxu1 %v5206_v27  ;;  %6261 = vst [vmem:[#allocation71_spill] sm:$0xff] %v5218_v31  ;;  %v5221_v53 = vld [vmem:[#allocation8 + $0xc0] ss:$16 sps:$4 sm:$0xff]   ;;  %v5224_v27 = vld [vmem:[#allocation8 + $0xc8] ss:$16 sps:$4 sm:$0xff]  }
 0x72d   :  { %6262 = vst [vmem:[#allocation72_spill] sm:$0xff] %v5221_v53  ;;  %6263 = vst [vmem:[#allocation44_spill] sm:$0xff] %v5224_v27 }
 0x72f   :  { %2474 = vmatpush1.bf16.msra.mxu0 %v5209_v35  ;;  %2515 = vmatpush1.bf16.msra.mxu1 %v5212_v23  ;;  %v5227_v35 = vld [vmem:[#allocation8 + $0xe4] ss:$16 sps:$4 sm:$0xff]   ;;  %v5230_v23 = vld [vmem:[#allocation8 + $0xec] ss:$16 sps:$4 sm:$0xff]  }
 0x730   :  { %2475 = vmatprep.subr.bf16.mxu0 %v5215_v32  ;;  %2516 = vmatprep.subr.bf16.mxu1 %v5218_v31  ;;  %6264 = vst [vmem:[#allocation45_spill] sm:$0xff] %v5227_v35  ;;  %6265 = vst [vmem:[#allocation46_spill] sm:$0xff] %v5230_v23  ;;  %v5233_v32 = vld [vmem:[#allocation8 + $0xe0] ss:$16 sps:$4 sm:$0xff]   ;;  %v5236_v31 = vld [vmem:[#allocation8 + $0xe8] ss:$16 sps:$4 sm:$0xff]  }
 0x731   :  { %6266 = vst [vmem:[#allocation47_spill] sm:$0xff] %v5233_v32  ;;  %6267 = vst [vmem:[#allocation48_spill] sm:$0xff] %v5236_v31 }
 0x733   :  { %2476 = vmatpush1.bf16.msra.mxu0 %v5221_v53  ;;  %2517 = vmatpush1.bf16.msra.mxu1 %v5224_v27  ;;  %v5239_v53 = vld [vmem:[#allocation8 + $0x104] ss:$16 sps:$4 sm:$0xff]   ;;  %v5242_v27 = vld [vmem:[#allocation8 + $0x10c] ss:$16 sps:$4 sm:$0xff]  }
 0x734   :  { %2477 = vmatprep.subr.bf16.mxu0 %v5227_v35  ;;  %2518 = vmatprep.subr.bf16.mxu1 %v5230_v23  ;;  %6268 = vst [vmem:[#allocation49_spill] sm:$0xff] %v5239_v53  ;;  %6269 = vst [vmem:[#allocation50_spill] sm:$0xff] %v5242_v27  ;;  %v5245_v35 = vld [vmem:[#allocation8 + $0x100] ss:$16 sps:$4 sm:$0xff]   ;;  %v5248_v23 = vld [vmem:[#allocation8 + $0x108] ss:$16 sps:$4 sm:$0xff]  }
 0x735   :  { %6270 = vst [vmem:[#allocation51_spill] sm:$0xff] %v5245_v35  ;;  %6271 = vst [vmem:[#allocation52_spill] sm:$0xff] %v5248_v23 }
 0x737   :  { %2478 = vmatpush1.bf16.msra.mxu0 %v5233_v32  ;;  %2519 = vmatpush1.bf16.msra.mxu1 %v5236_v31  ;;  %v5251_v32 = vld [vmem:[#allocation8 + $0x124] ss:$16 sps:$4 sm:$0xff]   ;;  %v5254_v31 = vld [vmem:[#allocation8 + $0x12c] ss:$16 sps:$4 sm:$0xff]  }
 0x738   :  { %2479 = vmatprep.subr.bf16.mxu0 %v5239_v53  ;;  %2520 = vmatprep.subr.bf16.mxu1 %v5242_v27  ;;  %6272 = vst [vmem:[#allocation53_spill] sm:$0xff] %v5251_v32  ;;  %6273 = vst [vmem:[#allocation23_spill] sm:$0xff] %v5254_v31  ;;  %v5257_v53 = vld [vmem:[#allocation8 + $0x120] ss:$16 sps:$4 sm:$0xff]   ;;  %v5260_v27 = vld [vmem:[#allocation8 + $0x128] ss:$16 sps:$4 sm:$0xff]  }
 0x739   :  { %6274 = vst [vmem:[#allocation81_spill] sm:$0xff] %v5257_v53  ;;  %6275 = vst [vmem:[#allocation82_spill] sm:$0xff] %v5260_v27 }
 0x73b   :  { %2480 = vmatpush1.bf16.msra.mxu0 %v5245_v35  ;;  %2521 = vmatpush1.bf16.msra.mxu1 %v5248_v23  ;;  %v5263_v35 = vld [vmem:[#allocation8 + $0x144] ss:$16 sps:$4 sm:$0xff]   ;;  %v5266_v23 = vld [vmem:[#allocation8 + $0x14c] ss:$16 sps:$4 sm:$0xff]  }
 0x73c   :  { %2481 = vmatprep.subr.bf16.mxu0 %v5251_v32  ;;  %2522 = vmatprep.subr.bf16.mxu1 %v5254_v31  ;;  %6276 = vst [vmem:[#allocation83_spill] sm:$0xff] %v5263_v35  ;;  %6277 = vst [vmem:[#allocation84_spill] sm:$0xff] %v5266_v23  ;;  %v5269_v32 = vld [vmem:[#allocation8 + $0x140] ss:$16 sps:$4 sm:$0xff]   ;;  %v5272_v31 = vld [vmem:[#allocation8 + $0x148] ss:$16 sps:$4 sm:$0xff]  }
 0x73d   :  { %6278 = vst [vmem:[#allocation54_spill] sm:$0xff] %v5269_v32  ;;  %6279 = vst [vmem:[#allocation55_spill] sm:$0xff] %v5272_v31 }
 0x73f   :  { %2482 = vmatpush1.bf16.msra.mxu0 %v5257_v53  ;;  %2523 = vmatpush1.bf16.msra.mxu1 %v5260_v27  ;;  %v5275_v53 = vld [vmem:[#allocation8 + $0x164] ss:$16 sps:$4 sm:$0xff]   ;;  %v5278_v27 = vld [vmem:[#allocation8 + $0x16c] ss:$16 sps:$4 sm:$0xff]  }
 0x740   :  { %2483 = vmatprep.subr.bf16.mxu0 %v5263_v35  ;;  %2524 = vmatprep.subr.bf16.mxu1 %v5266_v23  ;;  %6280 = vst [vmem:[#allocation56_spill] sm:$0xff] %v5275_v53  ;;  %6281 = vst [vmem:[#allocation57_spill] sm:$0xff] %v5278_v27  ;;  %v5281_v35 = vld [vmem:[#allocation8 + $0x160] ss:$16 sps:$4 sm:$0xff]   ;;  %v5284_v23 = vld [vmem:[#allocation8 + $0x168] ss:$16 sps:$4 sm:$0xff]  }
 0x741   :  { %6282 = vst [vmem:[#allocation58_spill] sm:$0xff] %v5281_v35  ;;  %6283 = vst [vmem:[#allocation59_spill] sm:$0xff] %v5284_v23 }
 0x743   :  { %2484 = vmatpush1.bf16.msra.mxu0 %v5269_v32  ;;  %2525 = vmatpush1.bf16.msra.mxu1 %v5272_v31  ;;  %v5287_v32 = vld [vmem:[#allocation8 + $0x184] ss:$16 sps:$4 sm:$0xff]   ;;  %v5290_v31 = vld [vmem:[#allocation8 + $0x18c] ss:$16 sps:$4 sm:$0xff]  }
 0x744   :  { %2485 = vmatprep.subr.bf16.mxu0 %v5275_v53  ;;  %2526 = vmatprep.subr.bf16.mxu1 %v5278_v27  ;;  %6284 = vst [vmem:[#allocation60_spill] sm:$0xff] %v5287_v32  ;;  %6285 = vst [vmem:[#allocation61_spill] sm:$0xff] %v5290_v31  ;;  %v5293_v53 = vld [vmem:[#allocation8 + $0x180] ss:$16 sps:$4 sm:$0xff]   ;;  %v5296_v27 = vld [vmem:[#allocation8 + $0x188] ss:$16 sps:$4 sm:$0xff]  }
 0x745   :  { %6286 = vst [vmem:[#allocation62_spill] sm:$0xff] %v5293_v53  ;;  %6287 = vst [vmem:[#allocation63_spill] sm:$0xff] %v5296_v27 }
 0x747   :  { %2486 = vmatpush1.bf16.msra.mxu0 %v5281_v35  ;;  %2527 = vmatpush1.bf16.msra.mxu1 %v5284_v23  ;;  %v5299_v35 = vld [vmem:[#allocation8 + $0x1a4] ss:$16 sps:$4 sm:$0xff]   ;;  %v5302_v23 = vld [vmem:[#allocation8 + $0x1ac] ss:$16 sps:$4 sm:$0xff]  }
 0x748   :  { %2487 = vmatprep.subr.bf16.mxu0 %v5287_v32  ;;  %2528 = vmatprep.subr.bf16.mxu1 %v5290_v31  ;;  %6288 = vst [vmem:[#allocation64_spill] sm:$0xff] %v5299_v35  ;;  %6289 = vst [vmem:[#allocation65_spill] sm:$0xff] %v5302_v23  ;;  %v5305_v32 = vld [vmem:[#allocation8 + $0x1a0] ss:$16 sps:$4 sm:$0xff]   ;;  %v5308_v31 = vld [vmem:[#allocation8 + $0x1a8] ss:$16 sps:$4 sm:$0xff]  }
 0x749   :  { %6290 = vst [vmem:[#allocation66_spill] sm:$0xff] %v5305_v32  ;;  %6291 = vst [vmem:[#allocation67_spill] sm:$0xff] %v5308_v31 }
 0x74b   :  { %2488 = vmatpush1.bf16.msra.mxu0 %v5293_v53  ;;  %2529 = vmatpush1.bf16.msra.mxu1 %v5296_v27  ;;  %v5311_v53 = vld [vmem:[#allocation8 + $0x1c4] ss:$16 sps:$4 sm:$0xff]   ;;  %v5314_v27 = vld [vmem:[#allocation8 + $0x1cc] ss:$16 sps:$4 sm:$0xff]  }
 0x74c   :  { %2489 = vmatprep.subr.bf16.mxu0 %v5299_v35  ;;  %2530 = vmatprep.subr.bf16.mxu1 %v5302_v23  ;;  %6292 = vst [vmem:[#allocation13_spill] sm:$0xff] %v5311_v53  ;;  %6293 = vst [vmem:[#allocation14_spill] sm:$0xff] %v5314_v27  ;;  %v5317_v35 = vld [vmem:[#allocation8 + $0x1c0] ss:$16 sps:$4 sm:$0xff]   ;;  %v5320_v23 = vld [vmem:[#allocation8 + $0x1c8] ss:$16 sps:$4 sm:$0xff]  }
 0x74d   :  { %6294 = vst [vmem:[#allocation19_spill] sm:$0xff] %v5317_v35  ;;  %6295 = vst [vmem:[#allocation73_spill] sm:$0xff] %v5320_v23 }
 0x74f   :  { %2490 = vmatpush1.bf16.msra.mxu0 %v5305_v32  ;;  %2531 = vmatpush1.bf16.msra.mxu1 %v5308_v31  ;;  %v5323_v32 = vld [vmem:[#allocation8 + $0x1e4] ss:$16 sps:$4 sm:$0xff]   ;;  %v5326_v31 = vld [vmem:[#allocation8 + $0x1ec] ss:$16 sps:$4 sm:$0xff]  }
 0x750   :  { %2491 = vmatprep.subr.bf16.mxu0 %v5311_v53  ;;  %2532 = vmatprep.subr.bf16.mxu1 %v5314_v27  ;;  %6296 = vst [vmem:[#allocation74_spill] sm:$0xff] %v5323_v32  ;;  %6297 = vst [vmem:[#allocation75_spill] sm:$0xff] %v5326_v31  ;;  %v5329_v53 = vld [vmem:[#allocation8 + $0x1e0] ss:$16 sps:$4 sm:$0xff]   ;;  %v5332_v27 = vld [vmem:[#allocation8 + $0x1e8] ss:$16 sps:$4 sm:$0xff]  }
 0x751   :  { %6298 = vst [vmem:[#allocation76_spill] sm:$0xff] %v5329_v53  ;;  %6299 = vst [vmem:[#allocation20_spill] sm:$0xff] %v5332_v27 }
 0x753   :  { %2492 = vmatpush1.bf16.msra.mxu0 %v5317_v35  ;;  %2533 = vmatpush1.bf16.msra.mxu1 %v5320_v23 }
 0x754   :  { %2493 = vmatprep.subr.bf16.mxu0 %v5323_v32  ;;  %2534 = vmatprep.subr.bf16.mxu1 %v5326_v31 }
 0x757   :  { %2494 = vmatpush1.bf16.msra.mxu0 %v5329_v53  ;;  %2535 = vmatpush1.bf16.msra.mxu1 %v5332_v27 }
 0x758   :  { %2567 = vmatprep.subr.bf16.mxu0 %v6226_v18  ;;  %2608 = vmatprep.subr.bf16.mxu1 %v6227_v21 }
 0x7cd   :  { %v2287_v23 = vpop.f32.mrb[60].mxu0  ;;  %v2328_v35 = vpop.f32.mrb[60].mxu1 }
 0x7ce   :  { %v2288_v32 = vadd.f32 %v2287_v23, %v6228_v16  ;;  %v2289_v19 = vpop.f32.mrb[61].mxu0  ;;  %v2330_v34 = vpop.f32.mrb[61].mxu1  ;;  %v2329_v27 = vadd.f32 %v2328_v35, %v6230_v48 }
 0x7cf   :  { %v2290_v31 = vadd.f32 %v2289_v19, %v6229_v33  ;;  %v2291_v20 = vpop.f32.mrb[62].mxu0  ;;  %v2332_v0 = vpop.f32.mrb[62].mxu1  ;;  %v2331_v18 = vadd.f32 %v2330_v34, %v6231_v2  ;;  %v6303_v2 = vld [vmem:[#allocation91_spill] sm:$0xff] }
 0x7d0   :  { %v2335_v10 = vmul.f32 0.5, %v2288_v32  ;;  %v2292_v53 = vpop.f32.mrb[63].mxu0  ;;  %v2333_v9 = vpop.f32.mrb[63].mxu1 }
 0x7d1   :  { %v2339_v8 = vmul.f32 0.5, %v2290_v31  ;;  %v2344_v21 = vmul.f32 0.5, %v2331_v18  ;;  %v6302_v18 = vld [vmem:[#allocation90_spill] sm:$0xff] }
 0x7d2   :  { %3395 = vtanh.f32 %v2335_v10 }
 0x7d3   :  { %3397 = vtanh.f32 %v2339_v8 }
 0x7d4   :  { %3399 = vtanh.f32 %v2329_v27  ;;  %v6301_v27 = vld [vmem:[#allocation89_spill] sm:$0xff] }
 0x7d5   :  { %3401 = vtanh.f32 %v2344_v21 }
 0x7dc   :  { %v3396_v6 = vpop.eup %3395 }
 0x7dd   :  { %v3398_v23 = vpop.eup %3397  ;;  %v2337_v16 = vadd.f32 1.0, %v3396_v6 }
 0x7de   :  { %v2341_v30 = vadd.f32 1.0, %v3398_v23  ;;  %v3400_v20 = vpop.eup %3399 }
 0x7df   :  { %v2338_v19 = vmul.f32 0.5, %v2337_v16  ;;  %v3402_v8 = vpop.eup %3401 }
 0x7e0   :  { %v2342_v0 = vmul.f32 0.5, %v2341_v30  ;;  %v2346_v10 = vadd.f32 1.0, %v3402_v8 }
 0x7e1   :  { %v2349_v32 = vmul.f32 %v3400_v20, %v2338_v19  ;;  %v6304_v19 = vld [vmem:[#allocation92_spill] sm:$0xff] }
 0x7e2   :  { %v2348_v9 = vmul.f32 %v2342_v0, %v5100_v29  ;;  %v2347_v16 = vmul.f32 0.5, %v2346_v10 }
 0x7e4   :  { %v5342_v31 = vadd.f32 %v2349_v32, %v2348_v9 }
 0x7e6   :  { %6300 = vst [vmem:[#allocation21_spill] sm:$0xff] %v5342_v31  ;;  %3403 = vtanh.f32 %v5342_v31 }
 0x7ed   :  { %v2391_v53 = vpop.f32.mrb[64].mxu0  ;;  %v2432_v34 = vpop.f32.mrb[64].mxu1 }
 0x7ee   :  { %v2439_v35 = vadd.f32 %v2391_v53, %v6301_v27  ;;  %v2441_v6 = vadd.f32 %v2432_v34, %v6302_v18  ;;  %v2393_v23 = vpop.f32.mrb[65].mxu0  ;;  %v2434_v21 = vpop.f32.mrb[65].mxu1 }
 0x7ef   :  { %v2440_v30 = vadd.f32 %v2393_v23, %v6303_v2  ;;  %v2442_v20 = vadd.f32 %v2434_v21, %v6304_v19  ;;  %v2395_v29 = vpop.f32.mrb[66].mxu0  ;;  %v2436_v0 = vpop.f32.mrb[66].mxu1 }
 0x7f0   :  { %v3404_v32 = vpop.eup %3403  ;;  %v2443_v9 = vmul.f32 0.5, %v2439_v35  ;;  %v2396_v31 = vpop.f32.mrb[67].mxu0  ;;  %v6347_v0 = vld [vmem:[#allocation64_spill] sm:$0xff] }
 0x7f1   :  { %v2437_v48 = vpop.f32.mrb[67].mxu1  ;;  %v2447_v8 = vmul.f32 0.5, %v2440_v30  ;;  %v2352_v33 = vmul.f32 %v3404_v32, %v2347_v16  ;;  %v2452_v34 = vmul.f32 0.5, %v2442_v20  ;;  %v6348_v32 = vld [vmem:[#allocation65_spill] sm:$0xff] }
 0x7f2   :  { %3405 = vtanh.f32 %v2443_v9  ;;  %v6349_v9 = vld [vmem:[#allocation66_spill] sm:$0xff] }
 0x7f3   :  { %3407 = vtanh.f32 %v2447_v8  ;;  %v2462_v53 = vpack.c.bf16 %v2352_v33, %v2352_v33  ;;  %v6350_v8 = vld [vmem:[#allocation67_spill] sm:$0xff] }
 0x7f4   :  { %3409 = vtanh.f32 %v2441_v6 }
 0x7f5   :  { %2495 = vmatprep.mubr.bf16.mxu0 %v2462_v53  ;;  %2536 = vmatprep.mubr.bf16.mxu1 %v2462_v53  ;;  %3411 = vtanh.f32 %v2452_v34  ;;  %v6351_v53 = vld [vmem:[#allocation13_spill] sm:$0xff]  ;;  %v6352_v34 = vld [vmem:[#allocation14_spill] sm:$0xff] }
 0x7fc   :  { %v3406_v10 = vpop.eup %3405 }
 0x7fd   :  { %v3408_v27 = vpop.eup %3407  ;;  %v2445_v2 = vadd.f32 1.0, %v3406_v10  ;;  %v6353_v10 = vld [vmem:[#allocation19_spill] sm:$0xff] }
 0x7fe   :  { %v2449_v18 = vadd.f32 1.0, %v3408_v27  ;;  %v3410_v21 = vpop.eup %3409  ;;  %v6354_v27 = vld [vmem:[#allocation73_spill] sm:$0xff] }
 0x7ff   :  { %v2446_v23 = vmul.f32 0.5, %v2445_v2  ;;  %v3412_v33 = vpop.eup %3411  ;;  %v6355_v2 = vld [vmem:[#allocation74_spill] sm:$0xff] }
 0x800   :  { %v2450_v19 = vmul.f32 0.5, %v2449_v18  ;;  %v2454_v16 = vadd.f32 1.0, %v3412_v33  ;;  %v6356_v18 = vld [vmem:[#allocation75_spill] sm:$0xff] }
 0x801   :  { %v2457_v35 = vmul.f32 %v3410_v21, %v2446_v23  ;;  %v6357_v23 = vld [vmem:[#allocation76_spill] sm:$0xff] }
 0x802   :  { %v2456_v48 = vmul.f32 %v2450_v19, %v5108_v17  ;;  %v2455_v30 = vmul.f32 0.5, %v2454_v16  ;;  %v6327_v17 = vld [vmem:[#allocation49_spill] sm:$0xff]  ;;  %v6358_v21 = vld [vmem:[#allocation20_spill] sm:$0xff] }
 0x804   :  { %v5350_v31 = vadd.f32 %v2457_v35, %v2456_v48  ;;  %v6359_v48 = vld [vmem:[#allocation15_spill] sm:$0xff] }
 0x806   :  { %3413 = vtanh.f32 %v5350_v31 }
 0x810   :  { %v3414_v6 = vpop.eup %3413 }
 0x811   :  { %v2460_v20 = vmul.f32 %v3414_v6, %v2455_v30  ;;  %v6360_v6 = vld [vmem:[#allocation16_spill] sm:$0xff] }
 0x813   :  { %v2461_v29 = vpack.c.bf16 %v2460_v20, %v2460_v20 }
 0x815   :  { %2496 = vmatmul.mubr.bf16.vlgmr.msra.gmra.mrb[68].mxu0 %v2461_v29  ;;  %2537 = vmatmul.mubr.bf16.vlgmr.msra.gmra.mrb[68].mxu1 %v2461_v29 }
 0x816   :  { %2568 = vmatpush1.bf16.msra.mxu0 %v4935_v12  ;;  %2609 = vmatpush1.bf16.msra.mxu1 %v4938_v43  ;;  %v6306_v12 = vld [vmem:[#allocation33_spill] sm:$0xff]  ;;  %v6307_v43 = vld [vmem:[#allocation34_spill] sm:$0xff] }
 0x817   :  { %2569 = vmatprep.subr.bf16.mxu0 %v4941_v54  ;;  %2610 = vmatprep.subr.bf16.mxu1 %v4944_v36  ;;  %v6308_v54 = vld [vmem:[#allocation35_spill] sm:$0xff]  ;;  %v6309_v36 = vld [vmem:[#allocation36_spill] sm:$0xff] }
 0x818   :  { %2599 = vmatprep.mubr.bf16.mxu0 %v5943_v22  ;;  %2640 = vmatprep.mubr.bf16.mxu1 %v5943_v22  ;;  %v6305_v22 = vld [vmem:[#allocation32_spill] sm:$0xff] }
 0x81a   :  { %2570 = vmatpush1.bf16.msra.mxu0 %v4949_v39  ;;  %2611 = vmatpush1.bf16.msra.mxu1 %v4952_v46  ;;  %v6310_v39 = vld [vmem:[#allocation37_spill] sm:$0xff]  ;;  %v6311_v46 = vld [vmem:[#allocation38_spill] sm:$0xff] }
 0x81b   :  { %2571 = vmatprep.subr.bf16.mxu0 %v4955_v25  ;;  %2612 = vmatprep.subr.bf16.mxu1 %v4958_v45  ;;  %v6312_v25 = vld [vmem:[#allocation39_spill] sm:$0xff]  ;;  %v6313_v45 = vld [vmem:[#allocation40_spill] sm:$0xff] }
 0x81e   :  { %2572 = vmatpush1.bf16.msra.mxu0 %v4961_v11  ;;  %2613 = vmatpush1.bf16.msra.mxu1 %v4964_v40  ;;  %v6314_v11 = vld [vmem:[#allocation41_spill] sm:$0xff]  ;;  %v6315_v40 = vld [vmem:[#allocation42_spill] sm:$0xff] }
 0x81f   :  { %2573 = vmatprep.subr.bf16.mxu0 %v4967_v13  ;;  %2614 = vmatprep.subr.bf16.mxu1 %v4970_v57  ;;  %v6316_v13 = vld [vmem:[#allocation43_spill] sm:$0xff]  ;;  %v6317_v57 = vld [vmem:[#allocation68_spill] sm:$0xff] }
 0x822   :  { %2574 = vmatpush1.bf16.msra.mxu0 %v4973_v14  ;;  %2615 = vmatpush1.bf16.msra.mxu1 %v4976_v47  ;;  %v6318_v14 = vld [vmem:[#allocation69_spill] sm:$0xff]  ;;  %v6319_v47 = vld [vmem:[#allocation70_spill] sm:$0xff] }
 0x823   :  { %2575 = vmatprep.subr.bf16.mxu0 %v4979_v38  ;;  %2616 = vmatprep.subr.bf16.mxu1 %v6237_v41  ;;  %v6320_v38 = vld [vmem:[#allocation71_spill] sm:$0xff]  ;;  %v6328_v41 = vld [vmem:[#allocation50_spill] sm:$0xff] }
 0x826   :  { %2576 = vmatpush1.bf16.msra.mxu0 %v6238_v28  ;;  %2617 = vmatpush1.bf16.msra.mxu1 %v6239_v26  ;;  %v6329_v28 = vld [vmem:[#allocation51_spill] sm:$0xff]  ;;  %v6330_v26 = vld [vmem:[#allocation52_spill] sm:$0xff] }
 0x827   :  { %2577 = vmatprep.subr.bf16.mxu0 %v6240_v24  ;;  %2618 = vmatprep.subr.bf16.mxu1 %v6241_v15  ;;  %v6331_v24 = vld [vmem:[#allocation53_spill] sm:$0xff]  ;;  %v6332_v15 = vld [vmem:[#allocation23_spill] sm:$0xff] }
 0x82a   :  { %2578 = vmatpush1.bf16.msra.mxu0 %v6242_v62  ;;  %2619 = vmatpush1.bf16.msra.mxu1 %v6243_v44  ;;  %v6333_v62 = vld [vmem:[#allocation81_spill] sm:$0xff]  ;;  %v6334_v44 = vld [vmem:[#allocation82_spill] sm:$0xff] }
 0x82b   :  { %2579 = vmatprep.subr.bf16.mxu0 %v6244_v42  ;;  %2620 = vmatprep.subr.bf16.mxu1 %v6245_v50  ;;  %v6335_v42 = vld [vmem:[#allocation83_spill] sm:$0xff]  ;;  %v6336_v50 = vld [vmem:[#allocation84_spill] sm:$0xff] }
 0x82e   :  { %2580 = vmatpush1.bf16.msra.mxu0 %v5009_v37  ;;  %2621 = vmatpush1.bf16.msra.mxu1 %v5012_v49  ;;  %v6324_v37 = vld [vmem:[#allocation46_spill] sm:$0xff]  ;;  %v6325_v49 = vld [vmem:[#allocation47_spill] sm:$0xff] }
 0x82f   :  { %2581 = vmatprep.subr.bf16.mxu0 %v5015_v7  ;;  %2622 = vmatprep.subr.bf16.mxu1 %v5018_v52  ;;  %v6321_v52 = vld [vmem:[#allocation72_spill] sm:$0xff] }
 0x830   :  { %v6326_v7 = vld [vmem:[#allocation48_spill] sm:$0xff] }
 0x832   :  { %2582 = vmatpush1.bf16.msra.mxu0 %v5021_v63  ;;  %2623 = vmatpush1.bf16.msra.mxu1 %v5024_v61  ;;  %v6322_v63 = vld [vmem:[#allocation44_spill] sm:$0xff]  ;;  %v6323_v61 = vld [vmem:[#allocation45_spill] sm:$0xff] }
 0x833   :  { %2673 = vmatprep.subr.bf16.mxu0 %v5143_v51  ;;  %2714 = vmatprep.subr.bf16.mxu1 %v5146_v55  ;;  %v6337_v51 = vld [vmem:[#allocation54_spill] sm:$0xff]  ;;  %v6338_v55 = vld [vmem:[#allocation55_spill] sm:$0xff] }
 0x835   :  { %2600 = vmatmul.mubr.bf16.vlgmr.msra.gmra.mrb[72].mxu0 %v2461_v29  ;;  %2641 = vmatmul.mubr.bf16.vlgmr.msra.gmra.mrb[72].mxu1 %v2461_v29 }
 0x836   :  { %2674 = vmatpush1.bf16.msra.mxu0 %v5149_v56  ;;  %2715 = vmatpush1.bf16.msra.mxu1 %v5152_v58  ;;  %v6339_v56 = vld [vmem:[#allocation56_spill] sm:$0xff]  ;;  %v6340_v58 = vld [vmem:[#allocation57_spill] sm:$0xff] }
 0x837   :  { %2675 = vmatprep.subr.bf16.mxu0 %v5155_v59  ;;  %2716 = vmatprep.subr.bf16.mxu1 %v5158_v60  ;;  %v6341_v59 = vld [vmem:[#allocation58_spill] sm:$0xff]  ;;  %v6342_v60 = vld [vmem:[#allocation59_spill] sm:$0xff] }
 0x83a   :  { %2676 = vmatpush1.bf16.msra.mxu0 %v5161_v1  ;;  %2717 = vmatpush1.bf16.msra.mxu1 %v5164_v3  ;;  %v6343_v1 = vld [vmem:[#allocation60_spill] sm:$0xff]  ;;  %v6344_v3 = vld [vmem:[#allocation61_spill] sm:$0xff] }
 0x83b   :  { %2677 = vmatprep.subr.bf16.mxu0 %v5167_v4  ;;  %2718 = vmatprep.subr.bf16.mxu1 %v5170_v5  ;;  %v6345_v4 = vld [vmem:[#allocation62_spill] sm:$0xff]  ;;  %v6346_v5 = vld [vmem:[#allocation63_spill] sm:$0xff] }
 0x83e   :  { %2678 = vmatpush1.bf16.msra.mxu0 %v6305_v22  ;;  %2719 = vmatpush1.bf16.msra.mxu1 %v6306_v12 }
 0x83f   :  { %2679 = vmatprep.subr.bf16.mxu0 %v6307_v43  ;;  %2720 = vmatprep.subr.bf16.mxu1 %v6308_v54 }
 0x842   :  { %2680 = vmatpush1.bf16.msra.mxu0 %v6309_v36  ;;  %2721 = vmatpush1.bf16.msra.mxu1 %v6310_v39  ;;  %v6361_v39 = vld [vmem:[#allocation17_spill] sm:$0xff] }
 0x843   :  { %2681 = vmatprep.subr.bf16.mxu0 %v6311_v46  ;;  %2722 = vmatprep.subr.bf16.mxu1 %v6312_v25  ;;  %v6362_v25 = vld [vmem:[#allocation18_spill] sm:$0xff] }
 0x846   :  { %2682 = vmatpush1.bf16.msra.mxu0 %v6313_v45  ;;  %2723 = vmatpush1.bf16.msra.mxu1 %v6314_v11 }
 0x847   :  { %2683 = vmatprep.subr.bf16.mxu0 %v6315_v40  ;;  %2724 = vmatprep.subr.bf16.mxu1 %v6316_v13 }
 0x84a   :  { %2684 = vmatpush1.bf16.msra.mxu0 %v6317_v57  ;;  %2725 = vmatpush1.bf16.msra.mxu1 %v6318_v14 }
 0x84b   :  { %2685 = vmatprep.subr.bf16.mxu0 %v6319_v47  ;;  %2726 = vmatprep.subr.bf16.mxu1 %v6320_v38 }
 0x84e   :  { %2686 = vmatpush1.bf16.msra.mxu0 %v6321_v52  ;;  %2727 = vmatpush1.bf16.msra.mxu1 %v6322_v63 }
 0x84f   :  { %2687 = vmatprep.subr.bf16.mxu0 %v6323_v61  ;;  %2728 = vmatprep.subr.bf16.mxu1 %v6324_v37  ;;  %v6363_v61 = vld [vmem:[#allocation21_spill] sm:$0xff] }
 0x852   :  { %2688 = vmatpush1.bf16.msra.mxu0 %v6325_v49  ;;  %2729 = vmatpush1.bf16.msra.mxu1 %v6326_v7 }
 0x853   :  { %2689 = vmatprep.subr.bf16.mxu0 %v6327_v17  ;;  %2730 = vmatprep.subr.bf16.mxu1 %v6328_v41 }
 0x856   :  { %2690 = vmatpush1.bf16.msra.mxu0 %v6329_v28  ;;  %2731 = vmatpush1.bf16.msra.mxu1 %v6330_v26  ;;  %v6364_v26 = vld [vmem:[#allocation93_spill] sm:$0xff] }
 0x857   :  { %2691 = vmatprep.subr.bf16.mxu0 %v6331_v24  ;;  %2732 = vmatprep.subr.bf16.mxu1 %v6332_v15  ;;  %v6365_v15 = vld [vmem:[#allocation94_spill] sm:$0xff] }
 0x85a   :  { %2692 = vmatpush1.bf16.msra.mxu0 %v6333_v62  ;;  %2733 = vmatpush1.bf16.msra.mxu1 %v6334_v44 }
 0x85b   :  { %2693 = vmatprep.subr.bf16.mxu0 %v6335_v42  ;;  %2734 = vmatprep.subr.bf16.mxu1 %v6336_v50 }
 0x85e   :  { %2694 = vmatpush1.bf16.msra.mxu0 %v6337_v51  ;;  %2735 = vmatpush1.bf16.msra.mxu1 %v6338_v55  ;;  %v6366_v51 = vld [vmem:[#allocation95_spill] sm:$0xff] }
 0x85f   :  { %2695 = vmatprep.subr.bf16.mxu0 %v6339_v56  ;;  %2736 = vmatprep.subr.bf16.mxu1 %v6340_v58  ;;  %v6367_v56 = vld [vmem:[#allocation96_spill] sm:$0xff] }
 0x862   :  { %2696 = vmatpush1.bf16.msra.mxu0 %v6341_v59  ;;  %2737 = vmatpush1.bf16.msra.mxu1 %v6342_v60 }
 0x863   :  { %2697 = vmatprep.subr.bf16.mxu0 %v6343_v1  ;;  %2738 = vmatprep.subr.bf16.mxu1 %v6344_v3 }
 0x866   :  { %2698 = vmatpush1.bf16.msra.mxu0 %v6345_v4  ;;  %2739 = vmatpush1.bf16.msra.mxu1 %v6346_v5 }
 0x867   :  { %2699 = vmatprep.subr.bf16.mxu0 %v6347_v0  ;;  %2740 = vmatprep.subr.bf16.mxu1 %v6348_v32 }
 0x86a   :  { %2700 = vmatpush1.bf16.msra.mxu0 %v6349_v9  ;;  %2741 = vmatpush1.bf16.msra.mxu1 %v6350_v8 }
 0x86b   :  { %2701 = vmatprep.subr.bf16.mxu0 %v6351_v53  ;;  %2742 = vmatprep.subr.bf16.mxu1 %v6352_v34 }
 0x86e   :  { %2702 = vmatpush1.bf16.msra.mxu0 %v6353_v10  ;;  %2743 = vmatpush1.bf16.msra.mxu1 %v6354_v27 }
 0x86f   :  { %2703 = vmatprep.subr.bf16.mxu0 %v6355_v2  ;;  %2744 = vmatprep.subr.bf16.mxu1 %v6356_v18 }
 0x872   :  { %2704 = vmatpush1.bf16.msra.mxu0 %v6357_v23  ;;  %2745 = vmatpush1.bf16.msra.mxu1 %v6358_v21 }
 0x8e8   :  { %v2497_v19 = vpop.f32.mrb[68].mxu0  ;;  %v2538_v35 = vpop.f32.mrb[68].mxu1 }
 0x8e9   :  { %v2498_v33 = vadd.f32 %v2497_v19, %v6359_v48  ;;  %v2499_v16 = vpop.f32.mrb[69].mxu0  ;;  %v2540_v30 = vpop.f32.mrb[69].mxu1  ;;  %v2539_v46 = vadd.f32 %v2538_v35, %v6361_v39 }
 0x8ea   :  { %v2500_v20 = vadd.f32 %v2499_v16, %v6360_v6  ;;  %v2501_v29 = vpop.f32.mrb[70].mxu0  ;;  %v2542_v22 = vpop.f32.mrb[70].mxu1  ;;  %v2541_v45 = vadd.f32 %v2540_v30, %v6362_v25 }
 0x8eb   :  { %v2545_v12 = vmul.f32 0.5, %v2498_v33  ;;  %v2502_v43 = vpop.f32.mrb[71].mxu0  ;;  %v2543_v54 = vpop.f32.mrb[71].mxu1 }
 0x8ec   :  { %v2549_v36 = vmul.f32 0.5, %v2500_v20  ;;  %v2554_v11 = vmul.f32 0.5, %v2541_v45  ;;  %v3737_v43 = vmov 0.0   ;;  %v3279_v54 = vld [vmem:[%s5512_s6 + $0x10] sm:$0xff]   ;;  %v3282_v45 = vld [vmem:[%s5512_s6 + $0x28] sm:$0xff]  }
 0x8ed   :  { %3415 = vtanh.f32 %v2545_v12  ;;  %v3277_v12 = vld [vmem:[%s5512_s6] sm:$0xff]   ;;  %3052 = vmatprep.subr.bf16.mxu0 %v3737_v43 }
 0x8ee   :  { %3417 = vtanh.f32 %v2549_v36  ;;  %v3280_v36 = vld [vmem:[%s5512_s6 + $0x18] sm:$0xff]  }
 0x8ef   :  { %3419 = vtanh.f32 %v2539_v46  ;;  %v3281_v46 = vld [vmem:[%s5512_s6 + $0x20] sm:$0xff]  }
 0x8f0   :  { %3421 = vtanh.f32 %v2554_v11  ;;  %v3283_v11 = vld [vmem:[%s5512_s6 + $0x30] sm:$0xff]  }
 0x8f7   :  { %v3416_v40 = vpop.eup %3415 }
 0x8f8   :  { %v3418_v13 = vpop.eup %3417  ;;  %v2547_v57 = vadd.f32 1.0, %v3416_v40  ;;  %v3284_v40 = vld [vmem:[%s5512_s6 + $0x38] sm:$0xff]  }
 0x8f9   :  { %v2551_v14 = vadd.f32 1.0, %v3418_v13  ;;  %v3420_v38 = vpop.eup %3419 }
 0x8fa   :  { %v2548_v47 = vmul.f32 0.5, %v2547_v57  ;;  %v3422_v7 = vpop.eup %3421 }
 0x8fb   :  { %v2552_v52 = vmul.f32 0.5, %v2551_v14  ;;  %v2556_v17 = vadd.f32 1.0, %v3422_v7 }
 0x8fc   :  { %v2559_v63 = vmul.f32 %v3420_v38, %v2548_v47 }
 0x8fd   :  { %v2558_v37 = vmul.f32 %v2552_v52, %v6363_v61  ;;  %v2557_v50 = vmul.f32 0.5, %v2556_v17 }
 0x8ff   :  { %v5454_v49 = vadd.f32 %v2559_v63, %v2558_v37 }
 0x901   :  { %3423 = vtanh.f32 %v5454_v49 }
 0x908   :  { %v2601_v41 = vpop.f32.mrb[72].mxu0  ;;  %v2642_v28 = vpop.f32.mrb[72].mxu1 }
 0x909   :  { %v2649_v24 = vadd.f32 %v2601_v41, %v6364_v26  ;;  %v2651_v62 = vadd.f32 %v2642_v28, %v6365_v15  ;;  %v2603_v44 = vpop.f32.mrb[73].mxu0  ;;  %v2644_v42 = vpop.f32.mrb[73].mxu1 }
 0x90a   :  { %v2650_v55 = vadd.f32 %v2603_v44, %v6366_v51  ;;  %v2652_v58 = vadd.f32 %v2644_v42, %v6367_v56  ;;  %v2605_v59 = vpop.f32.mrb[74].mxu0  ;;  %v2646_v60 = vpop.f32.mrb[74].mxu1 }
 0x90b   :  { %v3424_v1 = vpop.eup %3423  ;;  %v2653_v3 = vmul.f32 0.5, %v2649_v24  ;;  %v2606_v4 = vpop.f32.mrb[75].mxu0 }
 0x90c   :  { %v2647_v5 = vpop.f32.mrb[75].mxu1  ;;  %v2657_v0 = vmul.f32 0.5, %v2650_v55  ;;  %v2562_v32 = vmul.f32 %v3424_v1, %v2557_v50  ;;  %v2662_v8 = vmul.f32 0.5, %v2652_v58 }
 0x90d   :  { %3425 = vtanh.f32 %v2653_v3  ;;  %v3034_v3 = vld [vmem:[%s5513_s7] ss:$0 sm:$0xff] }
 0x90e   :  { %3427 = vtanh.f32 %v2657_v0  ;;  %v2672_v9 = vpack.c.bf16 %v2562_v32, %v2562_v32 }
 0x90f   :  { %3429 = vtanh.f32 %v2651_v62 }
 0x910   :  { %2705 = vmatprep.mubr.bf16.mxu0 %v2672_v9  ;;  %2746 = vmatprep.mubr.bf16.mxu1 %v2672_v9  ;;  %3431 = vtanh.f32 %v2662_v8 }
 0x917   :  { %v3426_v53 = vpop.eup %3425 }
 0x918   :  { %v3428_v34 = vpop.eup %3427  ;;  %v2655_v10 = vadd.f32 1.0, %v3426_v53 }
 0x919   :  { %v2659_v27 = vadd.f32 1.0, %v3428_v34  ;;  %v3430_v18 = vpop.eup %3429 }
 0x91a   :  { %v2656_v2 = vmul.f32 0.5, %v2655_v10  ;;  %v3432_v33 = vpop.eup %3431 }
 0x91b   :  { %v2660_v23 = vmul.f32 0.5, %v2659_v27  ;;  %v2664_v16 = vadd.f32 1.0, %v3432_v33 }
 0x91c   :  { %v2667_v21 = vmul.f32 %v3430_v18, %v2656_v2 }
 0x91d   :  { %v2666_v19 = vmul.f32 %v2660_v23, %v5350_v31  ;;  %v2665_v30 = vmul.f32 0.5, %v2664_v16  ;;  %v3278_v31 = vld [vmem:[%s5512_s6 + $0x8] sm:$0xff]  }
 0x91f   :  { %v2668_v35 = vadd.f32 %v2667_v21, %v2666_v19 }
 0x921   :  { %3433 = vtanh.f32 %v2668_v35 }
 0x92b   :  { %v3434_v20 = vpop.eup %3433 }
 0x92c   :  { %v2670_v29 = vmul.f32 %v3434_v20, %v2665_v30 }
 0x92e   :  { %v2671_v22 = vpack.c.bf16 %v2670_v29, %v2670_v29 }
 0x930   :  { %2706 = vmatmul.mubr.bf16.vlgmr.msra.gmra.mrb[76].mxu0 %v2671_v22  ;;  %2747 = vmatmul.mubr.bf16.vlgmr.msra.gmra.mrb[76].mxu1 %v2671_v22 }
 0x931   :  { %3053 = vmatpush3.bf16.msra.mxu0 %v3277_v12  ;;  %3068 = vmatprep.mubr.msk.bf16.mxu0 %vm3738_vm0, %v3737_v43 }
 0x932   :  { %3054 = vmatprep.subr.bf16.mxu0 %v3737_v43 }
 0x935   :  { %3055 = vmatpush3.bf16.msra.mxu0 %v3278_v31 }
 0x936   :  { %3056 = vmatprep.subr.bf16.mxu0 %v3737_v43 }
 0x939   :  { %3057 = vmatpush3.bf16.msra.mxu0 %v3279_v54 }
 0x93a   :  { %3058 = vmatprep.subr.bf16.mxu0 %v3737_v43 }
 0x93d   :  { %3059 = vmatpush3.bf16.msra.mxu0 %v3280_v36 }
 0x93e   :  { %3060 = vmatprep.subr.bf16.mxu0 %v3737_v43 }
 0x941   :  { %3061 = vmatpush3.bf16.msra.mxu0 %v3281_v46 }
 0x942   :  { %3062 = vmatprep.subr.bf16.mxu0 %v3737_v43 }
 0x945   :  { %3063 = vmatpush3.bf16.msra.mxu0 %v3282_v45 }
 0x946   :  { %3064 = vmatprep.subr.bf16.mxu0 %v3737_v43 }
 0x949   :  { %3065 = vmatpush3.bf16.msra.mxu0 %v3283_v11 }
 0x94a   :  { %3066 = vmatprep.subr.bf16.mxu0 %v3737_v43 }
 0x94d   :  { %3067 = vmatpush3.bf16.msra.mxu0 %v3284_v40 }
 0xa03   :  { %v2707_v13 = vpop.f32.mrb[76].mxu0  ;;  %v2748_v57 = vpop.f32.mrb[76].mxu1 }
 0xa04   :  { %v2708_v14 = vadd.f32 %v2707_v13, %v6359_v48  ;;  %v2709_v47 = vpop.f32.mrb[77].mxu0  ;;  %v2750_v38 = vpop.f32.mrb[77].mxu1  ;;  %v2749_v28 = vadd.f32 %v2748_v57, %v6361_v39 }
 0xa05   :  { %v2710_v52 = vadd.f32 %v2709_v47, %v6360_v6  ;;  %v2711_v63 = vpop.f32.mrb[78].mxu0  ;;  %v2752_v61 = vpop.f32.mrb[78].mxu1  ;;  %v2751_v26 = vadd.f32 %v2750_v38, %v6362_v25 }
 0xa06   :  { %v2755_v37 = vmul.f32 0.5, %v2708_v14  ;;  %v2712_v7 = vpop.f32.mrb[79].mxu0  ;;  %v2753_v17 = vpop.f32.mrb[79].mxu1 }
 0xa07   :  { %v2759_v41 = vmul.f32 0.5, %v2710_v52  ;;  %v2764_v24 = vmul.f32 0.5, %v2751_v26 }
 0xa08   :  { %3435 = vtanh.f32 %v2755_v37 }
 0xa09   :  { %3437 = vtanh.f32 %v2759_v41 }
 0xa0a   :  { %3439 = vtanh.f32 %v2749_v28 }
 0xa0b   :  { %3441 = vtanh.f32 %v2764_v24 }
 0xa12   :  { %v3436_v15 = vpop.eup %3435 }
 0xa13   :  { %v3438_v48 = vpop.eup %3437  ;;  %v2757_v62 = vadd.f32 1.0, %v3436_v15 }
 0xa14   :  { %v2761_v44 = vadd.f32 1.0, %v3438_v48  ;;  %v3440_v42 = vpop.eup %3439 }
 0xa15   :  { %v2758_v6 = vmul.f32 0.5, %v2757_v62  ;;  %v3442_v58 = vpop.eup %3441 }
 0xa16   :  { %v2762_v50 = vmul.f32 0.5, %v2761_v44  ;;  %v2766_v39 = vadd.f32 1.0, %v3442_v58 }
 0xa17   :  { %v2769_v51 = vmul.f32 %v3440_v42, %v2758_v6 }
 0xa18   :  { %v2768_v55 = vmul.f32 %v2762_v50, %v5454_v49  ;;  %v2767_v59 = vmul.f32 0.5, %v2766_v39 }
 0xa1a   :  { %v2770_v56 = vadd.f32 %v2769_v51, %v2768_v55 }
 0xa1c   :  { %3443 = vtanh.f32 %v2770_v56 }
 0xa26   :  { %v3444_v60 = vpop.eup %3443 }
 0xa27   :  { %v2772_v1 = vmul.f32 %v3444_v60, %v2767_v59 }
 0xa29   :  { %v2773_v25 = vpack.c.bf16 %v2772_v1, %v2772_v1 }
 0xa2b   :  { %3069 = vmatmul.mubr.bf16.vlgmr.msra.gmra.mrb[80].mxu0 %v2773_v25 }
 0xafe   :  { %v2879_v4 = vpop.f32.mrb[80].mxu0 }
 0xaff   :  { %v2880_v5 = vadd.f32 %v3034_v3, %v2879_v4  ;;  %v3070_v0 = vpop.f32.mrb[81].mxu0 }
 0xb00   :  { %v2882_v49 = vpop.f32.mrb[82].mxu0 }
 0xb01   :  { %2885 = vst [vmem:[#allocation9] sm:$0xff] %v2880_v5  ;;  %v3071_v32 = vpop.f32.mrb[83].mxu0 }
 0xb02   :  { %3714 = shalt.err (!%p3711_p0)
}
 0xb03   :  { %s3715_s7 = scalar_lea.hbm %s5514_s8, 128 }
 0xb04   :  { %p3716_p1 = scmp.ne.s32.totalorder %s5514_s8, %s3715_s7  ;;  %p3719_p2 = scmp.lt.u32.totalorder %s3715_s7, %s5514_s8 }
 0xb06   :  { %p3721_p3 = pnand %p3719_p2, %p3716_p1 }
 0xb08   :  { %3724 = shalt.err (!%p3721_p3)
}
 0xb09   :  { %2895 = dma.vmem_to_hbm [thread:$0]  %s2893_s18, 128, %s5514_s8, [#allocation5]  }
 0xb0a   :  { %3729 = dma.done.wait [#allocation5], 128  }
 0xb0b   :  { %3730 = vsyncadd [#allocation5], 4294967168 }
 0xb0c   :  { %2899 = vsyncpa [#allocation4], 1 }
 0xb0d   :  { %2900 = vsyncpa [#allocation7], 1 }
 0xb0e   :  { %2901 = vsyncpa [#allocation5], 1 }

</bundles_post_ra>
